<compile_context>
chip_gen: v7x
topology: tpu7x:2x2x1
jax: 0.10.0
libtpu: 0.0.40
codegen_flags: <defaults>
</compile_context>

<pallas_src>
import math

import jax
import jax.numpy as jnp
from jax.experimental import pallas as pl
from jax.experimental.pallas import tpu as pltpu

# ---- small stand-in config (reference: hidden=768, seq=60, 12 layers, 12 heads) ----
B = 2              # batch
S = 16             # max_sent_len (60 in reference)
H = 128            # bert_hidden_size (768 in reference)
NH = 4             # attention heads
DH = H // NH       # head dim
FFN_DIM = 256      # intermediate size
L = 2              # encoder layers
V = 128            # vocab size
FC1 = 200          # fc1 out features (exactly as in the reference module)
FC1P = 256         # fc1 padded to a full lane multiple (zero-padded cols -> exact result)
PW = max(3 * H, FFN_DIM)   # lane width of the packed small-parameter block (multiple of 128)
EPS = 1e-12


# ----------------------------- in-kernel helpers (f32 math) -----------------------------

def _layernorm(x, g, b):
    mu = jnp.mean(x, axis=-1, keepdims=True)
    xc = x - mu
    var = jnp.mean(xc * xc, axis=-1, keepdims=True)
    return xc * jax.lax.rsqrt(var + EPS) * g + b


def _gelu(x):
    # TODO(synk): HF BertModel uses erf-based GELU; tanh approximation kept for robust lowering.
    c = math.sqrt(2.0 / math.pi)
    return 0.5 * x * (1.0 + jnp.tanh(c * (x + 0.044715 * x * x * x)))


# ----------------------------- fully fused BERT kernel -----------------------------
# grid = (L,).  h_sc (B*S, H) f32 scratch = persistent hidden state across layers.

def _bert_kernel(x_emb_ref, bias_ref, emb_ln_ref,
                 wqkv_ref, wo_ref, wi_ref, wf_ref, small_ref,
                 fc1_w_ref, fc1_b_ref, fc2_wt_ref, fc2_b_ref,
                 out_ref,
                 h_sc, attn_sc, flat_sc):
    l = pl.program_id(0)

    # ---- layer 0: embedding LayerNorm (no zero-residual traffic) ----
    @pl.when(l == 0)
    def _init():
        x = x_emb_ref[...]
        h_sc[...] = _layernorm(x, emb_ln_ref[0:1, :], emb_ln_ref[1:2, :])

    # ---- unpack the per-layer small parameters (single DMA'd block) ----
    sv = small_ref[0]                       # (8, PW) f32
    bqkv = sv[0:1, 0:3 * H]
    bo = sv[1:2, 0:H]
    ln1_g = sv[2:3, 0:H]
    ln1_b = sv[3:4, 0:H]
    bi = sv[4:5, 0:FFN_DIM]
    bf = sv[5:6, 0:H]
    ln2_g = sv[6:7, 0:H]
    ln2_b = sv[7:8, 0:H]

    h_in = h_sc[...]                        # (B*S, H) f32, VMEM-resident

    # ---- fused QKV projection: (B*S, H) @ (H, 3H) ----
    qkv = jnp.dot(h_in.astype(jnp.bfloat16), wqkv_ref[0],
                  preferred_element_type=jnp.float32) + bqkv          # (B*S, 3H) f32

    # ---- attention: per-head Wo-split accumulation, results stored to scratch (no concats) ----
    wo = wo_ref[0]                          # (H, H) bf16
    scale = 1.0 / math.sqrt(DH)
    for b in range(B):
        qkv_b = qkv[b * S:(b + 1) * S, :]                             # (S, 3H)
        bias_b = bias_ref[b:b + 1, :]                                 # (1, S) precomputed mask bias
        acc_b = None
        for n in range(NH):
            q = (qkv_b[:, n * DH:(n + 1) * DH] * scale).astype(jnp.bfloat16)            # (S, DH)
            k = qkv_b[:, H + n * DH:H + (n + 1) * DH].astype(jnp.bfloat16)              # (S, DH)
            v = qkv_b[:, 2 * H + n * DH:2 * H + (n + 1) * DH].astype(jnp.bfloat16)      # (S, DH)
            s = jax.lax.dot_general(q, k, (((1,), (1,)), ((), ())),
                                    preferred_element_type=jnp.float32)                 # (S, S)
            s = s + bias_b
            s = s - jnp.max(s, axis=-1, keepdims=True)
            p = jnp.exp(s)
            p = p * pl.reciprocal(jnp.sum(p, axis=-1, keepdims=True), approx=True)
            ctx = jnp.dot(p.astype(jnp.bfloat16), v,
                          preferred_element_type=jnp.float32)                           # (S, DH)
            part = jnp.dot(ctx.astype(jnp.bfloat16), wo[n * DH:(n + 1) * DH, :],
                           preferred_element_type=jnp.float32)                          # (S, H)
            acc_b = part if acc_b is None else acc_b + part
        attn_sc[b * S:(b + 1) * S, :] = acc_b

    # ---- attention output bias + Add&Norm ----
    h1 = _layernorm(attn_sc[...] + bo + h_in, ln1_g, ln1_b)

    # ---- FFN + Add&Norm ----
    ff = jnp.dot(h1.astype(jnp.bfloat16), wi_ref[0],
                 preferred_element_type=jnp.float32) + bi
    ff = _gelu(ff)
    ff2 = jnp.dot(ff.astype(jnp.bfloat16), wf_ref[0],
                  preferred_element_type=jnp.float32) + bf
    h_new = _layernorm(ff2 + h1, ln2_g, ln2_b)
    h_sc[...] = h_new

    # ---- fused classification head on the last grid step ----
    @pl.when(l == L - 1)
    def _head():
        # Flatten (B*S, H) -> (B, S*H) through a scratch with static, 128-lane-aligned stores.
        for b in range(B):
            for s in range(S):
                flat_sc[b:b + 1, s * H:(s + 1) * H] = h_new[b * S + s:b * S + s + 1, :]
        hf = flat_sc[...].astype(jnp.bfloat16)                                          # (B, S*H)
        y = jnp.dot(hf, fc1_w_ref[...],
                    preferred_element_type=jnp.float32) + fc1_b_ref[...]                # (B, FC1P)
        y2 = jnp.sum(y * fc2_wt_ref[...], axis=-1, keepdims=True) + fc2_b_ref[...]      # (B, 1)
        m = jnp.max(y2, axis=0, keepdims=True)                                          # softmax(dim=0)
        e = jnp.exp(y2 - m)
        out_ref[...] = (e * pl.reciprocal(jnp.sum(e, axis=0, keepdims=True),
                                          approx=True)).astype(out_ref.dtype)


def bert_call(params, x_emb, bias):
    const2 = lambda l: (0, 0)
    layer3 = lambda l: (l, 0, 0)
    return pl.pallas_call(
        _bert_kernel,
        out_shape=jax.ShapeDtypeStruct((B, 1), jnp.float32),
        grid=(L,),
        in_specs=[
            pl.BlockSpec((B * S, H), const2),          # x_emb (f32)
            pl.BlockSpec((B, S), const2),              # mask bias (f32, precomputed)
            pl.BlockSpec((2, H), const2),              # embedding LN gamma/beta
            pl.BlockSpec((1, H, 3 * H), layer3),       # wqkv (bf16)
            pl.BlockSpec((1, H, H), layer3),           # wo (bf16)
            pl.BlockSpec((1, H, FFN_DIM), layer3),     # wi (bf16)
            pl.BlockSpec((1, FFN_DIM, H), layer3),     # wf (bf16)
            pl.BlockSpec((1, 8, PW), layer3),          # packed biases + LN params (f32)
            pl.BlockSpec((S * H, FC1P), const2),       # fc1 weight (bf16, zero-padded cols)
            pl.BlockSpec((1, FC1P), const2),           # fc1 bias
            pl.BlockSpec((1, FC1P), const2),           # fc2 weight (transposed, zero-padded)
            pl.BlockSpec((1, 1), const2),              # fc2 bias
        ],
        out_specs=pl.BlockSpec((B, 1), const2),
        scratch_shapes=[
            pltpu.VMEM((B * S, H), jnp.float32),       # persistent hidden state
            pltpu.VMEM((B * S, H), jnp.float32),       # per-layer attention output
            pltpu.VMEM((B, S * H), jnp.float32),       # flattened hidden for the head
        ],
        compiler_params=pltpu.CompilerParams(
            dimension_semantics=("arbitrary",),
            # sized for double-buffered per-layer weights + resident head weights; v7x has only
            # 64 MiB physical VMEM, so this is a deliberate budget rather than the default.
            vmem_limit_bytes=64 * 1024 * 1024,
        ),
    )(x_emb, bias, params["emb_ln"],
      params["wqkv"], params["wo"], params["wi"], params["wf"], params["small"],
      params["fc1_w"], params["fc1_b"], params["fc2_wt"], params["fc2_b"])


# ----------------------------- parameters -----------------------------

def init_params(key):
    keys = iter(jax.random.split(key, 64))

    def w(shape, scale=0.02):
        return (scale * jax.random.normal(next(keys), shape)).astype(jnp.float32)

    def pack_rows(vecs):
        rows = [jnp.pad(v.reshape(1, -1), ((0, 0), (0, PW - v.size))) for v in vecs]
        return jnp.concatenate(rows, axis=0)           # (8, PW)

    wqkv, wo, wi, wf, small = [], [], [], [], []
    for _ in range(L):
        wqkv.append(w((H, 3 * H)))
        wo.append(w((H, H)))
        wi.append(w((H, FFN_DIM)))
        wf.append(w((FFN_DIM, H)))
        small.append(pack_rows([
            jnp.zeros((3 * H,), jnp.float32),          # row 0: bqkv
            jnp.zeros((H,), jnp.float32),              # row 1: bo
            jnp.ones((H,), jnp.float32),               # row 2: ln1_g
            jnp.zeros((H,), jnp.float32),              # row 3: ln1_b
            jnp.zeros((FFN_DIM,), jnp.float32),        # row 4: bi
            jnp.zeros((H,), jnp.float32),              # row 5: bf
            jnp.ones((H,), jnp.float32),               # row 6: ln2_g
            jnp.zeros((H,), jnp.float32),              # row 7: ln2_b
        ]))

    fc1_w = jnp.pad(w((S * H, FC1)), ((0, 0), (0, FC1P - FC1)))         # zero-pad 200 -> 256
    fc2_wt = jnp.pad(w((FC1, 1)).reshape(1, FC1), ((0, 0), (0, FC1P - FC1)))

    # TODO(synk): reference loads pretrained 'bert-base-uncased' weights; synthetic weights here.
    return {
        "word_emb": w((V, H)),
        "pos_emb": w((S, H)),
        "type_emb": w((2, H)),
        "emb_ln": jnp.concatenate([jnp.ones((1, H), jnp.float32),
                                   jnp.zeros((1, H), jnp.float32)], axis=0),   # (2, H)
        "wqkv": jnp.stack(wqkv).astype(jnp.bfloat16),   # (L, H, 3H)
        "wo": jnp.stack(wo).astype(jnp.bfloat16),       # (L, H, H)
        "wi": jnp.stack(wi).astype(jnp.bfloat16),       # (L, H, FFN)
        "wf": jnp.stack(wf).astype(jnp.bfloat16),       # (L, FFN, H)
        "small": jnp.stack(small),                      # (L, 8, PW) f32
        "fc1_w": fc1_w.astype(jnp.bfloat16),            # (S*H, FC1P)
        "fc1_b": jnp.zeros((1, FC1P), jnp.float32),
        "fc2_wt": fc2_wt,                               # (1, FC1P) used as lane reduction
        "fc2_b": jnp.zeros((1, 1), jnp.float32),
    }


# ----------------------------- forward pass -----------------------------

def bert_forward(params, input_ids, attention_mask, token_type_ids):
    # --- embeddings (gathers are plain-JAX glue) ---
    x = (jnp.take(params["word_emb"], input_ids, axis=0)
         + params["pos_emb"][None, :, :]
         + jnp.take(params["type_emb"], token_type_ids, axis=0))          # (B, S, H)
    x = x.reshape(B * S, H)
    # mask bias computed ONCE here (hoisted out of the per-layer kernel body)
    bias = (1.0 - attention_mask.astype(jnp.float32)) * -10000.0          # (B, S)

    # TODO(synk): BertModel's pooler output is computed but unused in the reference forward; skipped.
    # --- one fused pallas_call: embeddings LN + L layers + fc1 -> fc2 -> softmax(dim=0) ---
    return bert_call(params, x, bias)                                     # (B, 1)


if __name__ == "__main__":
    key = jax.random.PRNGKey(0)
    kp, kid = jax.random.split(key, 2)
    params = init_params(kp)

    input_ids = jax.random.randint(kid, (B, S), 0, V, dtype=jnp.int32)
    attention_mask = jnp.ones((B, S), jnp.int32).at[:, S - 4:].set(0)
    token_type_ids = jnp.zeros((B, S), jnp.int32).at[:, S // 2:].set(1)

    out = jax.jit(bert_forward)(params, input_ids, attention_mask, token_type_ids)
    out = jax.block_until_ready(out)
    assert out.shape == (B, 1)
    assert bool(jnp.isfinite(out).all())
    print("KERNEL_OK")
</pallas_src>

<mosaic_0001>
module attributes {stable_mosaic.version = 11 : i64} {
  func.func @_bert_kernel(%arg0: i32, %arg1: memref<32x128xf32, #tpu.memory_space<vmem>>, %arg2: memref<2x16xf32, #tpu.memory_space<vmem>>, %arg3: memref<2x128xf32, #tpu.memory_space<vmem>>, %arg4: memref<1x128x384xbf16, #tpu.memory_space<vmem>>, %arg5: memref<1x128x128xbf16, #tpu.memory_space<vmem>>, %arg6: memref<1x128x256xbf16, #tpu.memory_space<vmem>>, %arg7: memref<1x256x128xbf16, #tpu.memory_space<vmem>>, %arg8: memref<1x8x384xf32, #tpu.memory_space<vmem>>, %arg9: memref<2048x256xbf16, #tpu.memory_space<vmem>>, %arg10: memref<1x256xf32, #tpu.memory_space<vmem>>, %arg11: memref<1x256xf32, #tpu.memory_space<vmem>>, %arg12: memref<1x1xf32, #tpu.memory_space<vmem>>, %arg13: memref<2x1xf32, #tpu.memory_space<vmem>>, %arg14: memref<32x128xf32, #tpu.memory_space<vmem>>, %arg15: memref<32x128xf32, #tpu.memory_space<vmem>>, %arg16: memref<2x2048xf32, #tpu.memory_space<vmem>>) attributes {dimension_semantics = [#tpu.dimension_semantics<arbitrary>], iteration_bounds = array<i64: 2>, scalar_prefetch = 0 : i64, scratch_operands = 3 : i64, tpu.core_type = #tpu.core_type<tc>, window_params = [{pipeline_mode = #tpu.pipeline_mode<synchronous>, transform_indices = @transform_0, window_bounds = array<i64: 32, 128>}, {pipeline_mode = #tpu.pipeline_mode<synchronous>, transform_indices = @transform_1, window_bounds = array<i64: 2, 16>}, {pipeline_mode = #tpu.pipeline_mode<synchronous>, transform_indices = @transform_2, window_bounds = array<i64: 2, 128>}, {transform_indices = @transform_3, window_bounds = array<i64: 1, 128, 384>}, {transform_indices = @transform_4, window_bounds = array<i64: 1, 128, 128>}, {transform_indices = @transform_5, window_bounds = array<i64: 1, 128, 256>}, {transform_indices = @transform_6, window_bounds = array<i64: 1, 256, 128>}, {transform_indices = @transform_7, window_bounds = array<i64: 1, 8, 384>}, {pipeline_mode = #tpu.pipeline_mode<synchronous>, transform_indices = @transform_8, window_bounds = array<i64: 2048, 256>}, {pipeline_mode = #tpu.pipeline_mode<synchronous>, transform_indices = @transform_9, window_bounds = array<i64: 1, 256>}, {pipeline_mode = #tpu.pipeline_mode<synchronous>, transform_indices = @transform_10, window_bounds = array<i64: 1, 256>}, {pipeline_mode = #tpu.pipeline_mode<synchronous>, transform_indices = @transform_11, window_bounds = array<i64: 1, 1>}, {pipeline_mode = #tpu.pipeline_mode<synchronous>, transform_indices = @transform_12, window_bounds = array<i64: 2, 1>}]} {
    %c0_i32 = arith.constant 0 : i32
    %0 = arith.cmpi eq, %arg0, %c0_i32 : i32
    %1 = arith.extui %0 : i1 to i32
    %c0_i32_0 = arith.constant 0 : i32
    %2 = arith.cmpi ne, %1, %c0_i32_0 : i32
    scf.if %2 {
      %c0_92 = arith.constant 0 : index
      %c0_93 = arith.constant 0 : index
      %316 = vector.load %arg1[%c0_92, %c0_93] : memref<32x128xf32, #tpu.memory_space<vmem>>, vector<32x128xf32>
      %c0_94 = arith.constant 0 : index
      %c0_95 = arith.constant 0 : index
      %317 = vector.load %arg3[%c0_94, %c0_95] : memref<2x128xf32, #tpu.memory_space<vmem>>, vector<1x128xf32>
      %c1_96 = arith.constant 1 : index
      %c0_97 = arith.constant 0 : index
      %318 = vector.load %arg3[%c1_96, %c0_97] : memref<2x128xf32, #tpu.memory_space<vmem>>, vector<1x128xf32>
      %cst_98 = arith.constant dense<0.000000e+00> : vector<32xf32>
      %319 = vector.multi_reduction <add>, %316, %cst_98 [1] : vector<32x128xf32> to vector<32xf32>
      %320 = vector.shape_cast %319 : vector<32xf32> to vector<32x1xf32>
      %cst_99 = arith.constant 1.280000e+02 : f32
      %321 = vector.broadcast %cst_99 : f32 to vector<32x1xf32>
      %322 = arith.divf %320, %321 : vector<32x1xf32>
      %323 = vector.broadcast %322 : vector<32x1xf32> to vector<32x128xf32>
      %324 = arith.subf %316, %323 : vector<32x128xf32>
      %325 = arith.mulf %324, %324 : vector<32x128xf32>
      %cst_100 = arith.constant dense<0.000000e+00> : vector<32xf32>
      %326 = vector.multi_reduction <add>, %325, %cst_100 [1] : vector<32x128xf32> to vector<32xf32>
      %327 = vector.shape_cast %326 : vector<32xf32> to vector<32x1xf32>
      %cst_101 = arith.constant 1.280000e+02 : f32
      %328 = vector.broadcast %cst_101 : f32 to vector<32x1xf32>
      %329 = arith.divf %327, %328 : vector<32x1xf32>
      %cst_102 = arith.constant 9.99999996E-13 : f32
      %330 = vector.broadcast %cst_102 : f32 to vector<32x1xf32>
      %331 = arith.addf %329, %330 : vector<32x1xf32>
      %332 = math.rsqrt %331 : vector<32x1xf32>
      %333 = vector.broadcast %332 : vector<32x1xf32> to vector<32x128xf32>
      %334 = arith.mulf %324, %333 : vector<32x128xf32>
      %335 = vector.broadcast %317 : vector<1x128xf32> to vector<32x128xf32>
      %336 = arith.mulf %334, %335 : vector<32x128xf32>
      %337 = vector.broadcast %318 : vector<1x128xf32> to vector<32x128xf32>
      %338 = arith.addf %336, %337 : vector<32x128xf32>
      %c0_103 = arith.constant 0 : index
      %c0_104 = arith.constant 0 : index
      %339 = vector.load %arg14[%c0_103, %c0_104] : memref<32x128xf32, #tpu.memory_space<vmem>>, vector<32x128xf32>
      tpu.vector_store %arg14[%c0_103, %c0_104], %338 {strides = array<i32>} : memref<32x128xf32, #tpu.memory_space<vmem>>, vector<32x128xf32>,
    } else {
    }
    %c0 = arith.constant 0 : index
    %c0_1 = arith.constant 0 : index
    %c0_2 = arith.constant 0 : index
    %3 = vector.load %arg8[%c0, %c0_1, %c0_2] : memref<1x8x384xf32, #tpu.memory_space<vmem>>, vector<1x8x384xf32>
    %4 = vector.shape_cast %3 : vector<1x8x384xf32> to vector<8x384xf32>
    %5 = vector.extract_strided_slice %4 {offsets = [0, 0], sizes = [1, 384], strides = [1, 1]} : vector<8x384xf32> to vector<1x384xf32>
    %6 = vector.extract_strided_slice %4 {offsets = [1, 0], sizes = [1, 128], strides = [1, 1]} : vector<8x384xf32> to vector<1x128xf32>
    %7 = vector.extract_strided_slice %4 {offsets = [2, 0], sizes = [1, 128], strides = [1, 1]} : vector<8x384xf32> to vector<1x128xf32>
    %8 = vector.extract_strided_slice %4 {offsets = [3, 0], sizes = [1, 128], strides = [1, 1]} : vector<8x384xf32> to vector<1x128xf32>
    %9 = vector.extract_strided_slice %4 {offsets = [4, 0], sizes = [1, 256], strides = [1, 1]} : vector<8x384xf32> to vector<1x256xf32>
    %10 = vector.extract_strided_slice %4 {offsets = [5, 0], sizes = [1, 128], strides = [1, 1]} : vector<8x384xf32> to vector<1x128xf32>
    %11 = vector.extract_strided_slice %4 {offsets = [6, 0], sizes = [1, 128], strides = [1, 1]} : vector<8x384xf32> to vector<1x128xf32>
    %12 = vector.extract_strided_slice %4 {offsets = [7, 0], sizes = [1, 128], strides = [1, 1]} : vector<8x384xf32> to vector<1x128xf32>
    %c0_3 = arith.constant 0 : index
    %c0_4 = arith.constant 0 : index
    %13 = vector.load %arg14[%c0_3, %c0_4] : memref<32x128xf32, #tpu.memory_space<vmem>>, vector<32x128xf32>
    %14 = arith.truncf %13 : vector<32x128xf32> to vector<32x128xbf16>
    %c0_5 = arith.constant 0 : index
    %c0_6 = arith.constant 0 : index
    %c0_7 = arith.constant 0 : index
    %15 = vector.load %arg4[%c0_5, %c0_6, %c0_7] : memref<1x128x384xbf16, #tpu.memory_space<vmem>>, vector<1x128x384xbf16>
    %16 = vector.shape_cast %15 : vector<1x128x384xbf16> to vector<128x384xbf16>
    %cst = arith.constant dense<0.000000e+00> : vector<32x384xf32>
    %17 = tpu.matmul %14, %16, %cst {dimension_numbers = #tpu.dot_dimension_numbers<[1], [0], [0], [1], [0, 0, 1, 1], [], []>} : vector<32x128xbf16>, vector<128x384xbf16>, vector<32x384xf32> -> vector<32x384xf32>
    %18 = vector.broadcast %5 : vector<1x384xf32> to vector<32x384xf32>
    %19 = arith.addf %17, %18 : vector<32x384xf32>
    %c0_8 = arith.constant 0 : index
    %c0_9 = arith.constant 0 : index
    %c0_10 = arith.constant 0 : index
    %20 = vector.load %arg5[%c0_8, %c0_9, %c0_10] : memref<1x128x128xbf16, #tpu.memory_space<vmem>>, vector<1x128x128xbf16>
    %21 = vector.shape_cast %20 : vector<1x128x128xbf16> to vector<128x128xbf16>
    %22 = vector.extract_strided_slice %19 {offsets = [0, 0], sizes = [16, 384], strides = [1, 1]} : vector<32x384xf32> to vector<16x384xf32>
    %c0_11 = arith.constant 0 : index
    %c0_12 = arith.constant 0 : index
    %23 = vector.load %arg2[%c0_11, %c0_12] : memref<2x16xf32, #tpu.memory_space<vmem>>, vector<1x16xf32>
    %24 = vector.extract_strided_slice %22 {offsets = [0, 0], sizes = [16, 32], strides = [1, 1]} : vector<16x384xf32> to vector<16x32xf32>
    %cst_13 = arith.constant 0.176776692 : f32
    %25 = vector.broadcast %cst_13 : f32 to vector<16x32xf32>
    %26 = arith.mulf %24, %25 : vector<16x32xf32>
    %27 = arith.truncf %26 : vector<16x32xf32> to vector<16x32xbf16>
    %28 = vector.extract_strided_slice %22 {offsets = [0, 128], sizes = [16, 32], strides = [1, 1]} : vector<16x384xf32> to vector<16x32xf32>
    %29 = arith.truncf %28 : vector<16x32xf32> to vector<16x32xbf16>
    %30 = vector.extract_strided_slice %22 {offsets = [0, 256], sizes = [16, 32], strides = [1, 1]} : vector<16x384xf32> to vector<16x32xf32>
    %31 = arith.truncf %30 : vector<16x32xf32> to vector<16x32xbf16>
    %cst_14 = arith.constant dense<0.000000e+00> : vector<16x16xf32>
    %32 = tpu.matmul %27, %29, %cst_14 {dimension_numbers = #tpu.dot_dimension_numbers<[1], [1], [0], [0], [0, 0, 1, 0], [], []>} : vector<16x32xbf16>, vector<16x32xbf16>, vector<16x16xf32> -> vector<16x16xf32>
    %33 = vector.broadcast %23 : vector<1x16xf32> to vector<16x16xf32>
    %34 = arith.addf %32, %33 : vector<16x16xf32>
    %cst_15 = arith.constant dense<0xFF800000> : vector<16xf32>
    %35 = vector.multi_reduction <maximumf>, %34, %cst_15 [1] : vector<16x16xf32> to vector<16xf32>
    %36 = vector.shape_cast %35 : vector<16xf32> to vector<16x1xf32>
    %37 = vector.broadcast %36 : vector<16x1xf32> to vector<16x16xf32>
    %38 = arith.subf %34, %37 : vector<16x16xf32>
    %39 = math.exp %38 : vector<16x16xf32>
    %cst_16 = arith.constant dense<0.000000e+00> : vector<16xf32>
    %40 = vector.multi_reduction <add>, %39, %cst_16 [1] : vector<16x16xf32> to vector<16xf32>
    %41 = vector.shape_cast %40 : vector<16xf32> to vector<16x1xf32>
    %42 = tpu.reciprocal %41 {approx = true} : vector<16x1xf32> -> vector<16x1xf32>
    %43 = vector.broadcast %42 : vector<16x1xf32> to vector<16x16xf32>
    %44 = arith.mulf %39, %43 : vector<16x16xf32>
    %45 = arith.truncf %44 : vector<16x16xf32> to vector<16x16xbf16>
    %cst_17 = arith.constant dense<0.000000e+00> : vector<16x32xf32>
    %46 = tpu.matmul %45, %31, %cst_17 {dimension_numbers = #tpu.dot_dimension_numbers<[1], [0], [0], [1], [0, 0, 1, 1], [], []>} : vector<16x16xbf16>, vector<16x32xbf16>, vector<16x32xf32> -> vector<16x32xf32>
    %47 = arith.truncf %46 : vector<16x32xf32> to vector<16x32xbf16>
    %48 = vector.extract_strided_slice %21 {offsets = [0, 0], sizes = [32, 128], strides = [1, 1]} : vector<128x128xbf16> to vector<32x128xbf16>
    %cst_18 = arith.constant dense<0.000000e+00> : vector<16x128xf32>
    %49 = tpu.matmul %47, %48, %cst_18 {dimension_numbers = #tpu.dot_dimension_numbers<[1], [0], [0], [1], [0, 0, 1, 1], [], []>} : vector<16x32xbf16>, vector<32x128xbf16>, vector<16x128xf32> -> vector<16x128xf32>
    %50 = vector.extract_strided_slice %22 {offsets = [0, 32], sizes = [16, 32], strides = [1, 1]} : vector<16x384xf32> to vector<16x32xf32>
    %cst_19 = arith.constant 0.176776692 : f32
    %51 = vector.broadcast %cst_19 : f32 to vector<16x32xf32>
    %52 = arith.mulf %50, %51 : vector<16x32xf32>
    %53 = arith.truncf %52 : vector<16x32xf32> to vector<16x32xbf16>
    %54 = vector.extract_strided_slice %22 {offsets = [0, 160], sizes = [16, 32], strides = [1, 1]} : vector<16x384xf32> to vector<16x32xf32>
    %55 = arith.truncf %54 : vector<16x32xf32> to vector<16x32xbf16>
    %56 = vector.extract_strided_slice %22 {offsets = [0, 288], sizes = [16, 32], strides = [1, 1]} : vector<16x384xf32> to vector<16x32xf32>
    %57 = arith.truncf %56 : vector<16x32xf32> to vector<16x32xbf16>
    %cst_20 = arith.constant dense<0.000000e+00> : vector<16x16xf32>
    %58 = tpu.matmul %53, %55, %cst_20 {dimension_numbers = #tpu.dot_dimension_numbers<[1], [1], [0], [0], [0, 0, 1, 0], [], []>} : vector<16x32xbf16>, vector<16x32xbf16>, vector<16x16xf32> -> vector<16x16xf32>
    %59 = vector.broadcast %23 : vector<1x16xf32> to vector<16x16xf32>
    %60 = arith.addf %58, %59 : vector<16x16xf32>
    %cst_21 = arith.constant dense<0xFF800000> : vector<16xf32>
    %61 = vector.multi_reduction <maximumf>, %60, %cst_21 [1] : vector<16x16xf32> to vector<16xf32>
    %62 = vector.shape_cast %61 : vector<16xf32> to vector<16x1xf32>
    %63 = vector.broadcast %62 : vector<16x1xf32> to vector<16x16xf32>
    %64 = arith.subf %60, %63 : vector<16x16xf32>
    %65 = math.exp %64 : vector<16x16xf32>
    %cst_22 = arith.constant dense<0.000000e+00> : vector<16xf32>
    %66 = vector.multi_reduction <add>, %65, %cst_22 [1] : vector<16x16xf32> to vector<16xf32>
    %67 = vector.shape_cast %66 : vector<16xf32> to vector<16x1xf32>
    %68 = tpu.reciprocal %67 {approx = true} : vector<16x1xf32> -> vector<16x1xf32>
    %69 = vector.broadcast %68 : vector<16x1xf32> to vector<16x16xf32>
    %70 = arith.mulf %65, %69 : vector<16x16xf32>
    %71 = arith.truncf %70 : vector<16x16xf32> to vector<16x16xbf16>
    %cst_23 = arith.constant dense<0.000000e+00> : vector<16x32xf32>
    %72 = tpu.matmul %71, %57, %cst_23 {dimension_numbers = #tpu.dot_dimension_numbers<[1], [0], [0], [1], [0, 0, 1, 1], [], []>} : vector<16x16xbf16>, vector<16x32xbf16>, vector<16x32xf32> -> vector<16x32xf32>
    %73 = arith.truncf %72 : vector<16x32xf32> to vector<16x32xbf16>
    %74 = vector.extract_strided_slice %21 {offsets = [32, 0], sizes = [32, 128], strides = [1, 1]} : vector<128x128xbf16> to vector<32x128xbf16>
    %cst_24 = arith.constant dense<0.000000e+00> : vector<16x128xf32>
    %75 = tpu.matmul %73, %74, %cst_24 {dimension_numbers = #tpu.dot_dimension_numbers<[1], [0], [0], [1], [0, 0, 1, 1], [], []>} : vector<16x32xbf16>, vector<32x128xbf16>, vector<16x128xf32> -> vector<16x128xf32>
    %76 = arith.addf %49, %75 : vector<16x128xf32>
    %77 = vector.extract_strided_slice %22 {offsets = [0, 64], sizes = [16, 32], strides = [1, 1]} : vector<16x384xf32> to vector<16x32xf32>
    %cst_25 = arith.constant 0.176776692 : f32
    %78 = vector.broadcast %cst_25 : f32 to vector<16x32xf32>
    %79 = arith.mulf %77, %78 : vector<16x32xf32>
    %80 = arith.truncf %79 : vector<16x32xf32> to vector<16x32xbf16>
    %81 = vector.extract_strided_slice %22 {offsets = [0, 192], sizes = [16, 32], strides = [1, 1]} : vector<16x384xf32> to vector<16x32xf32>
    %82 = arith.truncf %81 : vector<16x32xf32> to vector<16x32xbf16>
    %83 = vector.extract_strided_slice %22 {offsets = [0, 320], sizes = [16, 32], strides = [1, 1]} : vector<16x384xf32> to vector<16x32xf32>
    %84 = arith.truncf %83 : vector<16x32xf32> to vector<16x32xbf16>
    %cst_26 = arith.constant dense<0.000000e+00> : vector<16x16xf32>
    %85 = tpu.matmul %80, %82, %cst_26 {dimension_numbers = #tpu.dot_dimension_numbers<[1], [1], [0], [0], [0, 0, 1, 0], [], []>} : vector<16x32xbf16>, vector<16x32xbf16>, vector<16x16xf32> -> vector<16x16xf32>
    %86 = vector.broadcast %23 : vector<1x16xf32> to vector<16x16xf32>
    %87 = arith.addf %85, %86 : vector<16x16xf32>
    %cst_27 = arith.constant dense<0xFF800000> : vector<16xf32>
    %88 = vector.multi_reduction <maximumf>, %87, %cst_27 [1] : vector<16x16xf32> to vector<16xf32>
    %89 = vector.shape_cast %88 : vector<16xf32> to vector<16x1xf32>
    %90 = vector.broadcast %89 : vector<16x1xf32> to vector<16x16xf32>
    %91 = arith.subf %87, %90 : vector<16x16xf32>
    %92 = math.exp %91 : vector<16x16xf32>
    %cst_28 = arith.constant dense<0.000000e+00> : vector<16xf32>
    %93 = vector.multi_reduction <add>, %92, %cst_28 [1] : vector<16x16xf32> to vector<16xf32>
    %94 = vector.shape_cast %93 : vector<16xf32> to vector<16x1xf32>
    %95 = tpu.reciprocal %94 {approx = true} : vector<16x1xf32> -> vector<16x1xf32>
    %96 = vector.broadcast %95 : vector<16x1xf32> to vector<16x16xf32>
    %97 = arith.mulf %92, %96 : vector<16x16xf32>
    %98 = arith.truncf %97 : vector<16x16xf32> to vector<16x16xbf16>
    %cst_29 = arith.constant dense<0.000000e+00> : vector<16x32xf32>
    %99 = tpu.matmul %98, %84, %cst_29 {dimension_numbers = #tpu.dot_dimension_numbers<[1], [0], [0], [1], [0, 0, 1, 1], [], []>} : vector<16x16xbf16>, vector<16x32xbf16>, vector<16x32xf32> -> vector<16x32xf32>
    %100 = arith.truncf %99 : vector<16x32xf32> to vector<16x32xbf16>
    %101 = vector.extract_strided_slice %21 {offsets = [64, 0], sizes = [32, 128], strides = [1, 1]} : vector<128x128xbf16> to vector<32x128xbf16>
    %cst_30 = arith.constant dense<0.000000e+00> : vector<16x128xf32>
    %102 = tpu.matmul %100, %101, %cst_30 {dimension_numbers = #tpu.dot_dimension_numbers<[1], [0], [0], [1], [0, 0, 1, 1], [], []>} : vector<16x32xbf16>, vector<32x128xbf16>, vector<16x128xf32> -> vector<16x128xf32>
    %103 = arith.addf %76, %102 : vector<16x128xf32>
    %104 = vector.extract_strided_slice %22 {offsets = [0, 96], sizes = [16, 32], strides = [1, 1]} : vector<16x384xf32> to vector<16x32xf32>
    %cst_31 = arith.constant 0.176776692 : f32
    %105 = vector.broadcast %cst_31 : f32 to vector<16x32xf32>
    %106 = arith.mulf %104, %105 : vector<16x32xf32>
    %107 = arith.truncf %106 : vector<16x32xf32> to vector<16x32xbf16>
    %108 = vector.extract_strided_slice %22 {offsets = [0, 224], sizes = [16, 32], strides = [1, 1]} : vector<16x384xf32> to vector<16x32xf32>
    %109 = arith.truncf %108 : vector<16x32xf32> to vector<16x32xbf16>
    %110 = vector.extract_strided_slice %22 {offsets = [0, 352], sizes = [16, 32], strides = [1, 1]} : vector<16x384xf32> to vector<16x32xf32>
    %111 = arith.truncf %110 : vector<16x32xf32> to vector<16x32xbf16>
    %cst_32 = arith.constant dense<0.000000e+00> : vector<16x16xf32>
    %112 = tpu.matmul %107, %109, %cst_32 {dimension_numbers = #tpu.dot_dimension_numbers<[1], [1], [0], [0], [0, 0, 1, 0], [], []>} : vector<16x32xbf16>, vector<16x32xbf16>, vector<16x16xf32> -> vector<16x16xf32>
    %113 = vector.broadcast %23 : vector<1x16xf32> to vector<16x16xf32>
    %114 = arith.addf %112, %113 : vector<16x16xf32>
    %cst_33 = arith.constant dense<0xFF800000> : vector<16xf32>
    %115 = vector.multi_reduction <maximumf>, %114, %cst_33 [1] : vector<16x16xf32> to vector<16xf32>
    %116 = vector.shape_cast %115 : vector<16xf32> to vector<16x1xf32>
    %117 = vector.broadcast %116 : vector<16x1xf32> to vector<16x16xf32>
    %118 = arith.subf %114, %117 : vector<16x16xf32>
    %119 = math.exp %118 : vector<16x16xf32>
    %cst_34 = arith.constant dense<0.000000e+00> : vector<16xf32>
    %120 = vector.multi_reduction <add>, %119, %cst_34 [1] : vector<16x16xf32> to vector<16xf32>
    %121 = vector.shape_cast %120 : vector<16xf32> to vector<16x1xf32>
    %122 = tpu.reciprocal %121 {approx = true} : vector<16x1xf32> -> vector<16x1xf32>
    %123 = vector.broadcast %122 : vector<16x1xf32> to vector<16x16xf32>
    %124 = arith.mulf %119, %123 : vector<16x16xf32>
    %125 = arith.truncf %124 : vector<16x16xf32> to vector<16x16xbf16>
    %cst_35 = arith.constant dense<0.000000e+00> : vector<16x32xf32>
    %126 = tpu.matmul %125, %111, %cst_35 {dimension_numbers = #tpu.dot_dimension_numbers<[1], [0], [0], [1], [0, 0, 1, 1], [], []>} : vector<16x16xbf16>, vector<16x32xbf16>, vector<16x32xf32> -> vector<16x32xf32>
    %127 = arith.truncf %126 : vector<16x32xf32> to vector<16x32xbf16>
    %128 = vector.extract_strided_slice %21 {offsets = [96, 0], sizes = [32, 128], strides = [1, 1]} : vector<128x128xbf16> to vector<32x128xbf16>
    %cst_36 = arith.constant dense<0.000000e+00> : vector<16x128xf32>
    %129 = tpu.matmul %127, %128, %cst_36 {dimension_numbers = #tpu.dot_dimension_numbers<[1], [0], [0], [1], [0, 0, 1, 1], [], []>} : vector<16x32xbf16>, vector<32x128xbf16>, vector<16x128xf32> -> vector<16x128xf32>
    %130 = arith.addf %103, %129 : vector<16x128xf32>
    %c0_37 = arith.constant 0 : index
    %c0_38 = arith.constant 0 : index
    %131 = vector.load %arg15[%c0_37, %c0_38] : memref<32x128xf32, #tpu.memory_space<vmem>>, vector<16x128xf32>
    tpu.vector_store %arg15[%c0_37, %c0_38], %130 {strides = array<i32>} : memref<32x128xf32, #tpu.memory_space<vmem>>, vector<16x128xf32>,
    %132 = vector.extract_strided_slice %19 {offsets = [16, 0], sizes = [16, 384], strides = [1, 1]} : vector<32x384xf32> to vector<16x384xf32>
    %c1 = arith.constant 1 : index
    %c0_39 = arith.constant 0 : index
    %133 = vector.load %arg2[%c1, %c0_39] : memref<2x16xf32, #tpu.memory_space<vmem>>, vector<1x16xf32>
    %134 = vector.extract_strided_slice %132 {offsets = [0, 0], sizes = [16, 32], strides = [1, 1]} : vector<16x384xf32> to vector<16x32xf32>
    %cst_40 = arith.constant 0.176776692 : f32
    %135 = vector.broadcast %cst_40 : f32 to vector<16x32xf32>
    %136 = arith.mulf %134, %135 : vector<16x32xf32>
    %137 = arith.truncf %136 : vector<16x32xf32> to vector<16x32xbf16>
    %138 = vector.extract_strided_slice %132 {offsets = [0, 128], sizes = [16, 32], strides = [1, 1]} : vector<16x384xf32> to vector<16x32xf32>
    %139 = arith.truncf %138 : vector<16x32xf32> to vector<16x32xbf16>
    %140 = vector.extract_strided_slice %132 {offsets = [0, 256], sizes = [16, 32], strides = [1, 1]} : vector<16x384xf32> to vector<16x32xf32>
    %141 = arith.truncf %140 : vector<16x32xf32> to vector<16x32xbf16>
    %cst_41 = arith.constant dense<0.000000e+00> : vector<16x16xf32>
    %142 = tpu.matmul %137, %139, %cst_41 {dimension_numbers = #tpu.dot_dimension_numbers<[1], [1], [0], [0], [0, 0, 1, 0], [], []>} : vector<16x32xbf16>, vector<16x32xbf16>, vector<16x16xf32> -> vector<16x16xf32>
    %143 = vector.broadcast %133 : vector<1x16xf32> to vector<16x16xf32>
    %144 = arith.addf %142, %143 : vector<16x16xf32>
    %cst_42 = arith.constant dense<0xFF800000> : vector<16xf32>
    %145 = vector.multi_reduction <maximumf>, %144, %cst_42 [1] : vector<16x16xf32> to vector<16xf32>
    %146 = vector.shape_cast %145 : vector<16xf32> to vector<16x1xf32>
    %147 = vector.broadcast %146 : vector<16x1xf32> to vector<16x16xf32>
    %148 = arith.subf %144, %147 : vector<16x16xf32>
    %149 = math.exp %148 : vector<16x16xf32>
    %cst_43 = arith.constant dense<0.000000e+00> : vector<16xf32>
    %150 = vector.multi_reduction <add>, %149, %cst_43 [1] : vector<16x16xf32> to vector<16xf32>
    %151 = vector.shape_cast %150 : vector<16xf32> to vector<16x1xf32>
    %152 = tpu.reciprocal %151 {approx = true} : vector<16x1xf32> -> vector<16x1xf32>
    %153 = vector.broadcast %152 : vector<16x1xf32> to vector<16x16xf32>
    %154 = arith.mulf %149, %153 : vector<16x16xf32>
    %155 = arith.truncf %154 : vector<16x16xf32> to vector<16x16xbf16>
    %cst_44 = arith.constant dense<0.000000e+00> : vector<16x32xf32>
    %156 = tpu.matmul %155, %141, %cst_44 {dimension_numbers = #tpu.dot_dimension_numbers<[1], [0], [0], [1], [0, 0, 1, 1], [], []>} : vector<16x16xbf16>, vector<16x32xbf16>, vector<16x32xf32> -> vector<16x32xf32>
    %157 = arith.truncf %156 : vector<16x32xf32> to vector<16x32xbf16>
    %158 = vector.extract_strided_slice %21 {offsets = [0, 0], sizes = [32, 128], strides = [1, 1]} : vector<128x128xbf16> to vector<32x128xbf16>
    %cst_45 = arith.constant dense<0.000000e+00> : vector<16x128xf32>
    %159 = tpu.matmul %157, %158, %cst_45 {dimension_numbers = #tpu.dot_dimension_numbers<[1], [0], [0], [1], [0, 0, 1, 1], [], []>} : vector<16x32xbf16>, vector<32x128xbf16>, vector<16x128xf32> -> vector<16x128xf32>
    %160 = vector.extract_strided_slice %132 {offsets = [0, 32], sizes = [16, 32], strides = [1, 1]} : vector<16x384xf32> to vector<16x32xf32>
    %cst_46 = arith.constant 0.176776692 : f32
    %161 = vector.broadcast %cst_46 : f32 to vector<16x32xf32>
    %162 = arith.mulf %160, %161 : vector<16x32xf32>
    %163 = arith.truncf %162 : vector<16x32xf32> to vector<16x32xbf16>
    %164 = vector.extract_strided_slice %132 {offsets = [0, 160], sizes = [16, 32], strides = [1, 1]} : vector<16x384xf32> to vector<16x32xf32>
    %165 = arith.truncf %164 : vector<16x32xf32> to vector<16x32xbf16>
    %166 = vector.extract_strided_slice %132 {offsets = [0, 288], sizes = [16, 32], strides = [1, 1]} : vector<16x384xf32> to vector<16x32xf32>
    %167 = arith.truncf %166 : vector<16x32xf32> to vector<16x32xbf16>
    %cst_47 = arith.constant dense<0.000000e+00> : vector<16x16xf32>
    %168 = tpu.matmul %163, %165, %cst_47 {dimension_numbers = #tpu.dot_dimension_numbers<[1], [1], [0], [0], [0, 0, 1, 0], [], []>} : vector<16x32xbf16>, vector<16x32xbf16>, vector<16x16xf32> -> vector<16x16xf32>
    %169 = vector.broadcast %133 : vector<1x16xf32> to vector<16x16xf32>
    %170 = arith.addf %168, %169 : vector<16x16xf32>
    %cst_48 = arith.constant dense<0xFF800000> : vector<16xf32>
    %171 = vector.multi_reduction <maximumf>, %170, %cst_48 [1] : vector<16x16xf32> to vector<16xf32>
    %172 = vector.shape_cast %171 : vector<16xf32> to vector<16x1xf32>
    %173 = vector.broadcast %172 : vector<16x1xf32> to vector<16x16xf32>
    %174 = arith.subf %170, %173 : vector<16x16xf32>
    %175 = math.exp %174 : vector<16x16xf32>
    %cst_49 = arith.constant dense<0.000000e+00> : vector<16xf32>
    %176 = vector.multi_reduction <add>, %175, %cst_49 [1] : vector<16x16xf32> to vector<16xf32>
    %177 = vector.shape_cast %176 : vector<16xf32> to vector<16x1xf32>
    %178 = tpu.reciprocal %177 {approx = true} : vector<16x1xf32> -> vector<16x1xf32>
    %179 = vector.broadcast %178 : vector<16x1xf32> to vector<16x16xf32>
    %180 = arith.mulf %175, %179 : vector<16x16xf32>
    %181 = arith.truncf %180 : vector<16x16xf32> to vector<16x16xbf16>
    %cst_50 = arith.constant dense<0.000000e+00> : vector<16x32xf32>
    %182 = tpu.matmul %181, %167, %cst_50 {dimension_numbers = #tpu.dot_dimension_numbers<[1], [0], [0], [1], [0, 0, 1, 1], [], []>} : vector<16x16xbf16>, vector<16x32xbf16>, vector<16x32xf32> -> vector<16x32xf32>
    %183 = arith.truncf %182 : vector<16x32xf32> to vector<16x32xbf16>
    %184 = vector.extract_strided_slice %21 {offsets = [32, 0], sizes = [32, 128], strides = [1, 1]} : vector<128x128xbf16> to vector<32x128xbf16>
    %cst_51 = arith.constant dense<0.000000e+00> : vector<16x128xf32>
    %185 = tpu.matmul %183, %184, %cst_51 {dimension_numbers = #tpu.dot_dimension_numbers<[1], [0], [0], [1], [0, 0, 1, 1], [], []>} : vector<16x32xbf16>, vector<32x128xbf16>, vector<16x128xf32> -> vector<16x128xf32>
    %186 = arith.addf %159, %185 : vector<16x128xf32>
    %187 = vector.extract_strided_slice %132 {offsets = [0, 64], sizes = [16, 32], strides = [1, 1]} : vector<16x384xf32> to vector<16x32xf32>
    %cst_52 = arith.constant 0.176776692 : f32
    %188 = vector.broadcast %cst_52 : f32 to vector<16x32xf32>
    %189 = arith.mulf %187, %188 : vector<16x32xf32>
    %190 = arith.truncf %189 : vector<16x32xf32> to vector<16x32xbf16>
    %191 = vector.extract_strided_slice %132 {offsets = [0, 192], sizes = [16, 32], strides = [1, 1]} : vector<16x384xf32> to vector<16x32xf32>
    %192 = arith.truncf %191 : vector<16x32xf32> to vector<16x32xbf16>
    %193 = vector.extract_strided_slice %132 {offsets = [0, 320], sizes = [16, 32], strides = [1, 1]} : vector<16x384xf32> to vector<16x32xf32>
    %194 = arith.truncf %193 : vector<16x32xf32> to vector<16x32xbf16>
    %cst_53 = arith.constant dense<0.000000e+00> : vector<16x16xf32>
    %195 = tpu.matmul %190, %192, %cst_53 {dimension_numbers = #tpu.dot_dimension_numbers<[1], [1], [0], [0], [0, 0, 1, 0], [], []>} : vector<16x32xbf16>, vector<16x32xbf16>, vector<16x16xf32> -> vector<16x16xf32>
    %196 = vector.broadcast %133 : vector<1x16xf32> to vector<16x16xf32>
    %197 = arith.addf %195, %196 : vector<16x16xf32>
    %cst_54 = arith.constant dense<0xFF800000> : vector<16xf32>
    %198 = vector.multi_reduction <maximumf>, %197, %cst_54 [1] : vector<16x16xf32> to vector<16xf32>
    %199 = vector.shape_cast %198 : vector<16xf32> to vector<16x1xf32>
    %200 = vector.broadcast %199 : vector<16x1xf32> to vector<16x16xf32>
    %201 = arith.subf %197, %200 : vector<16x16xf32>
    %202 = math.exp %201 : vector<16x16xf32>
    %cst_55 = arith.constant dense<0.000000e+00> : vector<16xf32>
    %203 = vector.multi_reduction <add>, %202, %cst_55 [1] : vector<16x16xf32> to vector<16xf32>
    %204 = vector.shape_cast %203 : vector<16xf32> to vector<16x1xf32>
    %205 = tpu.reciprocal %204 {approx = true} : vector<16x1xf32> -> vector<16x1xf32>
    %206 = vector.broadcast %205 : vector<16x1xf32> to vector<16x16xf32>
    %207 = arith.mulf %202, %206 : vector<16x16xf32>
    %208 = arith.truncf %207 : vector<16x16xf32> to vector<16x16xbf16>
    %cst_56 = arith.constant dense<0.000000e+00> : vector<16x32xf32>
    %209 = tpu.matmul %208, %194, %cst_56 {dimension_numbers = #tpu.dot_dimension_numbers<[1], [0], [0], [1], [0, 0, 1, 1], [], []>} : vector<16x16xbf16>, vector<16x32xbf16>, vector<16x32xf32> -> vector<16x32xf32>
    %210 = arith.truncf %209 : vector<16x32xf32> to vector<16x32xbf16>
    %211 = vector.extract_strided_slice %21 {offsets = [64, 0], sizes = [32, 128], strides = [1, 1]} : vector<128x128xbf16> to vector<32x128xbf16>
    %cst_57 = arith.constant dense<0.000000e+00> : vector<16x128xf32>
    %212 = tpu.matmul %210, %211, %cst_57 {dimension_numbers = #tpu.dot_dimension_numbers<[1], [0], [0], [1], [0, 0, 1, 1], [], []>} : vector<16x32xbf16>, vector<32x128xbf16>, vector<16x128xf32> -> vector<16x128xf32>
    %213 = arith.addf %186, %212 : vector<16x128xf32>
    %214 = vector.extract_strided_slice %132 {offsets = [0, 96], sizes = [16, 32], strides = [1, 1]} : vector<16x384xf32> to vector<16x32xf32>
    %cst_58 = arith.constant 0.176776692 : f32
    %215 = vector.broadcast %cst_58 : f32 to vector<16x32xf32>
    %216 = arith.mulf %214, %215 : vector<16x32xf32>
    %217 = arith.truncf %216 : vector<16x32xf32> to vector<16x32xbf16>
    %218 = vector.extract_strided_slice %132 {offsets = [0, 224], sizes = [16, 32], strides = [1, 1]} : vector<16x384xf32> to vector<16x32xf32>
    %219 = arith.truncf %218 : vector<16x32xf32> to vector<16x32xbf16>
    %220 = vector.extract_strided_slice %132 {offsets = [0, 352], sizes = [16, 32], strides = [1, 1]} : vector<16x384xf32> to vector<16x32xf32>
    %221 = arith.truncf %220 : vector<16x32xf32> to vector<16x32xbf16>
    %cst_59 = arith.constant dense<0.000000e+00> : vector<16x16xf32>
    %222 = tpu.matmul %217, %219, %cst_59 {dimension_numbers = #tpu.dot_dimension_numbers<[1], [1], [0], [0], [0, 0, 1, 0], [], []>} : vector<16x32xbf16>, vector<16x32xbf16>, vector<16x16xf32> -> vector<16x16xf32>
    %223 = vector.broadcast %133 : vector<1x16xf32> to vector<16x16xf32>
    %224 = arith.addf %222, %223 : vector<16x16xf32>
    %cst_60 = arith.constant dense<0xFF800000> : vector<16xf32>
    %225 = vector.multi_reduction <maximumf>, %224, %cst_60 [1] : vector<16x16xf32> to vector<16xf32>
    %226 = vector.shape_cast %225 : vector<16xf32> to vector<16x1xf32>
    %227 = vector.broadcast %226 : vector<16x1xf32> to vector<16x16xf32>
    %228 = arith.subf %224, %227 : vector<16x16xf32>
    %229 = math.exp %228 : vector<16x16xf32>
    %cst_61 = arith.constant dense<0.000000e+00> : vector<16xf32>
    %230 = vector.multi_reduction <add>, %229, %cst_61 [1] : vector<16x16xf32> to vector<16xf32>
    %231 = vector.shape_cast %230 : vector<16xf32> to vector<16x1xf32>
    %232 = tpu.reciprocal %231 {approx = true} : vector<16x1xf32> -> vector<16x1xf32>
    %233 = vector.broadcast %232 : vector<16x1xf32> to vector<16x16xf32>
    %234 = arith.mulf %229, %233 : vector<16x16xf32>
    %235 = arith.truncf %234 : vector<16x16xf32> to vector<16x16xbf16>
    %cst_62 = arith.constant dense<0.000000e+00> : vector<16x32xf32>
    %236 = tpu.matmul %235, %221, %cst_62 {dimension_numbers = #tpu.dot_dimension_numbers<[1], [0], [0], [1], [0, 0, 1, 1], [], []>} : vector<16x16xbf16>, vector<16x32xbf16>, vector<16x32xf32> -> vector<16x32xf32>
    %237 = arith.truncf %236 : vector<16x32xf32> to vector<16x32xbf16>
    %238 = vector.extract_strided_slice %21 {offsets = [96, 0], sizes = [32, 128], strides = [1, 1]} : vector<128x128xbf16> to vector<32x128xbf16>
    %cst_63 = arith.constant dense<0.000000e+00> : vector<16x128xf32>
    %239 = tpu.matmul %237, %238, %cst_63 {dimension_numbers = #tpu.dot_dimension_numbers<[1], [0], [0], [1], [0, 0, 1, 1], [], []>} : vector<16x32xbf16>, vector<32x128xbf16>, vector<16x128xf32> -> vector<16x128xf32>
    %240 = arith.addf %213, %239 : vector<16x128xf32>
    %c16 = arith.constant 16 : index
    %c0_64 = arith.constant 0 : index
    %241 = vector.load %arg15[%c16, %c0_64] : memref<32x128xf32, #tpu.memory_space<vmem>>, vector<16x128xf32>
    tpu.vector_store %arg15[%c16, %c0_64], %240 {strides = array<i32>} : memref<32x128xf32, #tpu.memory_space<vmem>>, vector<16x128xf32>,
    %c0_65 = arith.constant 0 : index
    %c0_66 = arith.constant 0 : index
    %242 = vector.load %arg15[%c0_65, %c0_66] : memref<32x128xf32, #tpu.memory_space<vmem>>, vector<32x128xf32>
    %243 = vector.broadcast %6 : vector<1x128xf32> to vector<32x128xf32>
    %244 = arith.addf %242, %243 : vector<32x128xf32>
    %245 = arith.addf %244, %13 : vector<32x128xf32>
    %cst_67 = arith.constant dense<0.000000e+00> : vector<32xf32>
    %246 = vector.multi_reduction <add>, %245, %cst_67 [1] : vector<32x128xf32> to vector<32xf32>
    %247 = vector.shape_cast %246 : vector<32xf32> to vector<32x1xf32>
    %cst_68 = arith.constant 1.280000e+02 : f32
    %248 = vector.broadcast %cst_68 : f32 to vector<32x1xf32>
    %249 = arith.divf %247, %248 : vector<32x1xf32>
    %250 = vector.broadcast %249 : vector<32x1xf32> to vector<32x128xf32>
    %251 = arith.subf %245, %250 : vector<32x128xf32>
    %252 = arith.mulf %251, %251 : vector<32x128xf32>
    %cst_69 = arith.constant dense<0.000000e+00> : vector<32xf32>
    %253 = vector.multi_reduction <add>, %252, %cst_69 [1] : vector<32x128xf32> to vector<32xf32>
    %254 = vector.shape_cast %253 : vector<32xf32> to vector<32x1xf32>
    %cst_70 = arith.constant 1.280000e+02 : f32
    %255 = vector.broadcast %cst_70 : f32 to vector<32x1xf32>
    %256 = arith.divf %254, %255 : vector<32x1xf32>
    %cst_71 = arith.constant 9.99999996E-13 : f32
    %257 = vector.broadcast %cst_71 : f32 to vector<32x1xf32>
    %258 = arith.addf %256, %257 : vector<32x1xf32>
    %259 = math.rsqrt %258 : vector<32x1xf32>
    %260 = vector.broadcast %259 : vector<32x1xf32> to vector<32x128xf32>
    %261 = arith.mulf %251, %260 : vector<32x128xf32>
    %262 = vector.broadcast %7 : vector<1x128xf32> to vector<32x128xf32>
    %263 = arith.mulf %261, %262 : vector<32x128xf32>
    %264 = vector.broadcast %8 : vector<1x128xf32> to vector<32x128xf32>
    %265 = arith.addf %263, %264 : vector<32x128xf32>
    %266 = arith.truncf %265 : vector<32x128xf32> to vector<32x128xbf16>
    %c0_72 = arith.constant 0 : index
    %c0_73 = arith.constant 0 : index
    %c0_74 = arith.constant 0 : index
    %267 = vector.load %arg6[%c0_72, %c0_73, %c0_74] : memref<1x128x256xbf16, #tpu.memory_space<vmem>>, vector<1x128x256xbf16>
    %268 = vector.shape_cast %267 : vector<1x128x256xbf16> to vector<128x256xbf16>
    %cst_75 = arith.constant dense<0.000000e+00> : vector<32x256xf32>
    %269 = tpu.matmul %266, %268, %cst_75 {dimension_numbers = #tpu.dot_dimension_numbers<[1], [0], [0], [1], [0, 0, 1, 1], [], []>} : vector<32x128xbf16>, vector<128x256xbf16>, vector<32x256xf32> -> vector<32x256xf32>
    %270 = vector.broadcast %9 : vector<1x256xf32> to vector<32x256xf32>
    %271 = arith.addf %269, %270 : vector<32x256xf32>
    %cst_76 = arith.constant 5.000000e-01 : f32
    %272 = vector.broadcast %cst_76 : f32 to vector<32x256xf32>
    %273 = arith.mulf %272, %271 : vector<32x256xf32>
    %cst_77 = arith.constant 4.471500e-02 : f32
    %274 = vector.broadcast %cst_77 : f32 to vector<32x256xf32>
    %275 = arith.mulf %274, %271 : vector<32x256xf32>
    %276 = arith.mulf %275, %271 : vector<32x256xf32>
    %277 = arith.mulf %276, %271 : vector<32x256xf32>
    %278 = arith.addf %271, %277 : vector<32x256xf32>
    %cst_78 = arith.constant 0.797884583 : f32
    %279 = vector.broadcast %cst_78 : f32 to vector<32x256xf32>
    %280 = arith.mulf %279, %278 : vector<32x256xf32>
    %281 = math.tanh %280 : vector<32x256xf32>
    %cst_79 = arith.constant 1.000000e+00 : f32
    %282 = vector.broadcast %cst_79 : f32 to vector<32x256xf32>
    %283 = arith.addf %282, %281 : vector<32x256xf32>
    %284 = arith.mulf %273, %283 : vector<32x256xf32>
    %285 = arith.truncf %284 : vector<32x256xf32> to vector<32x256xbf16>
    %c0_80 = arith.constant 0 : index
    %c0_81 = arith.constant 0 : index
    %c0_82 = arith.constant 0 : index
    %286 = vector.load %arg7[%c0_80, %c0_81, %c0_82] : memref<1x256x128xbf16, #tpu.memory_space<vmem>>, vector<1x256x128xbf16>
    %287 = vector.shape_cast %286 : vector<1x256x128xbf16> to vector<256x128xbf16>
    %cst_83 = arith.constant dense<0.000000e+00> : vector<32x128xf32>
    %288 = tpu.matmul %285, %287, %cst_83 {dimension_numbers = #tpu.dot_dimension_numbers<[1], [0], [0], [1], [0, 0, 1, 1], [], []>} : vector<32x256xbf16>, vector<256x128xbf16>, vector<32x128xf32> -> vector<32x128xf32>
    %289 = vector.broadcast %10 : vector<1x128xf32> to vector<32x128xf32>
    %290 = arith.addf %288, %289 : vector<32x128xf32>
    %291 = arith.addf %290, %265 : vector<32x128xf32>
    %cst_84 = arith.constant dense<0.000000e+00> : vector<32xf32>
    %292 = vector.multi_reduction <add>, %291, %cst_84 [1] : vector<32x128xf32> to vector<32xf32>
    %293 = vector.shape_cast %292 : vector<32xf32> to vector<32x1xf32>
    %cst_85 = arith.constant 1.280000e+02 : f32
    %294 = vector.broadcast %cst_85 : f32 to vector<32x1xf32>
    %295 = arith.divf %293, %294 : vector<32x1xf32>
    %296 = vector.broadcast %295 : vector<32x1xf32> to vector<32x128xf32>
    %297 = arith.subf %291, %296 : vector<32x128xf32>
    %298 = arith.mulf %297, %297 : vector<32x128xf32>
    %cst_86 = arith.constant dense<0.000000e+00> : vector<32xf32>
    %299 = vector.multi_reduction <add>, %298, %cst_86 [1] : vector<32x128xf32> to vector<32xf32>
    %300 = vector.shape_cast %299 : vector<32xf32> to vector<32x1xf32>
    %cst_87 = arith.constant 1.280000e+02 : f32
    %301 = vector.broadcast %cst_87 : f32 to vector<32x1xf32>
    %302 = arith.divf %300, %301 : vector<32x1xf32>
    %cst_88 = arith.constant 9.99999996E-13 : f32
    %303 = vector.broadcast %cst_88 : f32 to vector<32x1xf32>
    %304 = arith.addf %302, %303 : vector<32x1xf32>
    %305 = math.rsqrt %304 : vector<32x1xf32>
    %306 = vector.broadcast %305 : vector<32x1xf32> to vector<32x128xf32>
    %307 = arith.mulf %297, %306 : vector<32x128xf32>
    %308 = vector.broadcast %11 : vector<1x128xf32> to vector<32x128xf32>
    %309 = arith.mulf %307, %308 : vector<32x128xf32>
    %310 = vector.broadcast %12 : vector<1x128xf32> to vector<32x128xf32>
    %311 = arith.addf %309, %310 : vector<32x128xf32>
    %c0_89 = arith.constant 0 : index
    %c0_90 = arith.constant 0 : index
    %312 = vector.load %arg14[%c0_89, %c0_90] : memref<32x128xf32, #tpu.memory_space<vmem>>, vector<32x128xf32>
    tpu.vector_store %arg14[%c0_89, %c0_90], %311 {strides = array<i32>} : memref<32x128xf32, #tpu.memory_space<vmem>>, vector<32x128xf32>,
    %c1_i32 = arith.constant 1 : i32
    %313 = arith.cmpi eq, %arg0, %c1_i32 : i32
    %314 = arith.extui %313 : i1 to i32
    %c0_i32_91 = arith.constant 0 : i32
    %315 = arith.cmpi ne, %314, %c0_i32_91 : i32
    scf.if %315 {
      %316 = vector.extract_strided_slice %311 {offsets = [0, 0], sizes = [1, 128], strides = [1, 1]} : vector<32x128xf32> to vector<1x128xf32>
      %c0_92 = arith.constant 0 : index
      %c0_93 = arith.constant 0 : index
      %317 = vector.load %arg16[%c0_92, %c0_93] : memref<2x2048xf32, #tpu.memory_space<vmem>>, vector<1x128xf32>
      tpu.vector_store %arg16[%c0_92, %c0_93], %316 {strides = array<i32>} : memref<2x2048xf32, #tpu.memory_space<vmem>>, vector<1x128xf32>,
      %318 = vector.extract_strided_slice %311 {offsets = [1, 0], sizes = [1, 128], strides = [1, 1]} : vector<32x128xf32> to vector<1x128xf32>
      %c0_94 = arith.constant 0 : index
      %c128 = arith.constant 128 : index
      %319 = vector.load %arg16[%c0_94, %c128] : memref<2x2048xf32, #tpu.memory_space<vmem>>, vector<1x128xf32>
      tpu.vector_store %arg16[%c0_94, %c128], %318 {strides = array<i32>} : memref<2x2048xf32, #tpu.memory_space<vmem>>, vector<1x128xf32>,
      %320 = vector.extract_strided_slice %311 {offsets = [2, 0], sizes = [1, 128], strides = [1, 1]} : vector<32x128xf32> to vector<1x128xf32>
      %c0_95 = arith.constant 0 : index
      %c256 = arith.constant 256 : index
      %321 = vector.load %arg16[%c0_95, %c256] : memref<2x2048xf32, #tpu.memory_space<vmem>>, vector<1x128xf32>
      tpu.vector_store %arg16[%c0_95, %c256], %320 {strides = array<i32>} : memref<2x2048xf32, #tpu.memory_space<vmem>>, vector<1x128xf32>,
      %322 = vector.extract_strided_slice %311 {offsets = [3, 0], sizes = [1, 128], strides = [1, 1]} : vector<32x128xf32> to vector<1x128xf32>
      %c0_96 = arith.constant 0 : index
      %c384 = arith.constant 384 : index
      %323 = vector.load %arg16[%c0_96, %c384] : memref<2x2048xf32, #tpu.memory_space<vmem>>, vector<1x128xf32>
      tpu.vector_store %arg16[%c0_96, %c384], %322 {strides = array<i32>} : memref<2x2048xf32, #tpu.memory_space<vmem>>, vector<1x128xf32>,
      %324 = vector.extract_strided_slice %311 {offsets = [4, 0], sizes = [1, 128], strides = [1, 1]} : vector<32x128xf32> to vector<1x128xf32>
      %c0_97 = arith.constant 0 : index
      %c512 = arith.constant 512 : index
      %325 = vector.load %arg16[%c0_97, %c512] : memref<2x2048xf32, #tpu.memory_space<vmem>>, vector<1x128xf32>
      tpu.vector_store %arg16[%c0_97, %c512], %324 {strides = array<i32>} : memref<2x2048xf32, #tpu.memory_space<vmem>>, vector<1x128xf32>,
      %326 = vector.extract_strided_slice %311 {offsets = [5, 0], sizes = [1, 128], strides = [1, 1]} : vector<32x128xf32> to vector<1x128xf32>
      %c0_98 = arith.constant 0 : index
      %c640 = arith.constant 640 : index
      %327 = vector.load %arg16[%c0_98, %c640] : memref<2x2048xf32, #tpu.memory_space<vmem>>, vector<1x128xf32>
      tpu.vector_store %arg16[%c0_98, %c640], %326 {strides = array<i32>} : memref<2x2048xf32, #tpu.memory_space<vmem>>, vector<1x128xf32>,
      %328 = vector.extract_strided_slice %311 {offsets = [6, 0], sizes = [1, 128], strides = [1, 1]} : vector<32x128xf32> to vector<1x128xf32>
      %c0_99 = arith.constant 0 : index
      %c768 = arith.constant 768 : index
      %329 = vector.load %arg16[%c0_99, %c768] : memref<2x2048xf32, #tpu.memory_space<vmem>>, vector<1x128xf32>
      tpu.vector_store %arg16[%c0_99, %c768], %328 {strides = array<i32>} : memref<2x2048xf32, #tpu.memory_space<vmem>>, vector<1x128xf32>,
      %330 = vector.extract_strided_slice %311 {offsets = [7, 0], sizes = [1, 128], strides = [1, 1]} : vector<32x128xf32> to vector<1x128xf32>
      %c0_100 = arith.constant 0 : index
      %c896 = arith.constant 896 : index
      %331 = vector.load %arg16[%c0_100, %c896] : memref<2x2048xf32, #tpu.memory_space<vmem>>, vector<1x128xf32>
      tpu.vector_store %arg16[%c0_100, %c896], %330 {strides = array<i32>} : memref<2x2048xf32, #tpu.memory_space<vmem>>, vector<1x128xf32>,
      %332 = vector.extract_strided_slice %311 {offsets = [8, 0], sizes = [1, 128], strides = [1, 1]} : vector<32x128xf32> to vector<1x128xf32>
      %c0_101 = arith.constant 0 : index
      %c1024 = arith.constant 1024 : index
      %333 = vector.load %arg16[%c0_101, %c1024] : memref<2x2048xf32, #tpu.memory_space<vmem>>, vector<1x128xf32>
      tpu.vector_store %arg16[%c0_101, %c1024], %332 {strides = array<i32>} : memref<2x2048xf32, #tpu.memory_space<vmem>>, vector<1x128xf32>,
      %334 = vector.extract_strided_slice %311 {offsets = [9, 0], sizes = [1, 128], strides = [1, 1]} : vector<32x128xf32> to vector<1x128xf32>
      %c0_102 = arith.constant 0 : index
      %c1152 = arith.constant 1152 : index
      %335 = vector.load %arg16[%c0_102, %c1152] : memref<2x2048xf32, #tpu.memory_space<vmem>>, vector<1x128xf32>
      tpu.vector_store %arg16[%c0_102, %c1152], %334 {strides = array<i32>} : memref<2x2048xf32, #tpu.memory_space<vmem>>, vector<1x128xf32>,
      %336 = vector.extract_strided_slice %311 {offsets = [10, 0], sizes = [1, 128], strides = [1, 1]} : vector<32x128xf32> to vector<1x128xf32>
      %c0_103 = arith.constant 0 : index
      %c1280 = arith.constant 1280 : index
      %337 = vector.load %arg16[%c0_103, %c1280] : memref<2x2048xf32, #tpu.memory_space<vmem>>, vector<1x128xf32>
      tpu.vector_store %arg16[%c0_103, %c1280], %336 {strides = array<i32>} : memref<2x2048xf32, #tpu.memory_space<vmem>>, vector<1x128xf32>,
      %338 = vector.extract_strided_slice %311 {offsets = [11, 0], sizes = [1, 128], strides = [1, 1]} : vector<32x128xf32> to vector<1x128xf32>
      %c0_104 = arith.constant 0 : index
      %c1408 = arith.constant 1408 : index
      %339 = vector.load %arg16[%c0_104, %c1408] : memref<2x2048xf32, #tpu.memory_space<vmem>>, vector<1x128xf32>
      tpu.vector_store %arg16[%c0_104, %c1408], %338 {strides = array<i32>} : memref<2x2048xf32, #tpu.memory_space<vmem>>, vector<1x128xf32>,
      %340 = vector.extract_strided_slice %311 {offsets = [12, 0], sizes = [1, 128], strides = [1, 1]} : vector<32x128xf32> to vector<1x128xf32>
      %c0_105 = arith.constant 0 : index
      %c1536 = arith.constant 1536 : index
      %341 = vector.load %arg16[%c0_105, %c1536] : memref<2x2048xf32, #tpu.memory_space<vmem>>, vector<1x128xf32>
      tpu.vector_store %arg16[%c0_105, %c1536], %340 {strides = array<i32>} : memref<2x2048xf32, #tpu.memory_space<vmem>>, vector<1x128xf32>,
      %342 = vector.extract_strided_slice %311 {offsets = [13, 0], sizes = [1, 128], strides = [1, 1]} : vector<32x128xf32> to vector<1x128xf32>
      %c0_106 = arith.constant 0 : index
      %c1664 = arith.constant 1664 : index
      %343 = vector.load %arg16[%c0_106, %c1664] : memref<2x2048xf32, #tpu.memory_space<vmem>>, vector<1x128xf32>
      tpu.vector_store %arg16[%c0_106, %c1664], %342 {strides = array<i32>} : memref<2x2048xf32, #tpu.memory_space<vmem>>, vector<1x128xf32>,
      %344 = vector.extract_strided_slice %311 {offsets = [14, 0], sizes = [1, 128], strides = [1, 1]} : vector<32x128xf32> to vector<1x128xf32>
      %c0_107 = arith.constant 0 : index
      %c1792 = arith.constant 1792 : index
      %345 = vector.load %arg16[%c0_107, %c1792] : memref<2x2048xf32, #tpu.memory_space<vmem>>, vector<1x128xf32>
      tpu.vector_store %arg16[%c0_107, %c1792], %344 {strides = array<i32>} : memref<2x2048xf32, #tpu.memory_space<vmem>>, vector<1x128xf32>,
      %346 = vector.extract_strided_slice %311 {offsets = [15, 0], sizes = [1, 128], strides = [1, 1]} : vector<32x128xf32> to vector<1x128xf32>
      %c0_108 = arith.constant 0 : index
      %c1920 = arith.constant 1920 : index
      %347 = vector.load %arg16[%c0_108, %c1920] : memref<2x2048xf32, #tpu.memory_space<vmem>>, vector<1x128xf32>
      tpu.vector_store %arg16[%c0_108, %c1920], %346 {strides = array<i32>} : memref<2x2048xf32, #tpu.memory_space<vmem>>, vector<1x128xf32>,
      %348 = vector.extract_strided_slice %311 {offsets = [16, 0], sizes = [1, 128], strides = [1, 1]} : vector<32x128xf32> to vector<1x128xf32>
      %c1_109 = arith.constant 1 : index
      %c0_110 = arith.constant 0 : index
      %349 = vector.load %arg16[%c1_109, %c0_110] : memref<2x2048xf32, #tpu.memory_space<vmem>>, vector<1x128xf32>
      tpu.vector_store %arg16[%c1_109, %c0_110], %348 {strides = array<i32>} : memref<2x2048xf32, #tpu.memory_space<vmem>>, vector<1x128xf32>,
      %350 = vector.extract_strided_slice %311 {offsets = [17, 0], sizes = [1, 128], strides = [1, 1]} : vector<32x128xf32> to vector<1x128xf32>
      %c1_111 = arith.constant 1 : index
      %c128_112 = arith.constant 128 : index
      %351 = vector.load %arg16[%c1_111, %c128_112] : memref<2x2048xf32, #tpu.memory_space<vmem>>, vector<1x128xf32>
      tpu.vector_store %arg16[%c1_111, %c128_112], %350 {strides = array<i32>} : memref<2x2048xf32, #tpu.memory_space<vmem>>, vector<1x128xf32>,
      %352 = vector.extract_strided_slice %311 {offsets = [18, 0], sizes = [1, 128], strides = [1, 1]} : vector<32x128xf32> to vector<1x128xf32>
      %c1_113 = arith.constant 1 : index
      %c256_114 = arith.constant 256 : index
      %353 = vector.load %arg16[%c1_113, %c256_114] : memref<2x2048xf32, #tpu.memory_space<vmem>>, vector<1x128xf32>
      tpu.vector_store %arg16[%c1_113, %c256_114], %352 {strides = array<i32>} : memref<2x2048xf32, #tpu.memory_space<vmem>>, vector<1x128xf32>,
      %354 = vector.extract_strided_slice %311 {offsets = [19, 0], sizes = [1, 128], strides = [1, 1]} : vector<32x128xf32> to vector<1x128xf32>
      %c1_115 = arith.constant 1 : index
      %c384_116 = arith.constant 384 : index
      %355 = vector.load %arg16[%c1_115, %c384_116] : memref<2x2048xf32, #tpu.memory_space<vmem>>, vector<1x128xf32>
      tpu.vector_store %arg16[%c1_115, %c384_116], %354 {strides = array<i32>} : memref<2x2048xf32, #tpu.memory_space<vmem>>, vector<1x128xf32>,
      %356 = vector.extract_strided_slice %311 {offsets = [20, 0], sizes = [1, 128], strides = [1, 1]} : vector<32x128xf32> to vector<1x128xf32>
      %c1_117 = arith.constant 1 : index
      %c512_118 = arith.constant 512 : index
      %357 = vector.load %arg16[%c1_117, %c512_118] : memref<2x2048xf32, #tpu.memory_space<vmem>>, vector<1x128xf32>
      tpu.vector_store %arg16[%c1_117, %c512_118], %356 {strides = array<i32>} : memref<2x2048xf32, #tpu.memory_space<vmem>>, vector<1x128xf32>,
      %358 = vector.extract_strided_slice %311 {offsets = [21, 0], sizes = [1, 128], strides = [1, 1]} : vector<32x128xf32> to vector<1x128xf32>
      %c1_119 = arith.constant 1 : index
      %c640_120 = arith.constant 640 : index
      %359 = vector.load %arg16[%c1_119, %c640_120] : memref<2x2048xf32, #tpu.memory_space<vmem>>, vector<1x128xf32>
      tpu.vector_store %arg16[%c1_119, %c640_120], %358 {strides = array<i32>} : memref<2x2048xf32, #tpu.memory_space<vmem>>, vector<1x128xf32>,
      %360 = vector.extract_strided_slice %311 {offsets = [22, 0], sizes = [1, 128], strides = [1, 1]} : vector<32x128xf32> to vector<1x128xf32>
      %c1_121 = arith.constant 1 : index
      %c768_122 = arith.constant 768 : index
      %361 = vector.load %arg16[%c1_121, %c768_122] : memref<2x2048xf32, #tpu.memory_space<vmem>>, vector<1x128xf32>
      tpu.vector_store %arg16[%c1_121, %c768_122], %360 {strides = array<i32>} : memref<2x2048xf32, #tpu.memory_space<vmem>>, vector<1x128xf32>,
      %362 = vector.extract_strided_slice %311 {offsets = [23, 0], sizes = [1, 128], strides = [1, 1]} : vector<32x128xf32> to vector<1x128xf32>
      %c1_123 = arith.constant 1 : index
      %c896_124 = arith.constant 896 : index
      %363 = vector.load %arg16[%c1_123, %c896_124] : memref<2x2048xf32, #tpu.memory_space<vmem>>, vector<1x128xf32>
      tpu.vector_store %arg16[%c1_123, %c896_124], %362 {strides = array<i32>} : memref<2x2048xf32, #tpu.memory_space<vmem>>, vector<1x128xf32>,
      %364 = vector.extract_strided_slice %311 {offsets = [24, 0], sizes = [1, 128], strides = [1, 1]} : vector<32x128xf32> to vector<1x128xf32>
      %c1_125 = arith.constant 1 : index
      %c1024_126 = arith.constant 1024 : index
      %365 = vector.load %arg16[%c1_125, %c1024_126] : memref<2x2048xf32, #tpu.memory_space<vmem>>, vector<1x128xf32>
      tpu.vector_store %arg16[%c1_125, %c1024_126], %364 {strides = array<i32>} : memref<2x2048xf32, #tpu.memory_space<vmem>>, vector<1x128xf32>,
      %366 = vector.extract_strided_slice %311 {offsets = [25, 0], sizes = [1, 128], strides = [1, 1]} : vector<32x128xf32> to vector<1x128xf32>
      %c1_127 = arith.constant 1 : index
      %c1152_128 = arith.constant 1152 : index
      %367 = vector.load %arg16[%c1_127, %c1152_128] : memref<2x2048xf32, #tpu.memory_space<vmem>>, vector<1x128xf32>
      tpu.vector_store %arg16[%c1_127, %c1152_128], %366 {strides = array<i32>} : memref<2x2048xf32, #tpu.memory_space<vmem>>, vector<1x128xf32>,
      %368 = vector.extract_strided_slice %311 {offsets = [26, 0], sizes = [1, 128], strides = [1, 1]} : vector<32x128xf32> to vector<1x128xf32>
      %c1_129 = arith.constant 1 : index
      %c1280_130 = arith.constant 1280 : index
      %369 = vector.load %arg16[%c1_129, %c1280_130] : memref<2x2048xf32, #tpu.memory_space<vmem>>, vector<1x128xf32>
      tpu.vector_store %arg16[%c1_129, %c1280_130], %368 {strides = array<i32>} : memref<2x2048xf32, #tpu.memory_space<vmem>>, vector<1x128xf32>,
      %370 = vector.extract_strided_slice %311 {offsets = [27, 0], sizes = [1, 128], strides = [1, 1]} : vector<32x128xf32> to vector<1x128xf32>
      %c1_131 = arith.constant 1 : index
      %c1408_132 = arith.constant 1408 : index
      %371 = vector.load %arg16[%c1_131, %c1408_132] : memref<2x2048xf32, #tpu.memory_space<vmem>>, vector<1x128xf32>
      tpu.vector_store %arg16[%c1_131, %c1408_132], %370 {strides = array<i32>} : memref<2x2048xf32, #tpu.memory_space<vmem>>, vector<1x128xf32>,
      %372 = vector.extract_strided_slice %311 {offsets = [28, 0], sizes = [1, 128], strides = [1, 1]} : vector<32x128xf32> to vector<1x128xf32>
      %c1_133 = arith.constant 1 : index
      %c1536_134 = arith.constant 1536 : index
      %373 = vector.load %arg16[%c1_133, %c1536_134] : memref<2x2048xf32, #tpu.memory_space<vmem>>, vector<1x128xf32>
      tpu.vector_store %arg16[%c1_133, %c1536_134], %372 {strides = array<i32>} : memref<2x2048xf32, #tpu.memory_space<vmem>>, vector<1x128xf32>,
      %374 = vector.extract_strided_slice %311 {offsets = [29, 0], sizes = [1, 128], strides = [1, 1]} : vector<32x128xf32> to vector<1x128xf32>
      %c1_135 = arith.constant 1 : index
      %c1664_136 = arith.constant 1664 : index
      %375 = vector.load %arg16[%c1_135, %c1664_136] : memref<2x2048xf32, #tpu.memory_space<vmem>>, vector<1x128xf32>
      tpu.vector_store %arg16[%c1_135, %c1664_136], %374 {strides = array<i32>} : memref<2x2048xf32, #tpu.memory_space<vmem>>, vector<1x128xf32>,
      %376 = vector.extract_strided_slice %311 {offsets = [30, 0], sizes = [1, 128], strides = [1, 1]} : vector<32x128xf32> to vector<1x128xf32>
      %c1_137 = arith.constant 1 : index
      %c1792_138 = arith.constant 1792 : index
      %377 = vector.load %arg16[%c1_137, %c1792_138] : memref<2x2048xf32, #tpu.memory_space<vmem>>, vector<1x128xf32>
      tpu.vector_store %arg16[%c1_137, %c1792_138], %376 {strides = array<i32>} : memref<2x2048xf32, #tpu.memory_space<vmem>>, vector<1x128xf32>,
      %378 = vector.extract_strided_slice %311 {offsets = [31, 0], sizes = [1, 128], strides = [1, 1]} : vector<32x128xf32> to vector<1x128xf32>
      %c1_139 = arith.constant 1 : index
      %c1920_140 = arith.constant 1920 : index
      %379 = vector.load %arg16[%c1_139, %c1920_140] : memref<2x2048xf32, #tpu.memory_space<vmem>>, vector<1x128xf32>
      tpu.vector_store %arg16[%c1_139, %c1920_140], %378 {strides = array<i32>} : memref<2x2048xf32, #tpu.memory_space<vmem>>, vector<1x128xf32>,
      %c0_141 = arith.constant 0 : index
      %c0_142 = arith.constant 0 : index
      %380 = vector.load %arg16[%c0_141, %c0_142] : memref<2x2048xf32, #tpu.memory_space<vmem>>, vector<2x2048xf32>
      %381 = arith.truncf %380 : vector<2x2048xf32> to vector<2x2048xbf16>
      %c0_143 = arith.constant 0 : index
      %c0_144 = arith.constant 0 : index
      %382 = vector.load %arg9[%c0_143, %c0_144] : memref<2048x256xbf16, #tpu.memory_space<vmem>>, vector<2048x256xbf16>
      %cst_145 = arith.constant dense<0.000000e+00> : vector<2x256xf32>
      %383 = tpu.matmul %381, %382, %cst_145 {dimension_numbers = #tpu.dot_dimension_numbers<[1], [0], [0], [1], [0, 0, 1, 1], [], []>} : vector<2x2048xbf16>, vector<2048x256xbf16>, vector<2x256xf32> -> vector<2x256xf32>
      %c0_146 = arith.constant 0 : index
      %c0_147 = arith.constant 0 : index
      %384 = vector.load %arg10[%c0_146, %c0_147] : memref<1x256xf32, #tpu.memory_space<vmem>>, vector<1x256xf32>
      %385 = vector.broadcast %384 : vector<1x256xf32> to vector<2x256xf32>
      %386 = arith.addf %383, %385 : vector<2x256xf32>
      %c0_148 = arith.constant 0 : index
      %c0_149 = arith.constant 0 : index
      %387 = vector.load %arg11[%c0_148, %c0_149] : memref<1x256xf32, #tpu.memory_space<vmem>>, vector<1x256xf32>
      %388 = vector.broadcast %387 : vector<1x256xf32> to vector<2x256xf32>
      %389 = arith.mulf %386, %388 : vector<2x256xf32>
      %cst_150 = arith.constant dense<0.000000e+00> : vector<2xf32>
      %390 = vector.multi_reduction <add>, %389, %cst_150 [1] : vector<2x256xf32> to vector<2xf32>
      %391 = vector.shape_cast %390 : vector<2xf32> to vector<2x1xf32>
      %c0_151 = arith.constant 0 : index
      %c0_152 = arith.constant 0 : index
      %392 = vector.load %arg12[%c0_151, %c0_152] : memref<1x1xf32, #tpu.memory_space<vmem>>, vector<1x1xf32>
      %393 = vector.broadcast %392 : vector<1x1xf32> to vector<2x1xf32>
      %394 = arith.addf %391, %393 : vector<2x1xf32>
      %cst_153 = arith.constant dense<0xFF800000> : vector<1xf32>
      %395 = vector.multi_reduction <maximumf>, %394, %cst_153 [0] : vector<2x1xf32> to vector<1xf32>
      %396 = vector.shape_cast %395 : vector<1xf32> to vector<1x1xf32>
      %397 = vector.broadcast %396 : vector<1x1xf32> to vector<2x1xf32>
      %398 = arith.subf %394, %397 : vector<2x1xf32>
      %399 = math.exp %398 : vector<2x1xf32>
      %cst_154 = arith.constant dense<0.000000e+00> : vector<1xf32>
      %400 = vector.multi_reduction <add>, %399, %cst_154 [0] : vector<2x1xf32> to vector<1xf32>
      %401 = vector.shape_cast %400 : vector<1xf32> to vector<1x1xf32>
      %402 = tpu.reciprocal %401 {approx = true} : vector<1x1xf32> -> vector<1x1xf32>
      %403 = vector.broadcast %402 : vector<1x1xf32> to vector<2x1xf32>
      %404 = arith.mulf %399, %403 : vector<2x1xf32>
      %c0_155 = arith.constant 0 : index
      %c0_156 = arith.constant 0 : index
      %405 = vector.load %arg13[%c0_155, %c0_156] : memref<2x1xf32, #tpu.memory_space<vmem>>, vector<2x1xf32>
      tpu.vector_store %arg13[%c0_155, %c0_156], %404 {strides = array<i32>} : memref<2x1xf32, #tpu.memory_space<vmem>>, vector<2x1xf32>,
    } else {
    }
    return
  }
  func.func @transform_0(%arg0: i32) -> (i32, i32) {
    %c0_i32 = arith.constant 0 : i32
    %c0_i32_0 = arith.constant 0 : i32
    %c0_i32_1 = arith.constant 0 : i32
    return %c0_i32, %c0_i32_0 : i32, i32
  }
  func.func @transform_1(%arg0: i32) -> (i32, i32) {
    %c0_i32 = arith.constant 0 : i32
    %c0_i32_0 = arith.constant 0 : i32
    %c0_i32_1 = arith.constant 0 : i32
    return %c0_i32, %c0_i32_0 : i32, i32
  }
  func.func @transform_2(%arg0: i32) -> (i32, i32) {
    %c0_i32 = arith.constant 0 : i32
    %c0_i32_0 = arith.constant 0 : i32
    %c0_i32_1 = arith.constant 0 : i32
    return %c0_i32, %c0_i32_0 : i32, i32
  }
  func.func @transform_3(%arg0: i32) -> (i32, i32, i32) {
    %c0_i32 = arith.constant 0 : i32
    %c0_i32_0 = arith.constant 0 : i32
    %c0_i32_1 = arith.constant 0 : i32
    return %arg0, %c0_i32, %c0_i32_0 : i32, i32, i32
  }
  func.func @transform_4(%arg0: i32) -> (i32, i32, i32) {
    %c0_i32 = arith.constant 0 : i32
    %c0_i32_0 = arith.constant 0 : i32
    %c0_i32_1 = arith.constant 0 : i32
    return %arg0, %c0_i32, %c0_i32_0 : i32, i32, i32
  }
  func.func @transform_5(%arg0: i32) -> (i32, i32, i32) {
    %c0_i32 = arith.constant 0 : i32
    %c0_i32_0 = arith.constant 0 : i32
    %c0_i32_1 = arith.constant 0 : i32
    return %arg0, %c0_i32, %c0_i32_0 : i32, i32, i32
  }
  func.func @transform_6(%arg0: i32) -> (i32, i32, i32) {
    %c0_i32 = arith.constant 0 : i32
    %c0_i32_0 = arith.constant 0 : i32
    %c0_i32_1 = arith.constant 0 : i32
    return %arg0, %c0_i32, %c0_i32_0 : i32, i32, i32
  }
  func.func @transform_7(%arg0: i32) -> (i32, i32, i32) {
    %c0_i32 = arith.constant 0 : i32
    %c0_i32_0 = arith.constant 0 : i32
    %c0_i32_1 = arith.constant 0 : i32
    return %arg0, %c0_i32, %c0_i32_0 : i32, i32, i32
  }
  func.func @transform_8(%arg0: i32) -> (i32, i32) {
    %c0_i32 = arith.constant 0 : i32
    %c0_i32_0 = arith.constant 0 : i32
    %c0_i32_1 = arith.constant 0 : i32
    return %c0_i32, %c0_i32_0 : i32, i32
  }
  func.func @transform_9(%arg0: i32) -> (i32, i32) {
    %c0_i32 = arith.constant 0 : i32
    %c0_i32_0 = arith.constant 0 : i32
    %c0_i32_1 = arith.constant 0 : i32
    return %c0_i32, %c0_i32_0 : i32, i32
  }
  func.func @transform_10(%arg0: i32) -> (i32, i32) {
    %c0_i32 = arith.constant 0 : i32
    %c0_i32_0 = arith.constant 0 : i32
    %c0_i32_1 = arith.constant 0 : i32
    return %c0_i32, %c0_i32_0 : i32, i32
  }
  func.func @transform_11(%arg0: i32) -> (i32, i32) {
    %c0_i32 = arith.constant 0 : i32
    %c0_i32_0 = arith.constant 0 : i32
    %c0_i32_1 = arith.constant 0 : i32
    return %c0_i32, %c0_i32_0 : i32, i32
  }
  func.func @transform_12(%arg0: i32) -> (i32, i32) {
    %c0_i32 = arith.constant 0 : i32
    %c0_i32_0 = arith.constant 0 : i32
    %c0_i32_1 = arith.constant 0 : i32
    return %c0_i32, %c0_i32_0 : i32, i32
  }
}

</mosaic_0001>

<bundles_post_ra>
// kernel: bert_forward.1
= control target key start
LH: loop header
LB: loop body
LE: loop exit
PB: predicated region body
PF: predicated region fallthrough
CT: control target
= control target key end

     0   :  { %s8327_s0 = inlined_call_operand.hbm [shape: f32[32,128], index: 0, kind: input, shape index: {}]   ;;  %s8328_s1 = inlined_call_operand.hbm [shape: f32[2,16], index: 1, kind: input, shape index: {}]   ;;  %s8329_s2 = inlined_call_operand.hbm [shape: f32[2,128], index: 2, kind: input, shape index: {}]   ;;  %s8330_s3 = inlined_call_operand.hbm [shape: bf16[2,128,384], index: 3, kind: input, shape index: {}]   ;;  %s8331_s4 = inlined_call_operand.hbm [shape: bf16[2,128,128], index: 4, kind: input, shape index: {}]   ;;  %s8332_s5 = inlined_call_operand.hbm [shape: bf16[2,128,256], index: 5, kind: input, shape index: {}]   ;;  %s8333_s6 = inlined_call_operand.hbm [shape: bf16[2,256,128], index: 6, kind: input, shape index: {}]   ;;  %s8334_s7 = inlined_call_operand.hbm [shape: f32[2,8,384], index: 7, kind: input, shape index: {}]   ;;  %s8335_s8 = inlined_call_operand.hbm [shape: bf16[2048,256], index: 8, kind: input, shape index: {}]   ;;  %s8336_s9 = inlined_call_operand.hbm [shape: f32[1,256], index: 9, kind: input, shape index: {}]   ;;  %s8337_s10 = inlined_call_operand.hbm [shape: f32[1,256], index: 10, kind: input, shape index: {}]   ;;  %s8338_s11 = inlined_call_operand.<no memory space> [shape: f32[1,1], index: 11, kind: input, shape index: {}]   ;;  %s8339_s12 = inlined_call_operand.hbm [shape: f32[2,1], index: 12, kind: output, shape index: {}]  }
   0x1   :  { %8368 = sst [smem:[#allocation40_spill]] %s8328_s1  ;;  %v17_v0 = vstv %s8338_s11 }
   0x2   :  { %8369 = sst [smem:[#allocation41_spill]] %s8330_s3  ;;  %18 = vst [vmem:[#allocation5] sm:$0x1] %v17_v0 }
   0x3   :  { %8370 = sst [smem:[#allocation42_spill]] %s8332_s5 }
   0x4   :  { %8371 = sst [smem:[#allocation43_spill]] %s8335_s8 }
   0x5   :  { %8372 = sst [smem:[#allocation44_spill]] %s8336_s9 }
   0x6   :  { %8373 = sst [smem:[#allocation45_spill]] %s8339_s12 }
   0x7   :  { %19 = vsyncpa [#allocation7], 0 }
   0x8   :  { %20 = vsyncpa [#allocation10], 0 }
   0x9   :  { %21 = vsyncpa [#allocation13], 0 }
   0xa   :  { %23 = vsyncpa [#allocation13 + $0x1], 0 }
   0xb   :  { %24 = vsyncpa [#allocation16], 0 }
   0xc   :  { %26 = vsyncpa [#allocation16 + $0x1], 0 }
   0xd   :  { %27 = vsyncpa [#allocation19], 0 }
   0xe   :  { %29 = vsyncpa [#allocation19 + $0x1], 0 }
   0xf   :  { %30 = vsyncpa [#allocation22], 0 }
  0x10   :  { %31 = vsyncpa [#allocation8], 0  ;;  %s7332_s23 = smov 0   ;;  %s7334_s24 = smov 0  }
  0x11   :  { %s7336_s25 = smov 0   ;;  %s7338_s26 = smov 0  }
  0x12 LB: > { %8374 = sst [smem:[#allocation33_spill]] %s7229_s24  ;;  %s7239_s11 = smov [#allocation9]   ;;  %s7237_s26 = sphi %s7338_s26, %s8421_s26   ;;  %s7233_s25 = sphi %s7336_s25, %s8424_s25   ;;  %s7229_s24 = sphi %s7334_s24, %s8423_s24   ;;  %s7225_s23 = sphi %s7332_s23, %s8422_s23  }
  0x13   : > { %8375 = sst [smem:[#allocation34_spill]] %s7233_s25  ;;  %s366_s27 = sshll.u32 %s7239_s11, 4  ;;  %s367_s27 = int_to_ptr.vmem [resolvable:$true] %s366_s27 }
  0x14   : > { %s7353_s28 = sadd.s32 4294967295, %s7237_s26   ;;  %p5395_p0 = scmp.ge.s32.totalorder %s7237_s26, 1 }
  0x15   : > { %8376 = sst [smem:[#allocation35_spill]] %s7353_s28  ;;  %p8340_p1 = scmp.eq.s32.totalorder %s7353_s28, 0 }
  0x16   : > { %p340_p2 = scmp.lt.s32.totalorder %s7237_s26, 3  ;;  %s7240_s30 = smov [#allocation20]  }
  0x17   : > { %s387_s13 = sshll.u32 %s7240_s30, 4  ;;  %s7241_s15 = smov [#allocation21]   ;;  %s7371_s13 = int_to_ptr.vmem [resolvable:$true] %s387_s13 }
  0x18   : > { %p7359_p4 = pnand %p5395_p0, %p340_p2  ;;  %s401_s16 = sshll.u32 %s7241_s15, 4  ;;  %s7373_s16 = int_to_ptr.vmem [resolvable:$true] %s401_s16 }
  0x19   : > { %s8380_s1 = sld [smem:[#allocation40_spill]] }
  0x1a   : > { %s8377_s29 = scalar_select %p7359_p4, 1, 0 }
  0x1b   : > { %p6148_p5 = pneg %p7359_p4 }
  0x1c   : > { %8378 = sst [smem:[#allocation36_spill]] %s8377_s29 }
  0x1d   : > { %p7367_p6 = pnand %p6148_p5, %p8340_p1 }
  0x1f   : > { %s8379_s14 = scalar_select %p7367_p6, 1, 0 }
  0x20   : > { %s6831_s19 = scalar_lea.hbm %s8380_s1, 32  ;;  %p7383_p8 = pneg %p7367_p6 }
  0x21   : > { %p6832_p7 = scmp.ne.s32.totalorder %s8380_s1, %s6831_s19  ;;  %p6838_p11 = scmp.lt.u32.totalorder %s6831_s19, %s8380_s1 }
  0x22   : > { %s8381_s22 = scalar_select %p7383_p8, 1, 0 }
  0x23   : > { %p6834_p9 = pnand %p7383_p8, %p6832_p7 }
  0x25   : > { %p6835_p10 = pneg %p6834_p9 }
  0x27   : > { %p6840_p12 = pnand %p6838_p11, %p6835_p10 }
  0x29   : > { %6843 = shalt.err (!%p6840_p12)
}
  0x2a   : > { %s6844_s15 = scalar_lea.vmem %s367_s27, 32  ;;  %p6852_p5 = scmp.lt.s32.totalorder %s367_s27, %s367_s27 }
  0x2b   : > { %p6845_p13 = scmp.ne.s32.totalorder %s367_s27, %s6844_s15  ;;  %p6853_p3 = scmp.lt.s32.totalorder %s6844_s15, %s6844_s15 }
  0x2d   : > { %p6847_p0 = pnand %p6845_p13, %p7383_p8  ;;  %p6854_p1 = por %p6853_p3, %p6852_p5 }
  0x2f   : > { %p6848_p2 = pneg %p6847_p0 }
  0x31   : > { %p6855_p4 = pnand %p6854_p1, %p6848_p2 }
  0x33   : > { %6858 = shalt.err (!%p6855_p4)
}
  0x34   : > { %6154 = dma.hbm_to_vmem [thread:$0]  (!%p7367_p6), %s8380_s1, 32, %s367_s27, [#allocation10]  }
  0x35   : > { %s8382_s8 = sld [smem:[#allocation43_spill]] }
  0x3b   : > { %s6859_s21 = scalar_lea.hbm %s8382_s8, 32768 }
  0x3c   : > { %p6860_p7 = scmp.ne.s32.totalorder %s8382_s8, %s6859_s21  ;;  %p6866_p1 = scmp.lt.u32.totalorder %s6859_s21, %s8382_s8 }
  0x3e   : > { %p6862_p9 = pnand %p6860_p7, %p7383_p8 }
  0x40   : > { %p6863_p3 = pneg %p6862_p9 }
  0x42   : > { %p6868_p4 = pnand %p6866_p1, %p6863_p3 }
  0x44   : > { %6871 = shalt.err (!%p6868_p4)
}
  0x45   : > { %s6872_s27 = scalar_lea.vmem %s7371_s13, 32768  ;;  %p6880_p13 = scmp.lt.s32.totalorder %s7371_s13, %s7371_s13 }
  0x46   : > { %p6873_p10 = scmp.ne.s32.totalorder %s7371_s13, %s6872_s27  ;;  %p6881_p0 = scmp.lt.s32.totalorder %s6872_s27, %s6872_s27 }
  0x48   : > { %p6875_p11 = pnand %p6873_p10, %p7383_p8  ;;  %p6882_p2 = por %p6881_p0, %p6880_p13 }
  0x4a   : > { %p6876_p12 = pneg %p6875_p11 }
  0x4c   : > { %p6883_p5 = pnand %p6882_p2, %p6876_p12 }
  0x4e   : > { %6886 = shalt.err (!%p6883_p5)
}
  0x4f   : > { %s8343_s17 = smov 128   ;;  %s8345_s12 = smov 8  }
  0x50   : > { %6160 = dma.hbm_to_vmem [thread:$0]  (!%p7367_p6), %s8382_s8, 32768, %s7371_s13, [#allocation19], %s8343_s17, %s8343_s17, %s8345_s12  }
  0x51   : > { %s8383_s9 = sld [smem:[#allocation44_spill]] }
  0x57   : > { %s6887_s11 = scalar_lea.hbm %s8383_s9, 32 }
  0x58   : > { %p6888_p7 = scmp.ne.s32.totalorder %s8383_s9, %s6887_s11  ;;  %p6894_p1 = scmp.lt.u32.totalorder %s6887_s11, %s8383_s9 }
  0x5a   : > { %p6890_p9 = pnand %p6888_p7, %p7383_p8 }
  0x5c   : > { %p6891_p3 = pneg %p6890_p9 }
  0x5e   : > { %p6896_p4 = pnand %p6894_p1, %p6891_p3 }
  0x60   : > { %6899 = shalt.err (!%p6896_p4)
}
  0x61   : > { %s6900_s13 = scalar_lea.vmem %s7373_s16, 32  ;;  %p6908_p13 = scmp.lt.s32.totalorder %s7373_s16, %s7373_s16 }
  0x62   : > { %p6901_p10 = scmp.ne.s32.totalorder %s7373_s16, %s6900_s13  ;;  %p6909_p0 = scmp.lt.s32.totalorder %s6900_s13, %s6900_s13 }
  0x64   : > { %p6903_p11 = pnand %p6901_p10, %p7383_p8  ;;  %p6910_p2 = por %p6909_p0, %p6908_p13 }
  0x66   : > { %p6904_p12 = pneg %p6903_p11 }
  0x68   : > { %p6911_p5 = pnand %p6910_p2, %p6904_p12 }
  0x6a   : > { %6914 = shalt.err (!%p6911_p5)
}
  0x6b   : > { %6163 = dma.hbm_to_vmem [thread:$0]  (!%p7367_p6), %s8383_s9, 32, %s7373_s16, [#allocation22]  }
  0x6c   : > { %s7449_s19 = sadd.s32 1, %s7237_s26   ;;  %s107_s21 = sadd.s32 1, %s7233_s25 }
  0x6d   : > { %8384 = sst [smem:[#allocation37_spill]] %s7449_s19  ;;  %s104_s20 = ssub.s32 %s7237_s26, %s7449_s19 }
  0x6e   : > { %p105_p7 = scmp.eq.s32.totalorder %s104_s20, 0  ;;  %p114_p9 = scmp.ne.s32.totalorder %s7233_s25, %s7229_s24 }
  0x6f   : > { %p115_p3 = scmp.eq.s32.totalorder %s7237_s26, 0  ;;  %p120_p1 = scmp.ne.s32.totalorder %s7229_s24, %s7225_s23 }
  0x70   : > { %s7460_s11 = scalar_select %p105_p7, %s7233_s25, %s107_s21  }
  0x71   : > { %p116_p4 = por %p115_p3, %p114_p9  ;;  %p8386_p10 = scmp.eq.s32.totalorder %s7353_s28, 0 }
  0x72   : > { %8385 = sst [smem:[#allocation38_spill]] %s7460_s11  ;;  %p6189_p12 = scmp.lt.s32.totalorder %s7237_s26, 2 }
  0x73   : > { %p7464_p11 = por %p8386_p10, %p120_p1  ;;  %s7470_s16 = sand.u32 1, %s7237_s26  }
  0x74   : > { %s7473_s15 = sand.u32 1, %s7233_s25   ;;  %p7476_p13 = pnand %p6189_p12, %p116_p4 }
  0x75   : > { %s8387_s30 = scalar_select %p7464_p11, 1, 0 }
  0x76   : > { %s6104_s27 = smul.u32 192, %s7473_s15  ;;  %s8390_s3 = sld [smem:[#allocation41_spill]] }
  0x77   : > { %8388 = sst [smem:[#allocation39_spill]] %s8387_s30  ;;  %s6105_s23 = smul.u32 3072, %s7237_s26 }
  0x78   : > { %s8389_s13 = scalar_select %p7476_p13, 1, 0 }
  0x79   : > { %s430_s21 = scalar_lea.vmem [#allocation12], %s6104_s27  ;;  %p7493_p2 = pneg %p7476_p13 }
  0x7a   : > { %s437_s17 = sshll.u32 %s430_s21, 4  ;;  %s7486_s17 = int_to_ptr.vmem [resolvable:$true] %s437_s17 }
  0x7b   : > { %s8391_s9 = scalar_select %p7493_p2, 1, 0 }
  0x7c   : > { %s7484_s20 = scalar_lea.hbm %s8390_s3, %s6105_s23  ;;  %s6920_s18 = scalar_lea.hbm %s8390_s3, 6144 }
  0x7d   : > { %s6915_s8 = scalar_lea.hbm %s7484_s20, 3072  ;;  %p6921_p9 = scmp.lt.u32.totalorder %s7484_s20, %s8390_s3 }
  0x7e   : > { %p6916_p0 = scmp.ne.s32.totalorder %s7484_s20, %s6915_s8  ;;  %p6922_p3 = scmp.lt.u32.totalorder %s6920_s18, %s6915_s8 }
  0x7f   : > { %p6924_p4 = scmp.lt.u32.totalorder %s6915_s8, %s7484_s20 }
  0x80   : > { %p6918_p5 = pnand %p7493_p2, %p6916_p0  ;;  %p6923_p1 = por %p6922_p3, %p6921_p9 }
  0x82   : > { %p6919_p7 = pneg %p6918_p5  ;;  %p6925_p10 = por %p6924_p4, %p6923_p1 }
  0x84   : > { %p6926_p12 = pnand %p6925_p10, %p6919_p7 }
  0x86   : > { %6929 = shalt.err (!%p6926_p12)
}
  0x87   : > { %s6930_s12 = scalar_lea.vmem %s7486_s17, 3072  ;;  %s7244_s23 = smov [#allocation12]  }
  0x88   : > { %p6931_p0 = scmp.ne.s32.totalorder %s7486_s17, %s6930_s12  ;;  %s6935_s1 = sshll.u32 %s7244_s23, 4  ;;  %s6936_s1 = int_to_ptr.vmem [resolvable:$false] %s6935_s1 }
  0x89   : > { %s6937_s27 = scalar_lea.vmem %s6936_s1, 6144  ;;  %p6938_p6 = scmp.lt.s32.totalorder %s7486_s17, %s6936_s1 }
  0x8a   : > { %p6933_p5 = pnand %p6931_p0, %p7493_p2  ;;  %p6939_p8 = scmp.lt.s32.totalorder %s6937_s27, %s6930_s12 }
  0x8c   : > { %p6934_p11 = pneg %p6933_p5  ;;  %p6940_p9 = por %p6939_p8, %p6938_p6 }
  0x8e   : > { %p6941_p3 = pnand %p6940_p9, %p6934_p11 }
  0x90   : > { %6944 = shalt.err (!%p6941_p3)
}
  0x91   : > { %s7245_s8 = smov 192   ;;  %s7246_s18 = smov 12  }
  0x92   : > { %s8392_s21 = scalar_lea.sflag [#allocation13], %s7470_s16  ;;  %s5407_s23 = sshll.u32 %s7473_s15, 7 }
  0x93   : > { %6170 = dma.hbm_to_vmem [thread:$0]  (!%p7476_p13), %s7484_s20, 3072, %s7486_s17, %s8392_s21, %s7245_s8, %s7245_s8, %s7246_s18  }
  0x94   : > { %s5800_s12 = sshll.u32 %s7237_s26, 11  ;;  %s8393_s5 = sld [smem:[#allocation42_spill]] }
  0x95   : > { %s472_s11 = scalar_lea.vmem [#allocation15], %s5407_s23  ;;  %s8362_s19 = scalar_lea.sflag [#allocation16], %s7470_s16 }
  0x96   : > { %s479_s25 = sshll.u32 %s472_s11, 4  ;;  %s7529_s25 = int_to_ptr.vmem [resolvable:$true] %s479_s25 }
  0x9a   : > { %s7525_s3 = scalar_lea.hbm %s8393_s5, %s5800_s12  ;;  %s6950_s8 = scalar_lea.hbm %s8393_s5, 4096 }
  0x9b   : > { %s6945_s30 = scalar_lea.hbm %s7525_s3, 2048  ;;  %p6951_p7 = scmp.lt.u32.totalorder %s7525_s3, %s8393_s5 }
  0x9c   : > { %p6946_p6 = scmp.ne.s32.totalorder %s7525_s3, %s6945_s30  ;;  %p6952_p1 = scmp.lt.u32.totalorder %s6950_s8, %s6945_s30 }
  0x9d   : > { %p6954_p10 = scmp.lt.u32.totalorder %s6945_s30, %s7525_s3 }
  0x9e   : > { %p6948_p8 = pnand %p6946_p6, %p7493_p2  ;;  %p6953_p4 = por %p6952_p1, %p6951_p7 }
  0xa0   : > { %p6949_p11 = pneg %p6948_p8  ;;  %p6955_p12 = por %p6954_p10, %p6953_p4 }
  0xa2   : > { %p6956_p0 = pnand %p6955_p12, %p6949_p11 }
  0xa4   : > { %6959 = shalt.err (!%p6956_p0)
}
  0xa5   : > { %s6960_s11 = scalar_lea.vmem %s7529_s25, 2048  ;;  %s7247_s1 = smov [#allocation15]  }
  0xa6   : > { %p6961_p5 = scmp.ne.s32.totalorder %s7529_s25, %s6960_s11  ;;  %s6965_s27 = sshll.u32 %s7247_s1, 4  ;;  %s6966_s27 = int_to_ptr.vmem [resolvable:$false] %s6965_s27 }
  0xa7   : > { %s6967_s17 = scalar_lea.vmem %s6966_s27, 4096  ;;  %p6968_p6 = scmp.lt.s32.totalorder %s7529_s25, %s6966_s27 }
  0xa8   : > { %p6963_p9 = pnand %p6961_p5, %p7493_p2  ;;  %p6969_p8 = scmp.lt.s32.totalorder %s6967_s17, %s6960_s11 }
  0xaa   : > { %p6964_p3 = pneg %p6963_p9  ;;  %p6970_p7 = por %p6969_p8, %p6968_p6 }
  0xac   : > { %p6971_p1 = pnand %p6970_p7, %p6964_p3 }
  0xae   : > { %6974 = shalt.err (!%p6971_p1)
}
  0xaf   : > { %s8394_s30 = smov 8   ;;  %s8395_s20 = smov 128  }
  0xb0   : > { %6176 = dma.hbm_to_vmem [thread:$0]  (!%p7476_p13), %s7525_s3, 2048, %s7529_s25, %s8362_s19, %s8395_s20, %s8395_s20, %s8394_s30  }
  0xb1   : > { %s7563_s21 = scalar_lea.hbm %s8333_s6, %s5800_s12  ;;  %s493_s11 = scalar_lea.vmem [#allocation17], %s5407_s23 }
  0xb2   : > { %s500_s1 = sshll.u32 %s493_s11, 4  ;;  %s7248_s27 = smov [#allocation6]   ;;  %s7567_s1 = int_to_ptr.vmem [resolvable:$true] %s500_s1 }
  0xb3   : > { %s352_s17 = sshll.u32 %s7248_s27, 4  ;;  %s7249_s5 = smov [#allocation11]   ;;  %s353_s17 = int_to_ptr.vmem [resolvable:$true] %s352_s17 }
  0xb4   : > { %s377_s24 = sshll.u32 %s7249_s5, 4  ;;  %s6975_s3 = scalar_lea.hbm %s8327_s0, 512  ;;  %s378_s24 = int_to_ptr.vmem [resolvable:$true] %s377_s24 }
  0xb5   : > { %p6976_p11 = scmp.ne.s32.totalorder %s8327_s0, %s6975_s3  ;;  %p8396_p4 = scmp.ne.s32.totalorder %s8381_s22, 0 }
  0xb6   : > { %p6982_p0 = scmp.lt.u32.totalorder %s6975_s3, %s8327_s0 }
  0xb7   : > { %p6978_p10 = pnand %p6976_p11, %p8396_p4 }
  0xb9   : > { %p6979_p12 = pneg %p6978_p10 }
  0xbb   : > { %p6984_p5 = pnand %p6982_p0, %p6979_p12 }
  0xbd   : > { %6987 = shalt.err (!%p6984_p5)
}
  0xbe   : > { %s6988_s8 = scalar_lea.vmem %s353_s17, 512  ;;  %p6996_p8 = scmp.lt.s32.totalorder %s353_s17, %s353_s17 }
  0xbf   : > { %p6989_p9 = scmp.ne.s32.totalorder %s353_s17, %s6988_s8  ;;  %p6997_p7 = scmp.lt.s32.totalorder %s6988_s8, %s6988_s8 }
  0xc1   : > { %p6991_p3 = pnand %p6989_p9, %p8396_p4  ;;  %p6998_p1 = por %p6997_p7, %p6996_p8 }
  0xc3   : > { %p6992_p6 = pneg %p6991_p3 }
  0xc5   : > { %p6999_p13 = pnand %p6998_p1, %p6992_p6 }
  0xc7   : > { %7002 = shalt.err (!%p6999_p13)
}
  0xc8   : > { %p8397_p11 = scmp.ne.s32.totalorder %s8379_s14, 0  ;;  %s7003_s18 = scalar_lea.hbm %s8329_s2, 32 }
  0xc9   : > { %p7004_p10 = scmp.ne.s32.totalorder %s8329_s2, %s7003_s18  ;;  %p7010_p0 = scmp.lt.u32.totalorder %s7003_s18, %s8329_s2 }
  0xca   : > { %6151 = dma.hbm_to_vmem [thread:$0]  (!%p8397_p11), %s8327_s0, 512, %s353_s17, [#allocation7], %s8395_s20, %s8395_s20, %s8394_s30  }
  0xcb   : > { %p7006_p13 = pnand %p7004_p10, %p8396_p4 }
  0xcd   : > { %p7007_p12 = pneg %p7006_p13 }
  0xcf   : > { %p7012_p5 = pnand %p7010_p0, %p7007_p12 }
  0xd1   : > { %7015 = shalt.err (!%p7012_p5)
}
  0xd2   : > { %s7016_s23 = scalar_lea.vmem %s378_s24, 32  ;;  %p7024_p8 = scmp.lt.s32.totalorder %s378_s24, %s378_s24 }
  0xd3   : > { %p7017_p9 = scmp.ne.s32.totalorder %s378_s24, %s7016_s23  ;;  %p7025_p7 = scmp.lt.s32.totalorder %s7016_s23, %s7016_s23 }
  0xd5   : > { %p7019_p3 = pnand %p7017_p9, %p8396_p4  ;;  %p7026_p1 = por %p7025_p7, %p7024_p8 }
  0xd7   : > { %p7020_p6 = pneg %p7019_p3 }
  0xd9   : > { %p7027_p2 = pnand %p7026_p1, %p7020_p6 }
  0xdb   : > { %7030 = shalt.err (!%p7027_p2)
}
  0xdc   : > { %6157 = dma.hbm_to_vmem [thread:$0]  (!%p8397_p11), %s8329_s2, 32, %s378_s24, [#allocation10]  }
  0xdd   : > { %s7250_s17 = smov [#allocation23]   ;;  %s5404_s8 = sshll.u32 %s7473_s15, 6 }
  0xde   : > { %s412_s12 = sshll.u32 %s7250_s17, 4  ;;  %s7031_s29 = scalar_lea.hbm %s8337_s10, 32  ;;  %s413_s12 = int_to_ptr.vmem [resolvable:$true] %s412_s12 }
  0xdf   : > { %p7032_p2 = scmp.ne.s32.totalorder %s8337_s10, %s7031_s29  ;;  %p7038_p12 = scmp.lt.u32.totalorder %s7031_s29, %s8337_s10 }
  0xe1   : > { %p7034_p10 = pnand %p7032_p2, %p8396_p4 }
  0xe3   : > { %p7035_p13 = pneg %p7034_p10 }
  0xe5   : > { %p7040_p0 = pnand %p7038_p12, %p7035_p13 }
  0xe7   : > { %7043 = shalt.err (!%p7040_p0)
}
  0xe8   : > { %s7044_s24 = scalar_lea.vmem %s413_s12, 32  ;;  %p7052_p6 = scmp.lt.s32.totalorder %s413_s12, %s413_s12 }
  0xe9   : > { %p7045_p5 = scmp.ne.s32.totalorder %s413_s12, %s7044_s24  ;;  %p7053_p8 = scmp.lt.s32.totalorder %s7044_s24, %s7044_s24 }
  0xeb   : > { %p7047_p9 = pnand %p7045_p5, %p8396_p4  ;;  %p7054_p7 = por %p7053_p8, %p7052_p6 }
  0xed   : > { %p7048_p3 = pneg %p7047_p9 }
  0xef   : > { %p7055_p1 = pnand %p7054_p7, %p7048_p3 }
  0xf1   : > { %7058 = shalt.err (!%p7055_p1)
}
  0xf2   : > { %6166 = dma.hbm_to_vmem [thread:$0]  (!%p8397_p11), %s8337_s10, 32, %s413_s12, [#allocation22]  }
  0xf3   : > { %s5799_s23 = sshll.u32 %s7237_s26, 10  ;;  %s451_s30 = scalar_lea.vmem [#allocation14], %s5404_s8 }
  0xf4   : > { %s458_s20 = sshll.u32 %s451_s30, 4  ;;  %s7631_s5 = scalar_lea.hbm %s8331_s4, %s5799_s23  ;;  %s7633_s20 = int_to_ptr.vmem [resolvable:$true] %s458_s20 }
  0xf5   : > { %s7059_s14 = scalar_lea.hbm %s7631_s5, 1024  ;;  %p8398_p2 = scmp.ne.s32.totalorder %s8391_s9, 0 }
  0xf6   : > { %p7060_p4 = scmp.ne.s32.totalorder %s7631_s5, %s7059_s14  ;;  %s7064_s8 = scalar_lea.hbm %s8331_s4, 2048 }
  0xf7   : > { %p7065_p11 = scmp.lt.u32.totalorder %s7631_s5, %s8331_s4  ;;  %p7066_p12 = scmp.lt.u32.totalorder %s7064_s8, %s7059_s14 }
  0xf8   : > { %p7062_p10 = pnand %p7060_p4, %p8398_p2  ;;  %p7068_p5 = scmp.lt.u32.totalorder %s7059_s14, %s7631_s5 }
  0xf9   : > { %p7067_p0 = por %p7066_p12, %p7065_p11 }
  0xfa   : > { %p7063_p13 = pneg %p7062_p10 }
  0xfb   : > { %p7069_p9 = por %p7068_p5, %p7067_p0 }
  0xfd   : > { %p7070_p3 = pnand %p7069_p9, %p7063_p13 }
  0xff   : > { %7073 = shalt.err (!%p7070_p3)
}
 0x100   : > { %s7074_s18 = scalar_lea.vmem %s7633_s20, 1024  ;;  %s7251_s11 = smov [#allocation14]  }
 0x101   : > { %p7075_p6 = scmp.ne.s32.totalorder %s7633_s20, %s7074_s18  ;;  %s7079_s27 = sshll.u32 %s7251_s11, 4  ;;  %s7080_s27 = int_to_ptr.vmem [resolvable:$false] %s7079_s27 }
 0x102   : > { %s7081_s24 = scalar_lea.vmem %s7080_s27, 2048  ;;  %p7082_p1 = scmp.lt.s32.totalorder %s7633_s20, %s7080_s27 }
 0x103   : > { %p7077_p8 = pnand %p7075_p6, %p8398_p2  ;;  %p7083_p4 = scmp.lt.s32.totalorder %s7081_s24, %s7074_s18 }
 0x105   : > { %p7078_p7 = pneg %p7077_p8  ;;  %p7084_p10 = por %p7083_p4, %p7082_p1 }
 0x107   : > { %p7085_p11 = pnand %p7084_p10, %p7078_p7 }
 0x109   : > { %7088 = shalt.err (!%p7085_p11)
}
 0x10a   : > { %s7252_s3 = smov 64   ;;  %s7253_s25 = smov 4  }
 0x10b   : > { %p8399_p13 = scmp.ne.s32.totalorder %s8389_s13, 0  ;;  %s8400_s23 = scalar_lea.sflag [#allocation13], %s7470_s16 }
 0x10c   : > { %s7089_s30 = scalar_lea.hbm %s7563_s21, 2048  ;;  %s7094_s14 = scalar_lea.hbm %s8333_s6, 4096 }
 0x10d   : > { %6173 = dma.hbm_to_vmem [thread:$0]  (!%p8399_p13), %s7631_s5, 1024, %s7633_s20, %s8400_s23, %s7252_s3, %s7252_s3, %s7253_s25  }
 0x10e   : > { %p7090_p12 = scmp.ne.s32.totalorder %s7563_s21, %s7089_s30  ;;  %p7095_p9 = scmp.lt.u32.totalorder %s7563_s21, %s8333_s6 }
 0x10f   : > { %p7096_p3 = scmp.lt.u32.totalorder %s7094_s14, %s7089_s30  ;;  %p7098_p8 = scmp.lt.u32.totalorder %s7089_s30, %s7563_s21 }
 0x110   : > { %p7092_p0 = pnand %p7090_p12, %p8398_p2 }
 0x111   : > { %p7097_p6 = por %p7096_p3, %p7095_p9 }
 0x112   : > { %p7093_p5 = pneg %p7092_p0 }
 0x113   : > { %p7099_p7 = por %p7098_p8, %p7097_p6 }
 0x115   : > { %p7100_p1 = pnand %p7099_p7, %p7093_p5 }
 0x117   : > { %7103 = shalt.err (!%p7100_p1)
}
 0x118   : > { %s7104_s20 = scalar_lea.vmem %s7567_s1, 2048  ;;  %s7254_s5 = smov [#allocation17]  }
 0x119   : > { %p7105_p4 = scmp.ne.s32.totalorder %s7567_s1, %s7104_s20  ;;  %s7109_s8 = sshll.u32 %s7254_s5, 4  ;;  %s7110_s8 = int_to_ptr.vmem [resolvable:$false] %s7109_s8 }
 0x11a   : > { %s7111_s29 = scalar_lea.vmem %s7110_s8, 4096  ;;  %p7112_p12 = scmp.lt.s32.totalorder %s7567_s1, %s7110_s8 }
 0x11b   : > { %p7107_p10 = pnand %p7105_p4, %p8398_p2  ;;  %p7113_p0 = scmp.lt.s32.totalorder %s7111_s29, %s7104_s20 }
 0x11d   : > { %p7108_p11 = pneg %p7107_p10  ;;  %p7114_p9 = por %p7113_p0, %p7112_p12 }
 0x11f   : > { %p7115_p3 = pnand %p7114_p9, %p7108_p11 }
 0x121   : > { %7118 = shalt.err (!%p7115_p3)
}
 0x122   : > { %s8401_s19 = scalar_lea.sflag [#allocation16], %s7470_s16  ;;  %s6106_s18 = smul.u32 24, %s7473_s15 }
 0x123   : > { %6179 = dma.hbm_to_vmem [thread:$0]  (!%p8399_p13), %s7563_s21, 2048, %s7567_s1, %s8401_s19, %s7252_s3, %s7252_s3, %s7253_s25  }
 0x124   : > { %s6107_s11 = smul.u32 384, %s7237_s26  ;;  %s514_s30 = scalar_lea.vmem [#allocation18], %s6106_s18 }
 0x125   : > { %s522_s17 = sshll.u32 %s514_s30, 4  ;;  %s511_s22 = scalar_lea.sflag [#allocation19], %s7470_s16  ;;  %s523_s17 = int_to_ptr.vmem [resolvable:$true] %s522_s17 }
 0x126   : > { %s7692_s23 = scalar_lea.hbm %s8334_s7, %s6107_s11  ;;  %s7124_s21 = scalar_lea.hbm %s8334_s7, 768 }
 0x127   : > { %s7119_s14 = scalar_lea.hbm %s7692_s23, 384  ;;  %p7125_p7 = scmp.lt.u32.totalorder %s7692_s23, %s8334_s7 }
 0x128   : > { %p7120_p5 = scmp.ne.s32.totalorder %s7692_s23, %s7119_s14  ;;  %p7126_p1 = scmp.lt.u32.totalorder %s7124_s21, %s7119_s14 }
 0x129   : > { %p7128_p10 = scmp.lt.u32.totalorder %s7119_s14, %s7692_s23 }
 0x12a   : > { %p7122_p6 = pnand %p7120_p5, %p8398_p2  ;;  %p7127_p4 = por %p7126_p1, %p7125_p7 }
 0x12c   : > { %p7123_p8 = pneg %p7122_p6  ;;  %p7129_p11 = por %p7128_p10, %p7127_p4 }
 0x12e   : > { %p7130_p12 = pnand %p7129_p11, %p7123_p8 }
 0x130   : > { %7133 = shalt.err (!%p7130_p12)
}
 0x131   : > { %s7134_s16 = scalar_lea.vmem %s523_s17, 384  ;;  %s7255_s25 = smov [#allocation18]  }
 0x132   : > { %p7135_p0 = scmp.ne.s32.totalorder %s523_s17, %s7134_s16  ;;  %s7139_s12 = sshll.u32 %s7255_s25, 4  ;;  %s7140_s12 = int_to_ptr.vmem [resolvable:$false] %s7139_s12 }
 0x133   : > { %s7141_s28 = scalar_lea.vmem %s7140_s12, 768  ;;  %p7142_p5 = scmp.lt.s32.totalorder %s523_s17, %s7140_s12 }
 0x134   : > { %p7137_p9 = pnand %p7135_p0, %p8398_p2  ;;  %p7143_p6 = scmp.lt.s32.totalorder %s7141_s28, %s7134_s16 }
 0x136   : > { %p7138_p3 = pneg %p7137_p9  ;;  %p7144_p13 = por %p7143_p6, %p7142_p5 }
 0x138   : > { %p7145_p1 = pnand %p7144_p13, %p7138_p3 }
 0x13a   : > { %7148 = shalt.err (!%p7145_p1)
}
 0x13b   : > { %p8402_p7 = scmp.ne.s32.totalorder %s8389_s13, 0  ;;  %s8403_s20 = sld [smem:[#allocation36_spill]] }
 0x13d   : > { %6182 = dma.hbm_to_vmem [thread:$0]  (!%p8402_p7), %s7692_s23, 384, %s523_s17, %s511_s22  }
 0x141   : > { %p8404_p8 = scmp.ne.s32.totalorder %s8403_s20, 0 }
 0x142   : > { %s8405_s5 = sld [smem:[#allocation35_spill]] (!%p8404_p8) }
 0x143   : > { %531 = sbr.rel (%p8404_p8) target bundleno = 6958 (0x1b2e), region = 68 }
 0x148   : > { %p8406_p4 = scmp.eq.s32.totalorder (!%p8404_p8), %s8405_s5, 0 }
 0x14a   : > { %7192 = dma.done.wait (%p8406_p4), [#allocation7], 512   ;;  %p8407_p2 = pmov %p8406_p4 }
 0x14c   : > { %7194 = vsyncadd (%p8407_p2), [#allocation7], 4294966784  ;;  %p8408_p10 = pmov %p8407_p2 }
 0x14d   : > { %p8409_p11 = pmov %p8407_p2 }
 0x14e   : > { %7196 = dma.done.wait (%p8408_p10), [#allocation10], 64  }
 0x14f   : > { %7198 = vsyncadd (%p8409_p11), [#allocation10], 4294967232  ;;  %s8410_s9 = sld [smem:[#allocation33_spill]]  ;;  %s8411_s13 = sld [smem:[#allocation39_spill]] }
 0x150   : > { %s545_s8 = sand.u32 1, %s8405_s5  }
 0x151   : > { %s546_s18 = scalar_lea.sflag [#allocation13], %s545_s8 }
 0x155   : > { %s547_s29 = sand.u32 1, %s8410_s9   ;;  %p8412_p13 = scmp.ne.s32.totalorder %s8411_s13, 0 }
 0x156   : > { %s6108_s19 = smul.u32 192, %s547_s29 }
 0x158   : > { %s7724_s11 = scalar_lea.vmem [#allocation12], %s6108_s19 }
 0x159   : > { %7200 = dma.done.wait (%p8412_p13), %s546_s18, 4096  }
 0x15a   : > { %7202 = vsyncadd (%p8412_p13), %s546_s18, 4294963200  ;;  %s5418_s27 = sshll.u32 %s547_s29, 6  ;;  %s5419_s24 = sshll.u32 %s547_s29, 7 }
 0x15b   : > { %s7730_s23 = scalar_lea.vmem [#allocation14], %s5418_s27  ;;  %s564_s30 = scalar_lea.sflag [#allocation16], %s545_s8 }
 0x15c   : > { %s7732_s17 = scalar_lea.vmem [#allocation15], %s5419_s24 }
 0x15d   : > { %7204 = dma.done.wait (%p8412_p13), %s564_s30, 4096  }
 0x15e   : > { %7206 = vsyncadd (%p8412_p13), %s564_s30, 4294963200  ;;  %s6109_s22 = smul.u32 24, %s547_s29  ;;  %s7738_s14 = scalar_lea.vmem [#allocation17], %s5419_s24 }
 0x15f   : > { %s582_s15 = scalar_lea.sflag [#allocation19], %s545_s8 }
 0x160   : > { %s7740_s26 = scalar_lea.vmem [#allocation18], %s6109_s22 }
 0x161   : > { %7208 = dma.done.wait (%p8412_p13), %s582_s15, 384  }
 0x162   : > { %7210 = vsyncadd (%p8412_p13), %s582_s15, 4294966912  ;;  %p8413_p12 = pmov %p8407_p2 }
 0x163   : > { %p8414_p0 = pmov %p8407_p2 }
 0x164   : > { %7212 = dma.done.wait (%p8413_p12), [#allocation19], 32768  }
 0x165   : > { %7214 = vsyncadd (%p8414_p0), [#allocation19], 4294934528  ;;  %p8415_p9 = pmov %p8414_p0 }
 0x166   : > { %p8416_p3 = pmov %p8414_p0 }
 0x167   : > { %7216 = dma.done.wait (%p8415_p9), [#allocation22], 64  }
 0x168   : > { %7218 = vsyncadd (%p8416_p3), [#allocation22], 4294967232  ;;  %p8417_p5 = scmp.ne.s32.totalorder %s8405_s5, 0 }
 0x169   : > { %v658_v1 = vld [vmem:[#allocation6] sm:$0xff] (!%p8417_p5)  ;;  %v660_v2 = vld [vmem:[#allocation6 + $0x10] sm:$0xff] (!%p8417_p5)  ;;  %v659_v3 = vld [vmem:[#allocation6 + $0x8] sm:$0xff] (!%p8417_p5) }
 0x16a   : > { %657 = sbr.rel (%p8417_p5) target bundleno = 682 (0x2aa), region = 116  ;;  %664 = vadd.xlane.f32.xlu0 (!%p8417_p5), %v658_v1  ;;  %668 = vadd.xlane.f32.xlu1 (!%p8417_p5), %v660_v2  ;;  %v661_v4 = vld [vmem:[#allocation6 + $0x18] sm:$0xff] (!%p8417_p5)  ;;  %v5425_v34 = vld [vmem:[#allocation11] ss:$0 sm:$0xff] (!%p8417_p5)  ;;  %v5426_v36 = vld [vmem:[#allocation11 + $0x1] ss:$0 sm:$0xff] (!%p8417_p5) }
 0x16e   : > { %666 = vadd.xlane.f32.xlu0 (!%p8417_p5), %v659_v3  ;;  %670 = vadd.xlane.f32.xlu1 (!%p8417_p5), %v661_v4 }
 0x1f7   : > { %v665_v5 = vpop.xlane.xlu0 %664  ;;  %v669_v6 = vpop.xlane.xlu1 %668 }
 0x1f8   : > { %v673_v7 = vmul.f32 0.0078125, %v665_v5  ;;  %v675_v8 = vmul.f32 0.0078125, %v669_v6 }
 0x1fa   : > { %v677_v9 = vsub.f32 %v658_v1, %v673_v7  ;;  %v679_v10 = vsub.f32 %v660_v2, %v675_v8 }
 0x1fb   : > { %v667_v11 = vpop.xlane.xlu0 %666  ;;  %v671_v12 = vpop.xlane.xlu1 %670 }
 0x1fc   : > { %v674_v13 = vmul.f32 0.0078125, %v667_v11  ;;  %v681_v14 = vmul.f32 %v677_v9, %v677_v9  ;;  %v676_v15 = vmul.f32 0.0078125, %v671_v12  ;;  %v683_v18 = vmul.f32 %v679_v10, %v679_v10 }
 0x1fe   : > { %v678_v16 = vsub.f32 %v659_v3, %v674_v13  ;;  %685 = vadd.xlane.f32.xlu0 %v681_v14  ;;  %v680_v17 = vsub.f32 %v661_v4, %v676_v15 }
 0x200   : > { %v682_v19 = vmul.f32 %v678_v16, %v678_v16  ;;  %v684_v20 = vmul.f32 %v680_v17, %v680_v17 }
 0x202   : > { %689 = vadd.xlane.f32.xlu0 %v683_v18  ;;  %687 = vadd.xlane.f32.xlu1 %v682_v19 }
 0x206   : > { %691 = vadd.xlane.f32.xlu1 %v684_v20 }
 0x28b   : > { %v686_v21 = vpop.xlane.xlu0 %685 }
 0x28c   : > { %v693_v22 = vmul.f32 0.0078125, %v686_v21 }
 0x28e   : > { %v697_v23 = vadd.f32 1e-12, %v693_v22 }
 0x28f   : > { %v688_v24 = vpop.xlane.xlu1 %687  ;;  %v690_v25 = vpop.xlane.xlu0 %689 }
 0x290   : > { %6250 = vrsqrt.f32 %v697_v23  ;;  %v694_v26 = vmul.f32 0.0078125, %v688_v24  ;;  %v695_v27 = vmul.f32 0.0078125, %v690_v25 }
 0x292   : > { %v698_v28 = vadd.f32 1e-12, %v694_v26  ;;  %v699_v29 = vadd.f32 1e-12, %v695_v27 }
 0x293   : > { %v692_v30 = vpop.xlane.xlu1 %691 }
 0x294   : > { %6252 = vrsqrt.f32 %v698_v28  ;;  %v696_v31 = vmul.f32 0.0078125, %v692_v30 }
 0x295   : > { %6254 = vrsqrt.f32 %v699_v29 }
 0x296   : > { %v700_v32 = vadd.f32 1e-12, %v696_v31 }
 0x298   : > { %6256 = vrsqrt.f32 %v700_v32 }
 0x29a   : > { %v6251_v33 = vpop.eup %6250 }
 0x29b   : > { %v705_v35 = vmul.f32 %v6251_v33, %v677_v9 }
 0x29d   : > { %v713_v37 = vmul.f32 %v5425_v34, %v705_v35 }
 0x29e   : > { %v6253_v38 = vpop.eup %6252 }
 0x29f   : > { %v6255_v39 = vpop.eup %6254  ;;  %v721_v40 = vadd.f32 %v5426_v36, %v713_v37  ;;  %v706_v41 = vmul.f32 %v6253_v38, %v678_v16 }
 0x2a0   : > { %v707_v42 = vmul.f32 %v6255_v39, %v679_v10 }
 0x2a1   : > { %725 = vst [vmem:[#allocation2] sm:$0xff] %v721_v40  ;;  %v714_v43 = vmul.f32 %v5425_v34, %v706_v41 }
 0x2a2   : > { %v6257_v44 = vpop.eup %6256  ;;  %v715_v45 = vmul.f32 %v5425_v34, %v707_v42 }
 0x2a3   : > { %v722_v46 = vadd.f32 %v5426_v36, %v714_v43  ;;  %v708_v47 = vmul.f32 %v6257_v44, %v680_v17 }
 0x2a4   : > { %v723_v48 = vadd.f32 %v5426_v36, %v715_v45 }
 0x2a5   : > { %726 = vst [vmem:[#allocation2 + $0x8] sm:$0xff] %v722_v46  ;;  %v716_v49 = vmul.f32 %v5425_v34, %v708_v47 }
 0x2a6   : > { %727 = vst [vmem:[#allocation2 + $0x10] sm:$0xff] %v723_v48 }
 0x2a7   : > { %v724_v50 = vadd.f32 %v5426_v36, %v716_v49 }
 0x2a9   : > { %728 = vst [vmem:[#allocation2 + $0x18] sm:$0xff] %v724_v50 }
 0x2aa PF: > { %v6258_v51 = vld [vmem:[%s7724_s11 + $0x4] ss:$12 sps:$4 sm:$0xff]   ;;  %v6260_v52 = vld [vmem:[%s7724_s11] ss:$12 sps:$4 sm:$0xff]   ;;  %v7256_v53 = vmov 0   ;;  %v7257_v18 = vmov 0.0   ;;  %v770_v19 = vlaneseq }
 0x2ab   : > { %942 = vmatprep.mubr.bf16.mxu0 %v7256_v53  ;;  %910 = vmatprep.subr.bf16.mxu0 %v6258_v51  ;;  %v6261_v54 = vld [vmem:[%s7724_s11 + $0x1c] ss:$12 sps:$4 sm:$0xff]   ;;  %v6263_v55 = vld [vmem:[%s7724_s11 + $0x18] ss:$12 sps:$4 sm:$0xff]   ;;  %v6264_v56 = vld [vmem:[%s7724_s11 + $0x34] ss:$12 sps:$4 sm:$0xff]  }
 0x2ac   : > { %911 = vmatpush1.bf16.msra.mxu0 %v6260_v52  ;;  %v6266_v57 = vld [vmem:[%s7724_s11 + $0x30] ss:$12 sps:$4 sm:$0xff]   ;;  %v6267_v58 = vld [vmem:[%s7724_s11 + $0x4c] ss:$12 sps:$4 sm:$0xff]   ;;  %v6269_v59 = vld [vmem:[%s7724_s11 + $0x48] ss:$12 sps:$4 sm:$0xff]  }
 0x2ad   : > { %912 = vmatprep.subr.bf16.mxu0 %v6261_v54  ;;  %v6270_v60 = vld [vmem:[%s7724_s11 + $0x64] ss:$12 sps:$4 sm:$0xff]   ;;  %v732_v61 = vld [vmem:[#allocation2] sm:$0xff]  ;;  %v6282_v0 = vld [vmem:[%s7724_s11 + $0x8] ss:$12 sps:$4 sm:$0xff]   ;;  %vm7258_vm0 = vmmov 0  }
 0x2ae   : > { %v733_v62 = vld [vmem:[#allocation2 + $0x8] sm:$0xff]  ;;  %5896 = vmatprep.subr.bf16.mxu1 %v6282_v0  ;;  %v6285_v7 = vld [vmem:[%s7724_s11 + $0x50] ss:$12 sps:$4 sm:$0xff]   ;;  %v6279_v9 = vld [vmem:[%s7724_s11 + $0xac] ss:$12 sps:$4 sm:$0xff]   ;;  %v7788_v20 = vshrl.u32 %v770_v19, 7 }
 0x2af   : > { %v736_v63 = vpack.c.bf16 %v733_v62, %v732_v61  ;;  %v6283_v1 = vld [vmem:[%s7724_s11 + $0x20] ss:$12 sps:$4 sm:$0xff]   ;;  %v6273_v3 = vld [vmem:[%s7724_s11 + $0x7c] ss:$12 sps:$4 sm:$0xff]   ;;  %5897 = vmatpush3.bf16.msra.mxu1 %v6282_v0  ;;  %v6284_v4 = vld [vmem:[%s7724_s11 + $0x38] ss:$12 sps:$4 sm:$0xff]  }
 0x2b0   : > { %913 = vmatpush1.bf16.msra.mxu0 %v6263_v55  ;;  %v6272_v2 = vld [vmem:[%s7724_s11 + $0x60] ss:$12 sps:$4 sm:$0xff]   ;;  %5898 = vmatprep.subr.bf16.mxu1 %v6283_v1  ;;  %v6275_v5 = vld [vmem:[%s7724_s11 + $0x78] ss:$12 sps:$4 sm:$0xff]   ;;  %v6278_v8 = vld [vmem:[%s7724_s11 + $0x90] ss:$12 sps:$4 sm:$0xff]  }
 0x2b1   : > { %914 = vmatprep.subr.bf16.mxu0 %v6264_v56  ;;  %5912 = vmatprep.mubr.bf16.mxu1 %v736_v63  ;;  %v6276_v6 = vld [vmem:[%s7724_s11 + $0x94] ss:$12 sps:$4 sm:$0xff]   ;;  %v6288_v13 = vld [vmem:[%s7724_s11 + $0x98] ss:$12 sps:$4 sm:$0xff]   ;;  %v6289_v14 = vld [vmem:[%s7724_s11 + $0xb0] ss:$12 sps:$4 sm:$0xff]  }
 0x2b2   : > { %v6286_v10 = vld [vmem:[%s7724_s11 + $0x68] ss:$12 sps:$4 sm:$0xff]   ;;  %v6287_v12 = vld [vmem:[%s7724_s11 + $0x80] ss:$12 sps:$4 sm:$0xff]   ;;  %v7791_v21 = vsub.s32 0, %v7788_v20  ;;  %vm1038_vm1 = vcmask 261120  }
 0x2b3   : > { %5899 = vmatpush3.bf16.msra.mxu1 %v6283_v1  ;;  %v6281_v11 = vld [vmem:[%s7724_s11 + $0xa8] ss:$12 sps:$4 sm:$0xff]   ;;  %v729_v22 = vld [vmem:[%s7740_s26] sm:$0xff]  ;;  %s7259_s21 = smov 96   ;;  %vm1086_vm2 = vcmask 130048   ;;  %s7260_s1 = smov 64  }
 0x2b4   : > { %915 = vmatpush1.bf16.msra.mxu0 %v6266_v57  ;;  %5900 = vmatprep.subr.bf16.mxu1 %v6284_v4  ;;  %v734_v15 = vld [vmem:[#allocation2 + $0x10] sm:$0xff]  ;;  %v735_v16 = vld [vmem:[#allocation2 + $0x18] sm:$0xff]  ;;  %v7795_v23 = vrot.slane %v729_v22, %v7791_v21  ;;  %v7833_v55 = vld [vmem:[#allocation9] ss:$0 sm:$0xff]  ;;  %s7261_s3 = smov 32   ;;  %s8418_s16 = sld [smem:[#allocation35_spill]] }
 0x2b5   : > { %916 = vmatprep.subr.bf16.mxu0 %v6267_v58  ;;  %v737_v17 = vpack.c.bf16 %v735_v16, %v734_v15  ;;  %v730_v24 = vld [vmem:[%s7740_s26 + $0x8] sm:$0xff]  ;;  %v731_v39 = vld [vmem:[%s7740_s26 + $0x10] sm:$0xff] }
 0x2b6   : > { %v7799_v26 = vrot.slane %v730_v24, %v7791_v21  ;;  %v781_v40 = vrot.slane %v731_v39, %v7791_v21 }
 0x2b7   : > { %5901 = vmatpush3.bf16.msra.mxu1 %v6284_v4 }
 0x2b8   : > { %917 = vmatpush1.bf16.msra.mxu0 %v6269_v59  ;;  %5902 = vmatprep.subr.bf16.mxu1 %v6285_v7 }
 0x2b9   : > { %918 = vmatprep.subr.bf16.mxu0 %v6270_v60 }
 0x2ba   : > { %p5517_p6 = scmp.ne.s32.totalorder %s8418_s16, 1 }
 0x2bb   : > { %5903 = vmatpush3.bf16.msra.mxu1 %v6285_v7  ;;  %vm5157_vm3 = vcmask (!%p5517_p6), 1041408   ;;  %vm5171_vm4 = vcmask (!%p5517_p6), 1024  }
 0x2bc   : > { %919 = vmatpush1.bf16.msra.mxu0 %v6272_v2  ;;  %5904 = vmatprep.subr.bf16.mxu1 %v6286_v10 }
 0x2bd   : > { %920 = vmatprep.subr.bf16.mxu0 %v6273_v3 }
 0x2bf   : > { %5905 = vmatpush3.bf16.msra.mxu1 %v6286_v10 }
 0x2c0   : > { %921 = vmatpush1.bf16.msra.mxu0 %v6275_v5  ;;  %5906 = vmatprep.subr.bf16.mxu1 %v6287_v12 }
 0x2c1   : > { %922 = vmatprep.subr.bf16.mxu0 %v6276_v6 }
 0x2c3   : > { %5907 = vmatpush3.bf16.msra.mxu1 %v6287_v12 }
 0x2c4   : > { %923 = vmatpush1.bf16.msra.mxu0 %v6278_v8  ;;  %5908 = vmatprep.subr.bf16.mxu1 %v6288_v13 }
 0x2c5   : > { %924 = vmatprep.subr.bf16.mxu0 %v6279_v9 }
 0x2c7   : > { %5909 = vmatpush3.bf16.msra.mxu1 %v6288_v13 }
 0x2c8   : > { %925 = vmatpush1.bf16.msra.mxu0 %v6281_v11  ;;  %5910 = vmatprep.subr.bf16.mxu1 %v6289_v14 }
 0x2c9   : > { %5922 = vmatprep.subr.bf16.mxu0 %v7257_v18 }
 0x2cb   : > { %943 = vmatmul.mubr.bf16.vlgmr.msra.gmra.mrb[0].mxu0 %v736_v63  ;;  %5911 = vmatpush3.bf16.msra.mxu1 %v6289_v14 }
 0x2cc   : > { %952 = vmatprep.mubr.bf16.mxu0 %v7256_v53  ;;  %5916 = vmatprep.subr.bf16.mxu1 %v7257_v18 }
 0x2ce   : > { %5913 = vmatmul.mubr.bf16.vlgmr.msra.gmra.mrb[0].mxu1 %v737_v17 }
 0x2cf   : > { %5918 = vmatprep.mubr.msk.bf16.mxu1 %vm7258_vm0, %v7257_v18 }
 0x2d3   : > { %953 = vmatmul.mubr.bf16.gmra.mrb[4].mxu0 %v737_v17 }
 0x2d4   : > { %5924 = vmatprep.mubr.msk.bf16.mxu0 %vm7258_vm0, %v7257_v18 }
 0x39e   : > { %v944_v25 = vpop.f32.mrb[0].mxu0 }
 0x39f   : > { %v945_v27 = vadd.f32 %v944_v25, %v7795_v23  ;;  %v946_v28 = vpop.f32.mrb[1].mxu0 }
 0x3a0   : > { %v948_v29 = vpop.f32.mrb[2].mxu0  ;;  %v947_v32 = vadd.f32 %v946_v28, %v7799_v26 }
 0x3a1   : > { %v949_v30 = vadd.f32 %v948_v29, %v7795_v23  ;;  %v950_v31 = vpop.f32.mrb[3].mxu0  ;;  %v1029_v34 = vmul.f32 0.17677669, %v945_v27  ;;  %v5914_v41 = vpop.f32.mrb[0].mxu1 }
 0x3a2   : > { %v951_v33 = vadd.f32 %v950_v31, %v7799_v26  ;;  %v1006_v42 = vadd.f32 %v5914_v41, %v781_v40  ;;  %v997_v43 = vpop.f32.mrb[1].mxu1 }
 0x3a3   : > { %v1030_v35 = vmul.f32 0.17677669, %v949_v30  ;;  %v998_v44 = vadd.f32 %v997_v43, %v781_v40  ;;  %v5915_v45 = vpop.f32.mrb[2].mxu1 }
 0x3a4   : > { %v7805_v36 = vpack.c.bf16 %v951_v33, %v947_v32  ;;  %v1009_v46 = vadd.f32 %v5915_v45, %v781_v40  ;;  %v1000_v47 = vpop.f32.mrb[3].mxu1 }
 0x3a5   : > { %v7807_v37 = vpack.c.bf16 %v1030_v35, %v1029_v34  ;;  %v1001_v48 = vadd.f32 %v1000_v47, %v781_v40 }
 0x3a6   : > { %1159 = vrot.lane.b32.xlu0 %v7805_v36, %s7259_s21  ;;  %v1043_v38 = vsel %vm1038_vm1, %v7805_v36, 0  ;;  %v7822_v49 = vpack.c.bf16 %v1009_v46, %v1006_v42  ;;  %v954_v35 = vpop.f32.mrb[4].mxu0 }
 0x3a7   : > { %5917 = vmatpush3.bf16.xpose.msra.mxu1 %v1043_v38  ;;  %v7824_v50 = vpack.c.bf16 %v1001_v48, %v998_v44  ;;  %v955_v38 = vadd.f32 %v954_v35, %v7795_v23  ;;  %v956_v39 = vpop.f32.mrb[5].mxu0 }
 0x3a8   : > { %5928 = vmatprep.subr.bf16.mxu1 %v7257_v18  ;;  %v957_v40 = vadd.f32 %v956_v39, %v7799_v26  ;;  %v958_v41 = vpop.f32.mrb[6].mxu0 }
 0x3a9   : > { %5923 = vmatpush3.bf16.msra.mxu0 %v7824_v50  ;;  %v1755_v42 = vmul.f32 0.17677669, %v955_v38  ;;  %v959_v43 = vadd.f32 %v958_v41, %v7795_v23  ;;  %v960_v44 = vpop.f32.mrb[7].mxu0  ;;  %v7869_v23 = vld [vmem:[%s7730_s23 + $0x18] sm:$0xff]  }
 0x3aa   : > { %1156 = vrot.lane.b32.xlu0 %v7807_v37, %s7259_s21  ;;  %5934 = vmatprep.subr.bf16.mxu0 %v7257_v18  ;;  %v961_v45 = vadd.f32 %v960_v44, %v7799_v26 }
 0x3ab   : > { %v1756_v46 = vmul.f32 0.17677669, %v959_v43 }
 0x3ac   : > { %v7857_v48 = vpack.c.bf16 %v961_v45, %v957_v40 }
 0x3ae   : > { %5919 = vmatmul.mubr.msk.bf16.vlgmr.msra.gmra.mrb[4].mxu1 %vm1038_vm1, %v7807_v37 }
 0x3af   : > { %5930 = vmatprep.mubr.msk.bf16.mxu1 %vm7258_vm0, %v7257_v18 }
 0x418   : > { %v1160_v51 = vpop.permute.xlu0 %1159 }
 0x419   : > { %v1165_v52 = vsel %vm1038_vm1, %v1160_v51, 0  ;;  %v7859_v51 = vpack.c.bf16 %v1756_v46, %v1755_v42 }
 0x41a   : > { %5929 = vmatpush3.bf16.xpose.msra.mxu1 %v1165_v52 }
 0x41b   : > { %5940 = vmatprep.subr.bf16.mxu1 %v7257_v18 }
 0x41c   : > { %v1157_v54 = vpop.permute.xlu0 %1156 }
 0x421   : > { %5931 = vmatmul.mubr.msk.bf16.vlgmr.msra.gmra.mrb[8].mxu1 %vm1038_vm1, %v1157_v54 }
 0x422   : > { %5944 = vmatprep.mubr.msk.bf16.mxu1 %vm7258_vm0, %v7257_v18 }
 0x481   : > { %v1079_v56 = vpop.f32.mrb[4].mxu1 }
 0x482   : > { %v1080_v57 = vadd.f32 %v7833_v55, %v1079_v56  ;;  %v5920_v58 = vpop.f32.mrb[5].mxu1 }
 0x483   : > { %v1082_v59 = vpop.f32.mrb[6].mxu1  ;;  %v7865_v58 = vld [vmem:[%s7730_s23 + $0x10] sm:$0xff]  }
 0x484   : > { %v1083_v60 = vadd.f32 %v7833_v55, %v1082_v59  ;;  %v5921_v61 = vpop.f32.mrb[7].mxu1  ;;  %v1087_v62 = vsel %vm1086_vm2, %v1080_v57, -inf  ;;  %5941 = vmatpush3.bf16.msra.mxu1 %v7865_v58 }
 0x485   : > { %1088 = vmax.xlane.f32.xlu1 %v1087_v62  ;;  %5942 = vmatprep.subr.bf16.mxu1 %v7257_v18 }
 0x486   : > { %v1090_v63 = vsel %vm1086_vm2, %v1083_v60, -inf }
 0x488   : > { %5943 = vmatpush3.bf16.msra.mxu1 %v7869_v23 }
 0x489   : > { %1091 = vmax.xlane.f32.xlu1 %v1090_v63  ;;  %5956 = vmatprep.subr.bf16.mxu1 %v7257_v18 }
 0x4f4   : > { %v1201_v0 = vpop.f32.mrb[8].mxu1 }
 0x4f5   : > { %v1202_v1 = vadd.f32 %v7833_v55, %v1201_v0  ;;  %v5932_v2 = vpop.f32.mrb[9].mxu1 }
 0x4f6   : > { %v1204_v3 = vpop.f32.mrb[10].mxu1 }
 0x4f7   : > { %v1205_v4 = vadd.f32 %v7833_v55, %v1204_v3  ;;  %v5933_v5 = vpop.f32.mrb[11].mxu1  ;;  %v1208_v6 = vsel %vm1086_vm2, %v1202_v1, -inf  ;;  %v7881_v3 = vld [vmem:[%s7730_s23 + $0x8] sm:$0xff]  }
 0x4f8   : > { %1209 = vmax.xlane.f32.xlu0 %v1208_v6 }
 0x4f9   : > { %v1211_v7 = vsel %vm1086_vm2, %v1205_v4, -inf }
 0x4fa   : > { %1212 = vmax.xlane.f32.xlu1 %v1211_v7 }
 0x50e   : > { %1394 = vrot.lane.b32.xlu0 %v7805_v36, %s7260_s1 }
 0x512   : > { %v1089_v8 = vpop.xlane.xlu1 %1088 }
 0x513   : > { %v1093_v9 = vsub.f32 %v1080_v57, %v1089_v8 }
 0x515   : > { %v1095_v10 = vmul.f32 1.442695, %v1093_v9 }
 0x516   : > { %v1092_v11 = vpop.xlane.xlu1 %1091 }
 0x517   : > { %6338 = vpow2.f32 %v1095_v10  ;;  %v1094_v12 = vsub.f32 %v1083_v60, %v1092_v11 }
 0x519   : > { %v1097_v13 = vmul.f32 1.442695, %v1094_v12 }
 0x51b   : > { %6340 = vpow2.f32 %v1097_v13 }
 0x521   : > { %v6339_v14 = vpop.eup %6338 }
 0x522   : > { %v1099_v15 = vsel %vm1086_vm2, %v6339_v14, 0.0 }
 0x523   : > { %1100 = vadd.xlane.f32.xlu1 %v1099_v15 }
 0x525   : > { %v6341_v16 = vpop.eup %6340 }
 0x526   : > { %v1102_v17 = vsel %vm1086_vm2, %v6341_v16, 0.0 }
 0x527   : > { %1103 = vadd.xlane.f32.xlu1 %v1102_v17 }
 0x585   : > { %v1210_v19 = vpop.xlane.xlu0 %1209 }
 0x586   : > { %v1214_v22 = vsub.f32 %v1202_v1, %v1210_v19  ;;  %v7876_v1 = vld [vmem:[%s7730_s23] sm:$0xff]  }
 0x587   : > { %v1213_v24 = vpop.xlane.xlu1 %1212 }
 0x588   : > { %v1216_v25 = vmul.f32 1.442695, %v1214_v22  ;;  %v1215_v27 = vsub.f32 %v1205_v4, %v1213_v24 }
 0x589   : > { %v1395_v11 = vpop.permute.xlu0 %1394 }
 0x58a   : > { %6342 = vpow2.f32 %v1216_v25  ;;  %v1218_v28 = vmul.f32 1.442695, %v1215_v27  ;;  %v1400_v15 = vsel %vm1038_vm1, %v1395_v11, 0 }
 0x58c   : > { %6344 = vpow2.f32 %v1218_v28 }
 0x594   : > { %v6343_v29 = vpop.eup %6342 }
 0x595   : > { %v1220_v30 = vsel %vm1086_vm2, %v6343_v29, 0.0 }
 0x596   : > { %v6345_v31 = vpop.eup %6344  ;;  %1221 = vadd.xlane.f32.xlu1 %v1220_v30 }
 0x597   : > { %v1223_v32 = vsel %vm1086_vm2, %v6345_v31, 0.0 }
 0x59a   : > { %1224 = vadd.xlane.f32.xlu1 %v1223_v32 }
 0x5ab   : > { %1232 = vrot.lane.b32.xlu1 %v7824_v50, %s7259_s21 }
 0x5af   : > { %1392 = vrot.lane.b32.xlu1 %v7807_v37, %s7260_s1 }
 0x5b0   : > { %v1101_v33 = vpop.xlane.xlu1 %1100 }
 0x5b1   : > { %6346 = vrcp.f32 %v1101_v33 }
 0x5b4   : > { %v1104_v34 = vpop.xlane.xlu1 %1103 }
 0x5b5   : > { %6348 = vrcp.f32 %v1104_v34 }
 0x5bb   : > { %v6347_v47 = vpop.eup %6346 }
 0x5bc   : > { %v1107_v54 = vmul.f32 %v6347_v47, %v6339_v14 }
 0x5bf   : > { %v6349_v52 = vpop.eup %6348 }
 0x5c0   : > { %v1108_v56 = vmul.f32 %v6349_v52, %v6341_v16 }
 0x5c2   : > { %v1109_v57 = vpack.c.bf16 %v1108_v56, %v1107_v54 }
 0x5c4   : > { %5925 = vmatmul.mubr.msk.bf16.vlgmr.msra.gmra.mrb[8].mxu0 %vm1086_vm2, %v1109_v57 }
 0x5c5   : > { %5936 = vmatprep.mubr.msk.bf16.mxu0 %vm7258_vm0, %v7257_v18 }
 0x623   : > { %v1222_v26 = vpop.xlane.xlu1 %1221 }
 0x624   : > { %6350 = vrcp.f32 %v1222_v26 }
 0x627   : > { %v1225_v59 = vpop.xlane.xlu1 %1224 }
 0x628   : > { %6352 = vrcp.f32 %v1225_v59  ;;  %v7917_v59 = vld [vmem:[%s7730_s23 + $0x20] sm:$0xff]  }
 0x62b   : > { %v1233_v60 = vpop.permute.xlu1 %1232 }
 0x62c   : > { %5935 = vmatpush3.bf16.msra.mxu0 %v1233_v60 }
 0x62d   : > { %5948 = vmatprep.subr.bf16.mxu0 %v7257_v18 }
 0x62e   : > { %v6351_v61 = vpop.eup %6350 }
 0x62f   : > { %v1228_v63 = vmul.f32 %v6351_v61, %v6343_v29  ;;  %v1393_v16 = vpop.permute.xlu1 %1392 }
 0x632   : > { %v6353_v62 = vpop.eup %6352 }
 0x633   : > { %v1229_v0 = vmul.f32 %v6353_v62, %v6345_v31 }
 0x635   : > { %v1230_v2 = vpack.c.bf16 %v1229_v0, %v1228_v63 }
 0x637   : > { %5937 = vmatmul.mubr.msk.bf16.vlgmr.msra.gmra.mrb[12].mxu0 %vm1086_vm2, %v1230_v2 }
 0x638   : > { %5949 = vmatpush3.bf16.msra.mxu0 %v7876_v1  ;;  %5952 = vmatprep.mubr.msk.bf16.mxu0 %vm7258_vm0, %v7257_v18 }
 0x639   : > { %5950 = vmatprep.subr.bf16.mxu0 %v7257_v18 }
 0x63c   : > { %5951 = vmatpush3.bf16.msra.mxu0 %v7881_v3 }
 0x63d   : > { %5962 = vmatprep.subr.bf16.mxu0 %v7257_v18 }
 0x697   : > { %v1147_v4 = vpop.f32.mrb[8].mxu0 }
 0x698   : > { %v5926_v5 = vpop.f32.mrb[9].mxu0 }
 0x699   : > { %v1150_v6 = vpop.f32.mrb[10].mxu0 }
 0x69a   : > { %v1154_v7 = vpack.c.bf16 %v1150_v6, %v1147_v4  ;;  %v5927_v8 = vpop.f32.mrb[11].mxu0  ;;  %v7930_v6 = vld [vmem:[%s7730_s23 + $0x28] sm:$0xff]  }
 0x69c   : > { %5953 = vmatmul.mubr.msk.bf16.vlgmr.msra.gmra.mrb[16].mxu0 %vm1038_vm1, %v1154_v7 }
 0x69d   : > { %5964 = vmatprep.mubr.msk.bf16.mxu0 %vm7258_vm0, %v7257_v18 }
 0x70a   : > { %v1272_v9 = vpop.f32.mrb[12].mxu0 }
 0x70b   : > { %v5938_v10 = vpop.f32.mrb[13].mxu0 }
 0x70c   : > { %v1275_v12 = vpop.f32.mrb[14].mxu0 }
 0x70d   : > { %v1279_v13 = vpack.c.bf16 %v1275_v12, %v1272_v9  ;;  %v5939_v14 = vpop.f32.mrb[15].mxu0 }
 0x70f   : > { %5945 = vmatmul.mubr.msk.bf16.vlgmr.msra.gmra.mrb[12].mxu1 %vm1038_vm1, %v1279_v13 }
 0x710   : > { %5957 = vmatpush3.bf16.xpose.msra.mxu1 %v1400_v15  ;;  %5958 = vmatprep.mubr.msk.bf16.mxu1 %vm7258_vm0, %v7257_v18 }
 0x711   : > { %5968 = vmatprep.subr.bf16.mxu1 %v7257_v18 }
 0x717   : > { %5959 = vmatmul.mubr.msk.bf16.vlgmr.msra.gmra.mrb[16].mxu1 %vm1038_vm1, %v1393_v16 }
 0x718   : > { %5972 = vmatprep.mubr.msk.bf16.mxu1 %vm7258_vm0, %v7257_v18  ;;  %5969 = vmatpush3.bf16.msra.mxu1 %v7917_v59 }
 0x719   : > { %5970 = vmatprep.subr.bf16.mxu1 %v7257_v18 }
 0x71c   : > { %5971 = vmatpush3.bf16.msra.mxu1 %v7930_v6 }
 0x71d   : > { %5982 = vmatprep.subr.bf16.mxu1 %v7257_v18 }
 0x76f   : > { %v1385_v17 = vpop.f32.mrb[16].mxu0 }
 0x770   : > { %v5954_v19 = vpop.f32.mrb[17].mxu0 }
 0x771   : > { %v1388_v22 = vpop.f32.mrb[18].mxu0 }
 0x772   : > { %v5955_v24 = vpop.f32.mrb[19].mxu0 }
 0x7e2   : > { %v1329_v25 = vpop.f32.mrb[12].mxu1 }
 0x7e3   : > { %v7899_v27 = vadd.f32 %v1385_v17, %v1329_v25  ;;  %v5946_v28 = vpop.f32.mrb[13].mxu1 }
 0x7e4   : > { %v1332_v29 = vpop.f32.mrb[14].mxu1 }
 0x7e5   : > { %v7901_v30 = vadd.f32 %v1388_v22, %v1332_v29  ;;  %v5947_v31 = vpop.f32.mrb[15].mxu1 }
 0x7ea   : > { %v1436_v32 = vpop.f32.mrb[16].mxu1 }
 0x7eb   : > { %v1437_v33 = vadd.f32 %v7833_v55, %v1436_v32  ;;  %v5960_v34 = vpop.f32.mrb[17].mxu1 }
 0x7ec   : > { %v1439_v35 = vpop.f32.mrb[18].mxu1 }
 0x7ed   : > { %v1440_v38 = vadd.f32 %v7833_v55, %v1439_v35  ;;  %v5961_v39 = vpop.f32.mrb[19].mxu1  ;;  %v1443_v40 = vsel %vm1086_vm2, %v1437_v33, -inf }
 0x7ee   : > { %1444 = vmax.xlane.f32.xlu1 %v1443_v40 }
 0x7ef   : > { %v1446_v41 = vsel %vm1086_vm2, %v1440_v38, -inf }
 0x7f0   : > { %1447 = vmax.xlane.f32.xlu0 %v1446_v41 }
 0x806   : > { %1466 = vrot.lane.b32.xlu0 %v7824_v50, %s7260_s1 }
 0x87b   : > { %v1445_v42 = vpop.xlane.xlu1 %1444 }
 0x87c   : > { %v1449_v43 = vsub.f32 %v1437_v33, %v1445_v42 }
 0x87d   : > { %v1448_v44 = vpop.xlane.xlu0 %1447 }
 0x87e   : > { %v1451_v45 = vmul.f32 1.442695, %v1449_v43  ;;  %v1450_v46 = vsub.f32 %v1440_v38, %v1448_v44  ;;  %v7957_v44 = vld [vmem:[%s7730_s23 + $0x30] sm:$0xff]  }
 0x880   : > { %6354 = vpow2.f32 %v1451_v45  ;;  %v1453_v47 = vmul.f32 1.442695, %v1450_v46 }
 0x881   : > { %v1467_v52 = vpop.permute.xlu0 %1466 }
 0x882   : > { %6356 = vpow2.f32 %v1453_v47  ;;  %5963 = vmatpush3.bf16.msra.mxu0 %v1467_v52 }
 0x883   : > { %5976 = vmatprep.subr.bf16.mxu0 %v7257_v18 }
 0x88a   : > { %v6355_v54 = vpop.eup %6354 }
 0x88b   : > { %v1455_v56 = vsel %vm1086_vm2, %v6355_v54, 0.0 }
 0x88c   : > { %v6357_v57 = vpop.eup %6356  ;;  %1456 = vadd.xlane.f32.xlu1 %v1455_v56 }
 0x88d   : > { %v1458_v26 = vsel %vm1086_vm2, %v6357_v57, 0.0 }
 0x890   : > { %1459 = vadd.xlane.f32.xlu1 %v1458_v26 }
 0x8a1   : > { %1574 = vrot.lane.b32.xlu1 %v7805_v36, %s7261_s3 }
 0x8a5   : > { %1572 = vrot.lane.b32.xlu1 %v7807_v37, %s7261_s3 }
 0x919   : > { %v1457_v60 = vpop.xlane.xlu1 %1456 }
 0x91a   : > { %6358 = vrcp.f32 %v1457_v60 }
 0x91d   : > { %v1460_v61 = vpop.xlane.xlu1 %1459 }
 0x91e   : > { %6360 = vrcp.f32 %v1460_v61  ;;  %v7981_v61 = vld [vmem:[%s7730_s23 + $0x38] sm:$0xff]  }
 0x921   : > { %v1575_v4 = vpop.permute.xlu1 %1574 }
 0x922   : > { %v1580_v5 = vsel %vm1038_vm1, %v1575_v4, 0  ;;  %v7987_v4 = vld [vmem:[#allocation9 + $0x1] ss:$0 sm:$0xff] }
 0x924   : > { %v6359_v62 = vpop.eup %6358 }
 0x925   : > { %v1463_v0 = vmul.f32 %v6359_v62, %v6355_v54  ;;  %v1573_v37 = vpop.permute.xlu1 %1572 }
 0x928   : > { %v6361_v63 = vpop.eup %6360 }
 0x929   : > { %v1464_v2 = vmul.f32 %v6361_v63, %v6357_v57 }
 0x92b   : > { %v1465_v36 = vpack.c.bf16 %v1464_v2, %v1463_v0 }
 0x92d   : > { %5965 = vmatmul.mubr.msk.bf16.vlgmr.msra.gmra.mrb[20].mxu0 %vm1086_vm2, %v1465_v36 }
 0x92e   : > { %5977 = vmatpush3.bf16.xpose.msra.mxu0 %v1580_v5  ;;  %5978 = vmatprep.mubr.msk.bf16.mxu0 %vm7258_vm0, %v7257_v18 }
 0x92f   : > { %5988 = vmatprep.subr.bf16.mxu0 %v7257_v18 }
 0x935   : > { %5979 = vmatmul.mubr.msk.bf16.vlgmr.msra.gmra.mrb[24].mxu0 %vm1038_vm1, %v1573_v37 }
 0x936   : > { %5992 = vmatprep.mubr.msk.bf16.mxu0 %vm7258_vm0, %v7257_v18  ;;  %5989 = vmatpush3.bf16.msra.mxu0 %v7957_v44 }
 0x937   : > { %5990 = vmatprep.subr.bf16.mxu0 %v7257_v18 }
 0x93a   : > { %5991 = vmatpush3.bf16.msra.mxu0 %v7981_v61 }
 0x93b   : > { %6002 = vmatprep.subr.bf16.mxu0 %v7257_v18 }
 0xa00   : > { %v1506_v7 = vpop.f32.mrb[20].mxu0 }
 0xa01   : > { %v5966_v8 = vpop.f32.mrb[21].mxu0 }
 0xa02   : > { %v1509_v9 = vpop.f32.mrb[22].mxu0 }
 0xa03   : > { %v1513_v10 = vpack.c.bf16 %v1509_v9, %v1506_v7  ;;  %v5967_v11 = vpop.f32.mrb[23].mxu0 }
 0xa05   : > { %5973 = vmatmul.mubr.msk.bf16.vlgmr.msra.gmra.mrb[20].mxu1 %vm1038_vm1, %v1513_v10 }
 0xa06   : > { %5984 = vmatprep.mubr.msk.bf16.mxu1 %vm7258_vm0, %v7257_v18 }
 0xa08   : > { %v1616_v12 = vpop.f32.mrb[24].mxu0 }
 0xa09   : > { %v1617_v13 = vadd.f32 %v7833_v55, %v1616_v12  ;;  %v5980_v14 = vpop.f32.mrb[25].mxu0 }
 0xa0a   : > { %v1619_v15 = vpop.f32.mrb[26].mxu0 }
 0xa0b   : > { %v1620_v16 = vadd.f32 %v7833_v55, %v1619_v15  ;;  %v5981_v17 = vpop.f32.mrb[27].mxu0  ;;  %v1623_v19 = vsel %vm1086_vm2, %v1617_v13, -inf }
 0xa0c   : > { %1624 = vmax.xlane.f32.xlu0 %v1623_v19 }
 0xa0d   : > { %v1626_v22 = vsel %vm1086_vm2, %v1620_v16, -inf }
 0xa0e   : > { %1627 = vmax.xlane.f32.xlu1 %v1626_v22 }
 0xa1f   : > { %1646 = vrot.lane.b32.xlu1 %v7824_v50, %s7261_s3 }
 0xa23   : > { %1880 = vrot.lane.b32.xlu1 %v7859_v51, %s7259_s21 }
 0xa99   : > { %v1625_v24 = vpop.xlane.xlu0 %1624 }
 0xa9a   : > { %v1629_v25 = vsub.f32 %v1617_v13, %v1625_v24 }
 0xa9b   : > { %v1628_v28 = vpop.xlane.xlu1 %1627 }
 0xa9c   : > { %v1631_v29 = vmul.f32 1.442695, %v1629_v25  ;;  %v1630_v31 = vsub.f32 %v1620_v16, %v1628_v28 }
 0xa9e   : > { %6362 = vpow2.f32 %v1631_v29  ;;  %v1633_v55 = vmul.f32 1.442695, %v1630_v31 }
 0xa9f   : > { %v1647_v32 = vpop.permute.xlu1 %1646 }
 0xaa0   : > { %6364 = vpow2.f32 %v1633_v55  ;;  %5983 = vmatpush3.bf16.msra.mxu1 %v1647_v32 }
 0xaa1   : > { %5996 = vmatprep.subr.bf16.mxu1 %v7257_v18 }
 0xaa3   : > { %v1881_v60 = vpop.permute.xlu1 %1880 }
 0xaa8   : > { %v6363_v33 = vpop.eup %6362 }
 0xaa9   : > { %v1635_v34 = vsel %vm1086_vm2, %v6363_v33, 0.0 }
 0xaaa   : > { %v6365_v50 = vpop.eup %6364  ;;  %1636 = vadd.xlane.f32.xlu0 %v1635_v34 }
 0xaab   : > { %v1638_v35 = vsel %vm1086_vm2, %v6365_v50, 0.0 }
 0xaae   : > { %1639 = vadd.xlane.f32.xlu0 %v1638_v35 }
 0xac4   : > { %1883 = vrot.lane.b32.xlu0 %v7857_v48, %s7259_s21 }
 0xad8   : > { %v1563_v38 = vpop.f32.mrb[20].mxu1 }
 0xad9   : > { %v7951_v39 = vadd.f32 %v1563_v38, %v7899_v27  ;;  %v5974_v40 = vpop.f32.mrb[21].mxu1 }
 0xada   : > { %v1566_v41 = vpop.f32.mrb[22].mxu1 }
 0xadb   : > { %v7954_v42 = vadd.f32 %v1566_v41, %v7901_v30  ;;  %v5975_v43 = vpop.f32.mrb[23].mxu1  ;;  %v1768_v30 = vsel %vm1038_vm1, %v7857_v48, 0 }
 0xb37   : > { %v1637_v45 = vpop.xlane.xlu0 %1636 }
 0xb38   : > { %6366 = vrcp.f32 %v1637_v45 }
 0xb3b   : > { %v1640_v46 = vpop.xlane.xlu0 %1639 }
 0xb3c   : > { %6368 = vrcp.f32 %v1640_v46 }
 0xb3f   : > { %v1884_v57 = vpop.permute.xlu0 %1883 }
 0xb40   : > { %v1889_v26 = vsel %vm1038_vm1, %v1884_v57, 0 }
 0xb42   : > { %v6367_v47 = vpop.eup %6366 }
 0xb43   : > { %v1643_v27 = vmul.f32 %v6367_v47, %v6363_v33 }
 0xb46   : > { %v6369_v52 = vpop.eup %6368 }
 0xb47   : > { %v1644_v54 = vmul.f32 %v6369_v52, %v6365_v50 }
 0xb49   : > { %v1645_v56 = vpack.c.bf16 %v1644_v54, %v1643_v27 }
 0xb4b   : > { %5985 = vmatmul.mubr.msk.bf16.vlgmr.msra.gmra.mrb[24].mxu1 %vm1086_vm2, %v1645_v56 }
 0xb4c   : > { %5997 = vmatpush3.bf16.xpose.msra.mxu1 %v1768_v30  ;;  %5998 = vmatprep.mubr.msk.bf16.mxu1 %vm7258_vm0, %v7257_v18 }
 0xb4d   : > { %6008 = vmatprep.subr.bf16.mxu1 %v7257_v18 }
 0xb53   : > { %5999 = vmatmul.mubr.msk.bf16.vlgmr.msra.gmra.mrb[28].mxu1 %vm1038_vm1, %v7859_v51 }
 0xb54   : > { %6009 = vmatpush3.bf16.xpose.msra.mxu1 %v1889_v26  ;;  %6010 = vmatprep.mubr.msk.bf16.mxu1 %vm7258_vm0, %v7257_v18 }
 0xb55   : > { %6020 = vmatprep.subr.bf16.mxu1 %v7257_v18 }
 0xb5b   : > { %6011 = vmatmul.mubr.msk.bf16.vlgmr.msra.gmra.mrb[32].mxu1 %vm1038_vm1, %v1881_v60 }
 0xb5c   : > { %6021 = vmatpush3.bf16.msra.mxu1 %v7865_v58  ;;  %6024 = vmatprep.mubr.msk.bf16.mxu1 %vm7258_vm0, %v7257_v18 }
 0xb5d   : > { %6022 = vmatprep.subr.bf16.mxu1 %v7257_v18 }
 0xb60   : > { %6023 = vmatpush3.bf16.msra.mxu1 %v7869_v23 }
 0xb61   : > { %6036 = vmatprep.subr.bf16.mxu1 %v7257_v18 }
 0xc1e   : > { %v1686_v62 = vpop.f32.mrb[24].mxu1 }
 0xc1f   : > { %v5986_v63 = vpop.f32.mrb[25].mxu1 }
 0xc20   : > { %v1689_v0 = vpop.f32.mrb[26].mxu1 }
 0xc21   : > { %v1693_v2 = vpack.c.bf16 %v1689_v0, %v1686_v62  ;;  %v5987_v58 = vpop.f32.mrb[27].mxu1 }
 0xc23   : > { %5993 = vmatmul.mubr.msk.bf16.vlgmr.msra.gmra.mrb[28].mxu0 %vm1038_vm1, %v1693_v2 }
 0xc24   : > { %6003 = vmatpush3.bf16.msra.mxu0 %v7822_v49  ;;  %6004 = vmatprep.mubr.msk.bf16.mxu0 %vm7258_vm0, %v7257_v18 }
 0xc25   : > { %6014 = vmatprep.subr.bf16.mxu0 %v7257_v18 }
 0xc26   : > { %v1804_v23 = vpop.f32.mrb[28].mxu1 }
 0xc27   : > { %v1805_v36 = vadd.f32 %v7987_v4, %v1804_v23  ;;  %v6000_v5 = vpop.f32.mrb[29].mxu1 }
 0xc28   : > { %v1807_v37 = vpop.f32.mrb[30].mxu1 }
 0xc29   : > { %v1808_v7 = vadd.f32 %v7987_v4, %v1807_v37  ;;  %v6001_v8 = vpop.f32.mrb[31].mxu1  ;;  %v1811_v9 = vsel %vm1086_vm2, %v1805_v36, -inf }
 0xc2a   : > { %1812 = vmax.xlane.f32.xlu1 %v1811_v9 }
 0xc2b   : > { %v1814_v10 = vsel %vm1086_vm2, %v1808_v7, -inf }
 0xc2c   : > { %1815 = vmax.xlane.f32.xlu0 %v1814_v10 }
 0xc2e   : > { %v1925_v11 = vpop.f32.mrb[32].mxu1 }
 0xc2f   : > { %v1926_v12 = vadd.f32 %v7987_v4, %v1925_v11  ;;  %v6012_v13 = vpop.f32.mrb[33].mxu1 }
 0xc30   : > { %v1928_v14 = vpop.f32.mrb[34].mxu1 }
 0xc31   : > { %v1929_v15 = vadd.f32 %v7987_v4, %v1928_v14  ;;  %v6013_v16 = vpop.f32.mrb[35].mxu1  ;;  %v1932_v17 = vsel %vm1086_vm2, %v1926_v12, -inf }
 0xc32   : > { %1933 = vmax.xlane.f32.xlu0 %v1932_v17 }
 0xc33   : > { %v1935_v19 = vsel %vm1086_vm2, %v1929_v15, -inf }
 0xc34   : > { %1936 = vmax.xlane.f32.xlu1 %v1935_v19 }
 0xcb7   : > { %v1813_v22 = vpop.xlane.xlu1 %1812 }
 0xcb8   : > { %v1817_v24 = vsub.f32 %v1805_v36, %v1813_v22 }
 0xcb9   : > { %v1816_v25 = vpop.xlane.xlu0 %1815 }
 0xcba   : > { %v1819_v28 = vmul.f32 1.442695, %v1817_v24  ;;  %v1818_v29 = vsub.f32 %v1808_v7, %v1816_v25 }
 0xcbc   : > { %6370 = vpow2.f32 %v1819_v28  ;;  %v1821_v31 = vmul.f32 1.442695, %v1818_v29 }
 0xcbe   : > { %6372 = vpow2.f32 %v1821_v31 }
 0xcbf   : > { %v1934_v55 = vpop.xlane.xlu0 %1933 }
 0xcc0   : > { %v1938_v32 = vsub.f32 %v1926_v12, %v1934_v55 }
 0xcc1   : > { %v1937_v33 = vpop.xlane.xlu1 %1936 }
 0xcc2   : > { %v1940_v34 = vmul.f32 1.442695, %v1938_v32  ;;  %v1939_v50 = vsub.f32 %v1929_v15, %v1937_v33 }
 0xcc4   : > { %6374 = vpow2.f32 %v1940_v34  ;;  %v1942_v35 = vmul.f32 1.442695, %v1939_v50 }
 0xcc6   : > { %v6371_v38 = vpop.eup %6370  ;;  %6376 = vpow2.f32 %v1942_v35 }
 0xcc7   : > { %v1823_v40 = vsel %vm1086_vm2, %v6371_v38, 0.0 }
 0xcc8   : > { %v6373_v41 = vpop.eup %6372  ;;  %1824 = vadd.xlane.f32.xlu0 %v1823_v40 }
 0xcc9   : > { %v1826_v43 = vsel %vm1086_vm2, %v6373_v41, 0.0 }
 0xcca   : > { %1827 = vadd.xlane.f32.xlu1 %v1826_v43 }
 0xcce   : > { %v6375_v45 = vpop.eup %6374 }
 0xccf   : > { %v1944_v46 = vsel %vm1086_vm2, %v6375_v45, 0.0 }
 0xcd0   : > { %v6377_v47 = vpop.eup %6376  ;;  %1945 = vadd.xlane.f32.xlu0 %v1944_v46 }
 0xcd1   : > { %v1947_v52 = vsel %vm1086_vm2, %v6377_v47, 0.0 }
 0xcd2   : > { %1948 = vadd.xlane.f32.xlu1 %v1947_v52 }
 0xce3   : > { %2094 = vrot.lane.b32.xlu1 %v7857_v48, %s7260_s1 }
 0xce6   : > { %1956 = vrot.lane.b32.xlu0 %v7822_v49, %s7259_s21 }
 0xce7   : > { %2092 = vrot.lane.b32.xlu1 %v7859_v51, %s7260_s1 }
 0xcf6   : > { %v1743_v27 = vpop.f32.mrb[28].mxu0 }
 0xcf7   : > { %v8011_v54 = vadd.f32 %v1743_v27, %v7951_v39  ;;  %v5994_v56 = vpop.f32.mrb[29].mxu0 }
 0xcf8   : > { %v1746_v30 = vpop.f32.mrb[30].mxu0 }
 0xcf9   : > { %v8014_v57 = vadd.f32 %v1746_v30, %v7954_v42  ;;  %v5995_v26 = vpop.f32.mrb[31].mxu0 }
 0xd55   : > { %v1825_v60 = vpop.xlane.xlu0 %1824 }
 0xd56   : > { %6378 = vrcp.f32 %v1825_v60 }
 0xd57   : > { %v1828_v62 = vpop.xlane.xlu1 %1827 }
 0xd58   : > { %6380 = vrcp.f32 %v1828_v62 }
 0xd5d   : > { %v1946_v63 = vpop.xlane.xlu0 %1945 }
 0xd5e   : > { %6382 = vrcp.f32 %v1946_v63 }
 0xd5f   : > { %v1949_v0 = vpop.xlane.xlu1 %1948 }
 0xd60   : > { %v6379_v2 = vpop.eup %6378  ;;  %6384 = vrcp.f32 %v1949_v0 }
 0xd61   : > { %v1831_v23 = vmul.f32 %v6379_v2, %v6371_v38  ;;  %v1957_v5 = vpop.permute.xlu0 %1956 }
 0xd62   : > { %v6381_v58 = vpop.eup %6380 }
 0xd63   : > { %v1832_v36 = vmul.f32 %v6381_v58, %v6373_v41  ;;  %v2095_v16 = vpop.permute.xlu1 %2094 }
 0xd65   : > { %v1833_v39 = vpack.c.bf16 %v1832_v36, %v1831_v23 }
 0xd67   : > { %6005 = vmatmul.mubr.msk.bf16.vlgmr.msra.gmra.mrb[32].mxu0 %vm1086_vm2, %v1833_v39  ;;  %v2093_v24 = vpop.permute.xlu1 %2092 }
 0xd68   : > { %v6383_v37 = vpop.eup %6382  ;;  %6015 = vmatpush3.bf16.msra.mxu0 %v1957_v5  ;;  %6016 = vmatprep.mubr.msk.bf16.mxu0 %vm7258_vm0, %v7257_v18 }
 0xd69   : > { %6028 = vmatprep.subr.bf16.mxu0 %v7257_v18  ;;  %v1952_v7 = vmul.f32 %v6383_v37, %v6375_v45 }
 0xd6a   : > { %v6385_v42 = vpop.eup %6384 }
 0xd6b   : > { %v1953_v8 = vmul.f32 %v6385_v42, %v6377_v47 }
 0xd6d   : > { %v1954_v9 = vpack.c.bf16 %v1953_v8, %v1952_v7 }
 0xd6f   : > { %6017 = vmatmul.mubr.msk.bf16.vlgmr.msra.gmra.mrb[36].mxu0 %vm1086_vm2, %v1954_v9 }
 0xd70   : > { %6029 = vmatpush3.bf16.msra.mxu0 %v7876_v1  ;;  %6032 = vmatprep.mubr.msk.bf16.mxu0 %vm7258_vm0, %v7257_v18 }
 0xd71   : > { %6030 = vmatprep.subr.bf16.mxu0 %v7257_v18 }
 0xd74   : > { %6031 = vmatpush3.bf16.msra.mxu0 %v7881_v3  ;;  %v2100_v3 = vsel %vm1038_vm1, %v2095_v16, 0 }
 0xd75   : > { %6042 = vmatprep.subr.bf16.mxu0 %v7257_v18 }
 0xe3a   : > { %v1871_v10 = vpop.f32.mrb[32].mxu0 }
 0xe3b   : > { %v6006_v11 = vpop.f32.mrb[33].mxu0 }
 0xe3c   : > { %v1874_v12 = vpop.f32.mrb[34].mxu0 }
 0xe3d   : > { %v1878_v13 = vpack.c.bf16 %v1874_v12, %v1871_v10  ;;  %v6007_v14 = vpop.f32.mrb[35].mxu0 }
 0xe3f   : > { %6033 = vmatmul.mubr.msk.bf16.vlgmr.msra.gmra.mrb[40].mxu0 %vm1038_vm1, %v1878_v13 }
 0xe40   : > { %6044 = vmatprep.mubr.msk.bf16.mxu0 %vm7258_vm0, %v7257_v18 }
 0xe42   : > { %v1996_v1 = vpop.f32.mrb[36].mxu0 }
 0xe43   : > { %v6018_v15 = vpop.f32.mrb[37].mxu0 }
 0xe44   : > { %v1999_v17 = vpop.f32.mrb[38].mxu0 }
 0xe45   : > { %v2003_v19 = vpack.c.bf16 %v1999_v17, %v1996_v1  ;;  %v6019_v22 = vpop.f32.mrb[39].mxu0 }
 0xe47   : > { %6025 = vmatmul.mubr.msk.bf16.vlgmr.msra.gmra.mrb[36].mxu1 %vm1038_vm1, %v2003_v19 }
 0xe48   : > { %6037 = vmatpush3.bf16.xpose.msra.mxu1 %v2100_v3  ;;  %6038 = vmatprep.mubr.msk.bf16.mxu1 %vm7258_vm0, %v7257_v18 }
 0xe49   : > { %6048 = vmatprep.subr.bf16.mxu1 %v7257_v18 }
 0xe4f   : > { %6039 = vmatmul.mubr.msk.bf16.vlgmr.msra.gmra.mrb[40].mxu1 %vm1038_vm1, %v2093_v24 }
 0xe50   : > { %6049 = vmatpush3.bf16.msra.mxu1 %v7917_v59  ;;  %6052 = vmatprep.mubr.msk.bf16.mxu1 %vm7258_vm0, %v7257_v18 }
 0xe51   : > { %6050 = vmatprep.subr.bf16.mxu1 %v7257_v18 }
 0xe54   : > { %6051 = vmatpush3.bf16.msra.mxu1 %v7930_v6 }
 0xe55   : > { %6062 = vmatprep.subr.bf16.mxu1 %v7257_v18 }
 0xf12   : > { %v2085_v25 = vpop.f32.mrb[40].mxu0 }
 0xf13   : > { %v6034_v28 = vpop.f32.mrb[41].mxu0 }
 0xf14   : > { %v2088_v29 = vpop.f32.mrb[42].mxu0  ;;  %v8078_v28 = vsub.s32 1, %v7788_v20 }
 0xf15   : > { %v6035_v31 = vpop.f32.mrb[43].mxu0 }
 0xf1a   : > { %v2041_v55 = vpop.f32.mrb[36].mxu1 }
 0xf1b   : > { %v8042_v32 = vadd.f32 %v2085_v25, %v2041_v55  ;;  %v6026_v33 = vpop.f32.mrb[37].mxu1 }
 0xf1c   : > { %v2044_v34 = vpop.f32.mrb[38].mxu1 }
 0xf1d   : > { %v8044_v50 = vadd.f32 %v2088_v29, %v2044_v34  ;;  %v6027_v59 = vpop.f32.mrb[39].mxu1  ;;  %v8081_v29 = vld [vmem:[%s7740_s26] sm:$0xff] }
 0xf22   : > { %v2136_v35 = vpop.f32.mrb[40].mxu1 }
 0xf23   : > { %v2137_v38 = vadd.f32 %v7987_v4, %v2136_v35  ;;  %v6040_v40 = vpop.f32.mrb[41].mxu1 }
 0xf24   : > { %v2139_v41 = vpop.f32.mrb[42].mxu1 }
 0xf25   : > { %v2140_v6 = vadd.f32 %v7987_v4, %v2139_v41  ;;  %v6041_v43 = vpop.f32.mrb[43].mxu1  ;;  %v2143_v45 = vsel %vm1086_vm2, %v2137_v38, -inf  ;;  %v6436_v41 = vld [vmem:[#allocation2 + $0x8] sm:$0xff] }
 0xf26   : > { %2144 = vmax.xlane.f32.xlu0 %v2143_v45 }
 0xf27   : > { %v2146_v46 = vsel %vm1086_vm2, %v2140_v6, -inf }
 0xf28   : > { %2147 = vmax.xlane.f32.xlu1 %v2146_v46 }
 0xf39   : > { %2166 = vrot.lane.b32.xlu1 %v7822_v49, %s7260_s1 }
 0xf3d   : > { %2260 = vrot.lane.b32.xlu1 %v7859_v51, %s7261_s3 }
 0xfb3   : > { %v2145_v47 = vpop.xlane.xlu0 %2144 }
 0xfb4   : > { %v2149_v52 = vsub.f32 %v2137_v38, %v2145_v47  ;;  %v6435_v38 = vld [vmem:[#allocation2] sm:$0xff] }
 0xfb5   : > { %v2148_v27 = vpop.xlane.xlu1 %2147 }
 0xfb6   : > { %v2151_v56 = vmul.f32 1.442695, %v2149_v52  ;;  %v2150_v30 = vsub.f32 %v2140_v6, %v2148_v27 }
 0xfb8   : > { %6386 = vpow2.f32 %v2151_v56  ;;  %v2153_v26 = vmul.f32 1.442695, %v2150_v30 }
 0xfb9   : > { %v2167_v60 = vpop.permute.xlu1 %2166 }
 0xfba   : > { %6388 = vpow2.f32 %v2153_v26  ;;  %6043 = vmatpush3.bf16.msra.mxu0 %v2167_v60 }
 0xfbb   : > { %6056 = vmatprep.subr.bf16.mxu0 %v7257_v18 }
 0xfc2   : > { %v6387_v62 = vpop.eup %6386 }
 0xfc3   : > { %v2155_v63 = vsel %vm1086_vm2, %v6387_v62, 0.0 }
 0xfc4   : > { %v6389_v0 = vpop.eup %6388  ;;  %2156 = vadd.xlane.f32.xlu0 %v2155_v63 }
 0xfc5   : > { %v2158_v2 = vsel %vm1086_vm2, %v6389_v0, 0.0 }
 0xfc8   : > { %2159 = vadd.xlane.f32.xlu0 %v2158_v2 }
 0xfde   : > { %2262 = vrot.lane.b32.xlu0 %v7857_v48, %s7261_s3  ;;  %v2261_v48 = vpop.permute.xlu1 %2260 }
0x1051   : > { %v2157_v51 = vpop.xlane.xlu0 %2156 }
0x1052   : > { %6390 = vrcp.f32 %v2157_v51 }
0x1055   : > { %v2160_v58 = vpop.xlane.xlu0 %2159 }
0x1056   : > { %6392 = vrcp.f32 %v2160_v58 }
0x1059   : > { %v2263_v37 = vpop.permute.xlu0 %2262 }
0x105a   : > { %v2268_v7 = vsel %vm1038_vm1, %v2263_v37, 0 }
0x105c   : > { %v6391_v23 = vpop.eup %6390 }
0x105d   : > { %v2163_v39 = vmul.f32 %v6391_v23, %v6387_v62 }
0x1060   : > { %v6393_v36 = vpop.eup %6392 }
0x1061   : > { %v2164_v5 = vmul.f32 %v6393_v36, %v6389_v0 }
0x1063   : > { %v2165_v42 = vpack.c.bf16 %v2164_v5, %v2163_v39 }
0x1065   : > { %6045 = vmatmul.mubr.msk.bf16.vlgmr.msra.gmra.mrb[44].mxu0 %vm1086_vm2, %v2165_v42 }
0x1066   : > { %6057 = vmatpush3.bf16.xpose.msra.mxu0 %v2268_v7  ;;  %6058 = vmatprep.mubr.msk.bf16.mxu0 %vm7258_vm0, %v7257_v18 }
0x1067   : > { %6068 = vmatprep.subr.bf16.mxu0 %v7257_v18 }
0x106d   : > { %6059 = vmatmul.mubr.msk.bf16.vlgmr.msra.gmra.mrb[48].mxu0 %vm1038_vm1, %v2261_v48 }
0x106e   : > { %6069 = vmatpush3.bf16.msra.mxu0 %v7957_v44  ;;  %6072 = vmatprep.mubr.msk.bf16.mxu0 %vm7258_vm0, %v7257_v18 }
0x106f   : > { %6070 = vmatprep.subr.bf16.mxu0 %v7257_v18 }
0x1072   : > { %6071 = vmatpush3.bf16.msra.mxu0 %v7981_v61 }
0x1138   : > { %v2206_v8 = vpop.f32.mrb[44].mxu0 }
0x1139   : > { %v6046_v9 = vpop.f32.mrb[45].mxu0 }
0x113a   : > { %v2209_v10 = vpop.f32.mrb[46].mxu0 }
0x113b   : > { %v2213_v11 = vpack.c.bf16 %v2209_v10, %v2206_v8  ;;  %v6047_v12 = vpop.f32.mrb[47].mxu0  ;;  %v6437_v8 = vld [vmem:[#allocation2 + $0x10] sm:$0xff] }
0x113d   : > { %6053 = vmatmul.mubr.msk.bf16.vlgmr.msra.gmra.mrb[44].mxu1 %vm1038_vm1, %v2213_v11 }
0x113e   : > { %6064 = vmatprep.mubr.msk.bf16.mxu1 %vm7258_vm0, %v7257_v18 }
0x1140   : > { %v2304_v13 = vpop.f32.mrb[48].mxu0 }
0x1141   : > { %v2305_v44 = vadd.f32 %v7987_v4, %v2304_v13  ;;  %v6060_v14 = vpop.f32.mrb[49].mxu0  ;;  %v6438_v13 = vld [vmem:[#allocation2 + $0x18] sm:$0xff] }
0x1142   : > { %v2307_v1 = vpop.f32.mrb[50].mxu0 }
0x1143   : > { %v2308_v15 = vadd.f32 %v7987_v4, %v2307_v1  ;;  %v6061_v16 = vpop.f32.mrb[51].mxu0  ;;  %v2311_v61 = vsel %vm1086_vm2, %v2305_v44, -inf  ;;  %v2437_v4 = vrot.slane %v8081_v29, %v8078_v28 }
0x1144   : > { %2312 = vmax.xlane.f32.xlu1 %v2311_v61  ;;  %v6298_v16 = vld [vmem:[%s7732_s17] ss:$8 sps:$4 sm:$0xff]   ;;  %v6300_v61 = vld [vmem:[%s7732_s17 + $0x4] ss:$8 sps:$4 sm:$0xff]  }
0x1145   : > { %v2314_v17 = vsel %vm1086_vm2, %v2308_v15, -inf  ;;  %v2438_v34 = vadd.f32 %v2437_v4, %v8011_v54  ;;  %v2439_v35 = vadd.f32 %v2437_v4, %v8014_v57 }
0x1146   : > { %2315 = vmax.xlane.f32.xlu0 %v2314_v17  ;;  %v6301_v17 = vld [vmem:[%s7732_s17 + $0x10] ss:$8 sps:$4 sm:$0xff]  }
0x1147   : > { %v2442_v40 = vadd.f32 %v6435_v38, %v2438_v34  ;;  %v2443_v6 = vadd.f32 %v6436_v41, %v2439_v35  ;;  %v6316_v34 = vld [vmem:[%s7732_s17 + $0x60] ss:$8 sps:$4 sm:$0xff]   ;;  %v6319_v35 = vld [vmem:[%s7732_s17 + $0x70] ss:$8 sps:$4 sm:$0xff]  }
0x11d1   : > { %v2313_v19 = vpop.xlane.xlu1 %2312 }
0x11d2   : > { %v2317_v22 = vsub.f32 %v2305_v44, %v2313_v19  ;;  %v6303_v19 = vld [vmem:[%s7732_s17 + $0x14] ss:$8 sps:$4 sm:$0xff]  }
0x11d3   : > { %v2316_v3 = vpop.xlane.xlu0 %2315 }
0x11d4   : > { %v2319_v24 = vmul.f32 1.442695, %v2317_v22  ;;  %v2318_v18 = vsub.f32 %v2308_v15, %v2316_v3  ;;  %v6306_v22 = vld [vmem:[%s7732_s17 + $0x24] ss:$8 sps:$4 sm:$0xff]   ;;  %v6304_v3 = vld [vmem:[%s7732_s17 + $0x20] ss:$8 sps:$4 sm:$0xff]  }
0x11d6   : > { %6394 = vpow2.f32 %v2319_v24  ;;  %v2321_v25 = vmul.f32 1.442695, %v2318_v18  ;;  %v6309_v24 = vld [vmem:[%s7732_s17 + $0x34] ss:$8 sps:$4 sm:$0xff]   ;;  %v6307_v18 = vld [vmem:[%s7732_s17 + $0x30] ss:$8 sps:$4 sm:$0xff]  }
0x11d8   : > { %6396 = vpow2.f32 %v2321_v25  ;;  %v6312_v25 = vld [vmem:[%s7732_s17 + $0x44] ss:$8 sps:$4 sm:$0xff]  }
0x11e0   : > { %v6395_v31 = vpop.eup %6394 }
0x11e1   : > { %v2323_v55 = vsel %vm1086_vm2, %v6395_v31, 0.0 }
0x11e2   : > { %v6397_v33 = vpop.eup %6396  ;;  %2324 = vadd.xlane.f32.xlu0 %v2323_v55  ;;  %v6313_v55 = vld [vmem:[%s7732_s17 + $0x50] ss:$8 sps:$4 sm:$0xff]  }
0x11e3   : > { %v2326_v59 = vsel %vm1086_vm2, %v6397_v33, 0.0 }
0x11e4   : > { %2327 = vadd.xlane.f32.xlu1 %v2326_v59  ;;  %v6321_v59 = vld [vmem:[%s7732_s17 + $0x74] ss:$8 sps:$4 sm:$0xff]  }
0x11e8   : > { %2446 = vadd.xlane.f32.xlu1 %v2442_v40 }
0x11ec   : > { %2448 = vadd.xlane.f32.xlu1 %v2443_v6 }
0x11f8   : > { %2334 = vrot.lane.b32.xlu0 %v7822_v49, %s7261_s3 }
0x1210   : > { %v2251_v43 = vpop.f32.mrb[44].mxu1 }
0x1211   : > { %v2258_v45 = vadd.f32 %v2251_v43, %v8042_v32  ;;  %v6054_v46 = vpop.f32.mrb[45].mxu1 }
0x1212   : > { %v2254_v54 = vpop.f32.mrb[46].mxu1 }
0x1213   : > { %v2259_v47 = vadd.f32 %v2254_v54, %v8044_v50  ;;  %v6055_v52 = vpop.f32.mrb[47].mxu1 }
0x126f   : > { %v2325_v27 = vpop.xlane.xlu0 %2324 }
0x1270   : > { %6398 = vrcp.f32 %v2325_v27 }
0x1271   : > { %v2328_v57 = vpop.xlane.xlu1 %2327 }
0x1272   : > { %6400 = vrcp.f32 %v2328_v57 }
0x1273   : > { %v2335_v56 = vpop.permute.xlu0 %2334 }
0x1274   : > { %6063 = vmatpush3.bf16.msra.mxu1 %v2335_v56 }
0x1275   : > { %v2447_v51 = vpop.xlane.xlu1 %2446  ;;  %2613 = vmatprep.subr.bf16.mxu1 %v6300_v61 }
0x1276   : > { %v2455_v7 = vmul.f32 0.0078125, %v2447_v51 }
0x1278   : > { %v2459_v11 = vsub.f32 %v2442_v40, %v2455_v7  ;;  %v6326_v7 = vld [vmem:[%s7738_s14 + $0x50] sm:$0xff]  }
0x1279   : > { %v2449_v10 = vpop.xlane.xlu1 %2448 }
0x127a   : > { %v6399_v30 = vpop.eup %6398  ;;  %v2456_v12 = vmul.f32 0.0078125, %v2449_v10  ;;  %v2463_v1 = vmul.f32 %v2459_v11, %v2459_v11  ;;  %v6331_v10 = vld [vmem:[%s7738_s14 + $0x20] sm:$0xff]  }
0x127b   : > { %v2331_v60 = vmul.f32 %v6399_v30, %v6395_v31  ;;  %v6315_v31 = vld [vmem:[%s7732_s17 + $0x54] ss:$8 sps:$4 sm:$0xff]  }
0x127c   : > { %v6401_v26 = vpop.eup %6400  ;;  %v2460_v14 = vsub.f32 %v2443_v6, %v2456_v12  ;;  %v6333_v12 = vld [vmem:[%s7738_s14 + $0x28] sm:$0xff]  }
0x127d   : > { %v2332_v62 = vmul.f32 %v6401_v26, %v6397_v33  ;;  %v6318_v33 = vld [vmem:[%s7732_s17 + $0x64] ss:$8 sps:$4 sm:$0xff]   ;;  %v2493_v26 = vsub.s32 2, %v7788_v20 }
0x127e   : > { %v2464_v15 = vmul.f32 %v2460_v14, %v2460_v14 }
0x127f   : > { %v2333_v63 = vpack.c.bf16 %v2332_v62, %v2331_v60 }
0x1281   : > { %6065 = vmatmul.mubr.msk.bf16.vlgmr.msra.gmra.mrb[48].mxu1 %vm1086_vm2, %v2333_v63  ;;  %v2494_v63 = vrot.slane %v8081_v29, %v2493_v26 }
0x1282   : > { %2645 = vmatprep.mubr.bf16.mxu1 %v7256_v53  ;;  %2614 = vmatpush1.bf16.msra.mxu1 %v6298_v16 }
0x1283   : > { %2615 = vmatprep.subr.bf16.mxu1 %v6303_v19 }
0x1286   : > { %2616 = vmatpush1.bf16.msra.mxu1 %v6301_v17 }
0x1287   : > { %2617 = vmatprep.subr.bf16.mxu1 %v6306_v22 }
0x128a   : > { %2618 = vmatpush1.bf16.msra.mxu1 %v6304_v3 }
0x128b   : > { %2619 = vmatprep.subr.bf16.mxu1 %v6309_v24 }
0x128e   : > { %2620 = vmatpush1.bf16.msra.mxu1 %v6307_v18 }
0x128f   : > { %2621 = vmatprep.subr.bf16.mxu1 %v6312_v25 }
0x1354   : > { %v2374_v49 = vpop.f32.mrb[48].mxu1 }
0x1355   : > { %v6066_v32 = vpop.f32.mrb[49].mxu1 }
0x1356   : > { %v2377_v0 = vpop.f32.mrb[50].mxu1 }
0x1357   : > { %v2381_v50 = vpack.c.bf16 %v2377_v0, %v2374_v49  ;;  %v6067_v2 = vpop.f32.mrb[51].mxu1  ;;  %v2501_v49 = vsub.s32 3, %v7788_v20 }
0x1359   : > { %6073 = vmatmul.mubr.msk.bf16.vlgmr.msra.gmra.mrb[52].mxu0 %vm1038_vm1, %v2381_v50  ;;  %v2502_v2 = vrot.slane %v8081_v29, %v2501_v49 }
0x142c   : > { %v2419_v58 = vpop.f32.mrb[52].mxu0 }
0x142d   : > { %v2426_v23 = vadd.f32 %v2419_v58, %v2258_v45  ;;  %v6074_v36 = vpop.f32.mrb[53].mxu0 }
0x142e   : > { %v2422_v39 = vpop.f32.mrb[54].mxu0 }
0x142f   : > { %v2440_v5 = vadd.f32 %v2437_v4, %v2426_v23  ;;  %v2427_v37 = vadd.f32 %v2422_v39, %v2259_v47  ;;  %v6075_v42 = vpop.f32.mrb[55].mxu0  ;;  %v6322_v39 = vld [vmem:[%s7738_s14 + $0x40] sm:$0xff]  }
0x1430   : > { %5868 = vmatprep.subr.bf16.mxu0 %v6322_v39  ;;  %v6325_v42 = vld [vmem:[%s7738_s14 + $0x8] sm:$0xff]  }
0x1431   : > { %v2441_v48 = vadd.f32 %v2437_v4, %v2427_v37  ;;  %v2444_v9 = vadd.f32 %v6437_v8, %v2440_v5  ;;  %v6310_v4 = vld [vmem:[%s7732_s17 + $0x40] ss:$8 sps:$4 sm:$0xff]   ;;  %v6329_v8 = vld [vmem:[%s7738_s14 + $0x18] sm:$0xff]  }
0x1432   : > { %2622 = vmatpush1.bf16.msra.mxu1 %v6310_v4  ;;  %v6323_v5 = vld [vmem:[%s7738_s14] sm:$0xff]   ;;  %v6324_v37 = vld [vmem:[%s7738_s14 + $0x48] sm:$0xff]  }
0x1433   : > { %2450 = vadd.xlane.f32.xlu1 %v2444_v9  ;;  %v2445_v44 = vadd.f32 %v6438_v13, %v2441_v48  ;;  %2623 = vmatprep.subr.bf16.mxu1 %v6315_v31  ;;  %v6327_v48 = vld [vmem:[%s7738_s14 + $0x10] sm:$0xff]  }
0x1434   : > { %5869 = vmatpush3.bf16.msra.mxu0 %v6323_v5  ;;  %v6334_v13 = vld [vmem:[%s7738_s14 + $0x70] sm:$0xff]  }
0x1435   : > { %5870 = vmatprep.subr.bf16.mxu0 %v6324_v37 }
0x1436   : > { %2624 = vmatpush1.bf16.msra.mxu1 %v6313_v55 }
0x1437   : > { %2452 = vadd.xlane.f32.xlu1 %v2445_v44  ;;  %2625 = vmatprep.subr.bf16.mxu1 %v6318_v33 }
0x1438   : > { %5871 = vmatpush3.bf16.msra.mxu0 %v6325_v42 }
0x1439   : > { %5872 = vmatprep.subr.bf16.mxu0 %v6326_v7 }
0x143a   : > { %2626 = vmatpush1.bf16.msra.mxu1 %v6316_v34 }
0x143b   : > { %2467 = vadd.xlane.f32.xlu1 %v2463_v1  ;;  %2627 = vmatprep.subr.bf16.mxu1 %v6321_v59  ;;  %v6337_v1 = vld [vmem:[%s7738_s14 + $0x38] sm:$0xff]   ;;  %v2527_v59 = vsub.s32 4, %v7788_v20 }
0x143c   : > { %5873 = vmatpush3.bf16.msra.mxu0 %v6327_v48 }
0x143e   : > { %2628 = vmatpush1.bf16.msra.mxu1 %v6319_v35  ;;  %v2528_v35 = vrot.slane %v8081_v29, %v2527_v59 }
0x143f   : > { %2469 = vadd.xlane.f32.xlu1 %v2464_v15 }
0x14c0   : > { %v2451_v38 = vpop.xlane.xlu1 %2450 }
0x14c1   : > { %v2457_v40 = vmul.f32 0.0078125, %v2451_v38  ;;  %v6439_v38 = vld [vmem:[%s7740_s26 + $0x8] sm:$0xff] }
0x14c3   : > { %v8112_v41 = vsub.f32 %v2444_v9, %v2457_v40  ;;  %v6330_v9 = vld [vmem:[%s7738_s14 + $0x60] sm:$0xff]   ;;  %v2532_v40 = vrot.slane %v6439_v38, %v2527_v59 }
0x14c4   : > { %v2453_v6 = vpop.xlane.xlu1 %2452 }
0x14c5   : > { %v2458_v43 = vmul.f32 0.0078125, %v2453_v6  ;;  %v2465_v45 = vmul.f32 %v8112_v41, %v8112_v41 }
0x14c7   : > { %v8116_v46 = vsub.f32 %v2445_v44, %v2458_v43  ;;  %2471 = vadd.xlane.f32.xlu0 %v2465_v45  ;;  %v6335_v44 = vld [vmem:[%s7738_s14 + $0x30] sm:$0xff]  }
0x14c8   : > { %v2468_v54 = vpop.xlane.xlu1 %2467 }
0x14c9   : > { %v2475_v47 = vmul.f32 0.0078125, %v2468_v54  ;;  %v2466_v52 = vmul.f32 %v8116_v46, %v8116_v46 }
0x14cb   : > { %v2479_v27 = vadd.f32 1e-12, %v2475_v47  ;;  %2473 = vadd.xlane.f32.xlu1 %v2466_v52 }
0x14cc   : > { %v2470_v57 = vpop.xlane.xlu1 %2469 }
0x14cd   : > { %6402 = vrsqrt.f32 %v2479_v27  ;;  %v2476_v56 = vmul.f32 0.0078125, %v2470_v57 }
0x14cf   : > { %v2480_v30 = vadd.f32 1e-12, %v2476_v56 }
0x14d1   : > { %6404 = vrsqrt.f32 %v2480_v30 }
0x14d7   : > { %v6403_v60 = vpop.eup %6402 }
0x14d8   : > { %v2487_v62 = vmul.f32 %v6403_v60, %v2459_v11  ;;  %v6332_v11 = vld [vmem:[%s7738_s14 + $0x68] sm:$0xff]  }
0x14da   : > { %v2495_v50 = vmul.f32 %v2494_v63, %v2487_v62 }
0x14db   : > { %v6405_v32 = vpop.eup %6404 }
0x14dc   : > { %v2488_v0 = vmul.f32 %v6405_v32, %v2460_v14  ;;  %v8124_v58 = vadd.f32 %v2502_v2, %v2495_v50  ;;  %v6336_v14 = vld [vmem:[%s7738_s14 + $0x78] sm:$0xff]  }
0x14de   : > { %v2496_v51 = vmul.f32 %v2494_v63, %v2488_v0 }
0x14e0   : > { %v8126_v23 = vadd.f32 %v2502_v2, %v2496_v51 }
0x14e2   : > { %v2507_v36 = vpack.c.bf16 %v8126_v23, %v8124_v58 }
0x14e4   : > { %2646 = vmatmul.mubr.bf16.vlgmr.msra.gmra.mrb[52].mxu1 %v2507_v36 }
0x14e5   : > { %2655 = vmatprep.mubr.bf16.mxu1 %v7256_v53  ;;  %v6328_v53 = vld [vmem:[%s7738_s14 + $0x58] sm:$0xff]  }
0x14e6   : > { %5874 = vmatprep.subr.bf16.mxu0 %v6328_v53 }
0x14e7   : > { %5875 = vmatpush3.bf16.msra.mxu0 %v6329_v8 }
0x14e8   : > { %5876 = vmatprep.subr.bf16.mxu0 %v6330_v9 }
0x14eb   : > { %5877 = vmatpush3.bf16.msra.mxu0 %v6331_v10 }
0x14ec   : > { %5878 = vmatprep.subr.bf16.mxu0 %v6332_v11 }
0x14ef   : > { %5879 = vmatpush3.bf16.msra.mxu0 %v6333_v12 }
0x14f0   : > { %5880 = vmatprep.subr.bf16.mxu0 %v6334_v13 }
0x14f3   : > { %5881 = vmatpush3.bf16.msra.mxu0 %v6335_v44 }
0x14f4   : > { %5882 = vmatprep.subr.bf16.mxu0 %v6336_v14 }
0x14f7   : > { %5883 = vmatpush3.bf16.msra.mxu0 %v6337_v1 }
0x1554   : > { %v2472_v15 = vpop.xlane.xlu0 %2471 }
0x1555   : > { %v2477_v16 = vmul.f32 0.0078125, %v2472_v15 }
0x1557   : > { %v2481_v61 = vadd.f32 1e-12, %v2477_v16 }
0x1558   : > { %v2474_v17 = vpop.xlane.xlu1 %2473 }
0x1559   : > { %6406 = vrsqrt.f32 %v2481_v61  ;;  %v2478_v19 = vmul.f32 0.0078125, %v2474_v17 }
0x155b   : > { %v2482_v22 = vadd.f32 1e-12, %v2478_v19 }
0x155d   : > { %6408 = vrsqrt.f32 %v2482_v22 }
0x1563   : > { %v6407_v3 = vpop.eup %6406 }
0x1564   : > { %v2489_v24 = vmul.f32 %v6407_v3, %v8112_v41 }
0x1566   : > { %v2497_v4 = vmul.f32 %v2494_v63, %v2489_v24 }
0x1567   : > { %v6409_v18 = vpop.eup %6408 }
0x1568   : > { %v2490_v25 = vmul.f32 %v6409_v18, %v8116_v46  ;;  %v8149_v55 = vadd.f32 %v2502_v2, %v2497_v4 }
0x156a   : > { %v2498_v31 = vmul.f32 %v2494_v63, %v2490_v25 }
0x156c   : > { %v8151_v33 = vadd.f32 %v2502_v2, %v2498_v31 }
0x156e   : > { %v2508_v34 = vpack.c.bf16 %v8151_v33, %v8149_v55 }
0x1570   : > { %2656 = vmatmul.mubr.bf16.gmra.mrb[56].mxu1 %v2508_v34 }
0x15b7   : > { %v2647_v41 = vpop.f32.mrb[52].mxu1 }
0x15b8   : > { %v2648_v6 = vadd.f32 %v2647_v41, %v2528_v35  ;;  %v2649_v43 = vpop.f32.mrb[53].mxu1 }
0x15b9   : > { %v2650_v45 = vadd.f32 %v2649_v43, %v2532_v40  ;;  %v2651_v46 = vpop.f32.mrb[54].mxu1 }
0x15ba   : > { %v2674_v54 = vmul.f32 0.044715, %v2648_v6  ;;  %v2652_v47 = vadd.f32 %v2651_v46, %v2528_v35  ;;  %v2653_v52 = vpop.f32.mrb[55].mxu1  ;;  %v2666_v12 = vmul.f32 0.5, %v2648_v6 }
0x15bb   : > { %v2675_v27 = vmul.f32 0.044715, %v2650_v45  ;;  %v2654_v57 = vadd.f32 %v2653_v52, %v2532_v40  ;;  %v2667_v14 = vmul.f32 0.5, %v2650_v45 }
0x15bc   : > { %v2682_v56 = vmul.f32 %v2674_v54, %v2648_v6  ;;  %v2676_v30 = vmul.f32 0.044715, %v2652_v47  ;;  %v2668_v13 = vmul.f32 0.5, %v2652_v47 }
0x15bd   : > { %v2683_v26 = vmul.f32 %v2675_v27, %v2650_v45  ;;  %v2677_v60 = vmul.f32 0.044715, %v2654_v57  ;;  %v2669_v1 = vmul.f32 0.5, %v2654_v57 }
0x15be   : > { %v2690_v62 = vmul.f32 %v2682_v56, %v2648_v6  ;;  %v2684_v63 = vmul.f32 %v2676_v30, %v2652_v47 }
0x15bf   : > { %v2691_v49 = vmul.f32 %v2683_v26, %v2650_v45  ;;  %v2685_v32 = vmul.f32 %v2677_v60, %v2654_v57 }
0x15c0   : > { %v2698_v0 = vadd.f32 %v2690_v62, %v2648_v6  ;;  %v2692_v50 = vmul.f32 %v2684_v63, %v2652_v47 }
0x15c1   : > { %v2693_v2 = vmul.f32 %v2685_v32, %v2654_v57  ;;  %v2699_v51 = vadd.f32 %v2691_v49, %v2650_v45 }
0x15c2   : > { %v2706_v36 = vmul.f32 0.7978846, %v2698_v0  ;;  %v2700_v39 = vadd.f32 %v2692_v50, %v2652_v47 }
0x15c3   : > { %v2701_v5 = vadd.f32 %v2693_v2, %v2654_v57  ;;  %v2707_v37 = vmul.f32 0.7978846, %v2699_v51 }
0x15c4   : > { %6410 = vtanh.f32 %v2706_v36  ;;  %v2708_v42 = vmul.f32 0.7978846, %v2700_v39 }
0x15c5   : > { %v2709_v7 = vmul.f32 0.7978846, %v2701_v5  ;;  %6412 = vtanh.f32 %v2707_v37 }
0x15c6   : > { %6414 = vtanh.f32 %v2708_v42 }
0x15c7   : > { %6416 = vtanh.f32 %v2709_v7 }
0x15ce   : > { %v6411_v48 = vpop.eup %6410 }
0x15cf   : > { %v6413_v53 = vpop.eup %6412  ;;  %v2722_v8 = vadd.f32 1.0, %v6411_v48 }
0x15d0   : > { %v6415_v9 = vpop.eup %6414  ;;  %v2723_v10 = vadd.f32 1.0, %v6413_v53 }
0x15d1   : > { %v6417_v11 = vpop.eup %6416  ;;  %v2724_v44 = vadd.f32 1.0, %v6415_v9  ;;  %v2730_v16 = vmul.f32 %v2722_v8, %v2666_v12 }
0x15d2   : > { %v2725_v15 = vadd.f32 1.0, %v6417_v11  ;;  %v2731_v17 = vmul.f32 %v2723_v10, %v2667_v14 }
0x15d3   : > { %v2732_v61 = vmul.f32 %v2724_v44, %v2668_v13  ;;  %v2776_v44 = vsub.s32 5, %v7788_v20 }
0x15d4   : > { %v2733_v19 = vmul.f32 %v2725_v15, %v2669_v1 }
0x15d5   : > { %v2738_v22 = vpack.c.bf16 %v2732_v61, %v2730_v16  ;;  %v2777_v1 = vrot.slane %v8081_v29, %v2776_v44 }
0x15d6   : > { %v2739_v3 = vpack.c.bf16 %v2733_v19, %v2731_v17 }
0x15d8   : > { %2906 = vmatprep.mubr.bf16.mxu0 %v2739_v3 }
0x15d9   : > { %2907 = vmatmul.mubr.bf16.vlgmr.msra.gmra.mrb[56].mxu0 %v2738_v22 }
0x1643   : > { %v2657_v24 = vpop.f32.mrb[56].mxu1 }
0x1644   : > { %v2658_v18 = vadd.f32 %v2657_v24, %v2528_v35  ;;  %v2659_v25 = vpop.f32.mrb[57].mxu1 }
0x1645   : > { %v2660_v4 = vadd.f32 %v2659_v25, %v2532_v40  ;;  %v2661_v31 = vpop.f32.mrb[58].mxu1 }
0x1646   : > { %v2678_v34 = vmul.f32 0.044715, %v2658_v18  ;;  %v2662_v59 = vadd.f32 %v2661_v31, %v2528_v35  ;;  %v2663_v38 = vpop.f32.mrb[59].mxu1  ;;  %v2670_v5 = vmul.f32 0.5, %v2658_v18 }
0x1647   : > { %v2679_v41 = vmul.f32 0.044715, %v2660_v4  ;;  %v2664_v6 = vadd.f32 %v2663_v38, %v2532_v40  ;;  %v2671_v7 = vmul.f32 0.5, %v2660_v4 }
0x1648   : > { %v2686_v43 = vmul.f32 %v2678_v34, %v2658_v18  ;;  %v2680_v45 = vmul.f32 0.044715, %v2662_v59  ;;  %v2672_v37 = vmul.f32 0.5, %v2662_v59 }
0x1649   : > { %v2687_v46 = vmul.f32 %v2679_v41, %v2660_v4  ;;  %v2681_v54 = vmul.f32 0.044715, %v2664_v6  ;;  %v2673_v48 = vmul.f32 0.5, %v2664_v6 }
0x164a   : > { %v2694_v47 = vmul.f32 %v2686_v43, %v2658_v18  ;;  %v2688_v52 = vmul.f32 %v2680_v45, %v2662_v59 }
0x164b   : > { %v2695_v27 = vmul.f32 %v2687_v46, %v2660_v4  ;;  %v2689_v57 = vmul.f32 %v2681_v54, %v2664_v6 }
0x164c   : > { %v2696_v56 = vmul.f32 %v2688_v52, %v2662_v59  ;;  %v2702_v30 = vadd.f32 %v2694_v47, %v2658_v18 }
0x164d   : > { %v2697_v26 = vmul.f32 %v2689_v57, %v2664_v6  ;;  %v2703_v60 = vadd.f32 %v2695_v27, %v2660_v4 }
0x164e   : > { %v2704_v62 = vadd.f32 %v2696_v56, %v2662_v59  ;;  %v2710_v63 = vmul.f32 0.7978846, %v2702_v30 }
0x164f   : > { %v2705_v49 = vadd.f32 %v2697_v26, %v2664_v6  ;;  %v2711_v32 = vmul.f32 0.7978846, %v2703_v60 }
0x1650   : > { %v2712_v35 = vmul.f32 0.7978846, %v2704_v62  ;;  %6418 = vtanh.f32 %v2710_v63 }
0x1651   : > { %v2713_v0 = vmul.f32 0.7978846, %v2705_v49  ;;  %6420 = vtanh.f32 %v2711_v32 }
0x1652   : > { %6422 = vtanh.f32 %v2712_v35 }
0x1653   : > { %6424 = vtanh.f32 %v2713_v0 }
0x165a   : > { %v6419_v40 = vpop.eup %6418 }
0x165b   : > { %v6421_v50 = vpop.eup %6420  ;;  %v2726_v2 = vadd.f32 1.0, %v6419_v40 }
0x165c   : > { %v6423_v51 = vpop.eup %6422  ;;  %v2727_v36 = vadd.f32 1.0, %v6421_v50 }
0x165d   : > { %v6425_v39 = vpop.eup %6424  ;;  %v2728_v42 = vadd.f32 1.0, %v6423_v51  ;;  %v2734_v8 = vmul.f32 %v2726_v2, %v2670_v5  ;;  %v2973_v2 = vsub.s32 6, %v7788_v20  ;;  %v2981_v51 = vsub.s32 7, %v7788_v20 }
0x165e   : > { %v2729_v53 = vadd.f32 1.0, %v6425_v39  ;;  %v2735_v10 = vmul.f32 %v2727_v36, %v2671_v7 }
0x165f   : > { %v2736_v9 = vmul.f32 %v2728_v42, %v2672_v37  ;;  %v2974_v36 = vrot.slane %v8081_v29, %v2973_v2  ;;  %v2982_v5 = vrot.slane %v8081_v29, %v2981_v51 }
0x1660   : > { %v2737_v11 = vmul.f32 %v2729_v53, %v2673_v48 }
0x1661   : > { %v2740_v12 = vpack.c.bf16 %v2736_v9, %v2734_v8 }
0x1662   : > { %v2741_v13 = vpack.c.bf16 %v2737_v11, %v2735_v10 }
0x1664   : > { %2914 = vmatprep.mubr.bf16.mxu0 %v2741_v13 }
0x1665   : > { %2915 = vmatmul.mubr.bf16.gmra.mrb[60].mxu0 %v2740_v12 }
0x16ac   : > { %v5884_v14 = vpop.f32.mrb[56].mxu0 }
0x16ad   : > { %v5885_v15 = vpop.f32.mrb[57].mxu0 }
0x16ae   : > { %v5886_v16 = vadd.f32 %v5885_v15, %v5884_v14  ;;  %v5887_v61 = vpop.f32.mrb[58].mxu0 }
0x16af   : > { %v5888_v17 = vpop.f32.mrb[59].mxu0 }
0x16b0   : > { %v2909_v19 = vadd.f32 %v5886_v16, %v2777_v1  ;;  %v5889_v22 = vadd.f32 %v5888_v17, %v5887_v61 }
0x16b2   : > { %v2912_v3 = vadd.f32 %v5889_v22, %v2777_v1  ;;  %v2923_v24 = vadd.f32 %v2909_v19, %v8124_v58 }
0x16b4   : > { %2927 = vadd.xlane.f32.xlu1 %v2923_v24  ;;  %v2924_v18 = vadd.f32 %v2912_v3, %v8126_v23  ;;  %v6440_v3 = vld [vmem:[#allocation20 + $0x4] ss:$8 sps:$4 sm:$0xff] (!%p5517_p6)  }
0x16b5   : > { %4815 = vmatprep.subr.bf16.mxu1 (!%p5517_p6), %v6440_v3  ;;  %v6498_v3 = vld [vmem:[#allocation20 + $0x90] ss:$8 sps:$4 sm:$0xff] (!%p5517_p6)  }
0x16b8   : > { %2929 = vadd.xlane.f32.xlu1 %v2924_v18 }
0x1738   : > { %v5890_v25 = vpop.f32.mrb[60].mxu0 }
0x1739   : > { %v5891_v4 = vpop.f32.mrb[61].mxu0 }
0x173a   : > { %v5892_v31 = vadd.f32 %v5891_v4, %v5890_v25  ;;  %v5893_v34 = vpop.f32.mrb[62].mxu0  ;;  %v6444_v4 = vld [vmem:[#allocation20] ss:$8 sps:$4 sm:$0xff] (!%p5517_p6)  }
0x173b   : > { %v5894_v59 = vpop.f32.mrb[63].mxu0  ;;  %4816 = vmatpush1.bf16.msra.mxu1 (!%p5517_p6), %v6444_v4  ;;  %v6504_v4 = vld [vmem:[#allocation20 + $0xa0] ss:$8 sps:$4 sm:$0xff] (!%p5517_p6)  }
0x173c   : > { %v2917_v38 = vadd.f32 %v5892_v31, %v2777_v1  ;;  %v5895_v41 = vadd.f32 %v5894_v59, %v5893_v34  ;;  %v6445_v31 = vld [vmem:[#allocation20 + $0x400] ss:$8 sps:$4 sm:$0xff] (!%p5517_p6)   ;;  %v6446_v34 = vld [vmem:[#allocation20 + $0x14] ss:$8 sps:$4 sm:$0xff] (!%p5517_p6)  }
0x173d   : > { %4817 = vmatprep.subr.bf16.mxu1 (!%p5517_p6), %v6446_v34  ;;  %v6506_v34 = vld [vmem:[#allocation20 + $0xb4] ss:$8 sps:$4 sm:$0xff] (!%p5517_p6)  }
0x173e   : > { %v2920_v6 = vadd.f32 %v5895_v41, %v2777_v1  ;;  %v2925_v43 = vadd.f32 %v2917_v38, %v8149_v55  ;;  %v6448_v38 = vld [vmem:[#allocation20 + $0x414] ss:$8 sps:$4 sm:$0xff] (!%p5517_p6)   ;;  %v6450_v41 = vld [vmem:[#allocation20 + $0x10] ss:$8 sps:$4 sm:$0xff] (!%p5517_p6)  }
0x173f   : > { %4818 = vmatpush1.bf16.msra.mxu1 (!%p5517_p6), %v6450_v41  ;;  %v6510_v41 = vld [vmem:[#allocation20 + $0xb0] ss:$8 sps:$4 sm:$0xff] (!%p5517_p6)  }
0x1740   : > { %2931 = vadd.xlane.f32.xlu1 %v2925_v43  ;;  %v2926_v54 = vadd.f32 %v2920_v6, %v8151_v33  ;;  %v6451_v6 = vld [vmem:[#allocation20 + $0x410] ss:$8 sps:$4 sm:$0xff] (!%p5517_p6)  }
0x1741   : > { %v2928_v45 = vpop.xlane.xlu1 %2927 }
0x1742   : > { %v2935_v46 = vmul.f32 0.0078125, %v2928_v45  ;;  %v6452_v45 = vld [vmem:[#allocation20 + $0x24] ss:$8 sps:$4 sm:$0xff] (!%p5517_p6)  }
0x1743   : > { %4819 = vmatprep.subr.bf16.mxu1 (!%p5517_p6), %v6452_v45  ;;  %v6511_v45 = vld [vmem:[#allocation20 + $0x4b0] ss:$8 sps:$4 sm:$0xff] (!%p5517_p6)  }
0x1744   : > { %v2939_v58 = vsub.f32 %v2923_v24, %v2935_v46  ;;  %2933 = vadd.xlane.f32.xlu1 %v2926_v54  ;;  %v6442_v24 = vld [vmem:[#allocation20 + $0x404] ss:$8 sps:$4 sm:$0xff] (!%p5517_p6)  }
0x1745   : > { %v2930_v47 = vpop.xlane.xlu1 %2929  ;;  %4979 = vmatprep.subr.bf16.mxu0 (!%p5517_p6), %v6442_v24  ;;  %v6454_v46 = vld [vmem:[#allocation20 + $0x424] ss:$8 sps:$4 sm:$0xff] (!%p5517_p6)   ;;  %v6499_v24 = vld [vmem:[#allocation20 + $0x490] ss:$8 sps:$4 sm:$0xff] (!%p5517_p6)  }
0x1746   : > { %v2936_v23 = vmul.f32 0.0078125, %v2930_v47  ;;  %v2943_v52 = vmul.f32 %v2939_v58, %v2939_v58  ;;  %4980 = vmatpush1.bf16.msra.mxu0 (!%p5517_p6), %v6445_v31  ;;  %v6505_v31 = vld [vmem:[#allocation20 + $0x4a0] ss:$8 sps:$4 sm:$0xff] (!%p5517_p6)  }
0x1747   : > { %4981 = vmatprep.subr.bf16.mxu0 (!%p5517_p6), %v6448_v38 }
0x1748   : > { %v2940_v27 = vsub.f32 %v2924_v18, %v2936_v23  ;;  %2947 = vadd.xlane.f32.xlu1 %v2943_v52  ;;  %v7262_v18 = vmov (!%p5517_p6), 1983009808  }
0x1749   : > { %v2998_v25 = vunpack.c.l.s4 (!%p5517_p6), %v7262_v18  ;;  %v6500_v18 = vld [vmem:[#allocation20 + $0xa4] ss:$8 sps:$4 sm:$0xff] (!%p5517_p6)  }
0x174a   : > { %v2944_v57 = vmul.f32 %v2940_v27, %v2940_v27  ;;  %4982 = vmatpush1.bf16.msra.mxu0 (!%p5517_p6), %v6451_v6 }
0x174b   : > { %v2999_v59 = vunpack.c.0.s8 (!%p5517_p6), %v2998_v25  ;;  %4983 = vmatprep.subr.bf16.mxu0 (!%p5517_p6), %v6454_v46  ;;  %v6502_v25 = vld [vmem:[#allocation20 + $0x4a4] ss:$8 sps:$4 sm:$0xff] (!%p5517_p6)  }
0x174c   : > { %2949 = vadd.xlane.f32.xlu1 %v2944_v57  ;;  %v6460_v57 = vld [vmem:[#allocation20 + $0x434] ss:$8 sps:$4 sm:$0xff] (!%p5517_p6)  }
0x17cd   : > { %v2932_v56 = vpop.xlane.xlu1 %2931 }
0x17ce   : > { %v2937_v30 = vmul.f32 0.0078125, %v2932_v56 }
0x17d0   : > { %v2941_v26 = vsub.f32 %v2925_v43, %v2937_v30  ;;  %v8186_v43 = vsub.s32 (!%p5517_p6), %v2999_v59, %v7788_v20  ;;  %v6458_v20 = vld [vmem:[#allocation20 + $0x34] ss:$8 sps:$4 sm:$0xff] (!%p5517_p6)  }
0x17d1   : > { %v2934_v60 = vpop.xlane.xlu1 %2933  ;;  %v6508_v59 = vld [vmem:[#allocation20 + $0x4b4] ss:$8 sps:$4 sm:$0xff] (!%p5517_p6)  }
0x17d2   : > { %v2938_v62 = vmul.f32 0.0078125, %v2934_v60  ;;  %v2945_v55 = vmul.f32 %v2941_v26, %v2941_v26 }
0x17d4   : > { %v2942_v63 = vsub.f32 %v2926_v54, %v2938_v62  ;;  %2951 = vadd.xlane.f32.xlu0 %v2945_v55  ;;  %v6456_v54 = vld [vmem:[#allocation20 + $0x20] ss:$8 sps:$4 sm:$0xff] (!%p5517_p6)  }
0x17d5   : > { %v2948_v49 = vpop.xlane.xlu1 %2947  ;;  %4820 = vmatpush1.bf16.msra.mxu1 (!%p5517_p6), %v6456_v54  ;;  %v6512_v54 = vld [vmem:[#allocation20 + $0xc4] ss:$8 sps:$4 sm:$0xff] (!%p5517_p6)  }
0x17d6   : > { %v2955_v32 = vmul.f32 0.0078125, %v2948_v49  ;;  %v2946_v33 = vmul.f32 %v2942_v63, %v2942_v63  ;;  %v6462_v49 = vld [vmem:[#allocation20 + $0x30] ss:$8 sps:$4 sm:$0xff] (!%p5517_p6)   ;;  %4821 = vmatprep.subr.bf16.mxu1 (!%p5517_p6), %v6458_v20 }
0x17d8   : > { %v2959_v35 = vadd.f32 1e-12, %v2955_v32  ;;  %2953 = vadd.xlane.f32.xlu1 %v2946_v33 }
0x17d9   : > { %v2950_v0 = vpop.xlane.xlu1 %2949  ;;  %4822 = vmatpush1.bf16.msra.mxu1 (!%p5517_p6), %v6462_v49 }
0x17da   : > { %6426 = vrsqrt.f32 %v2959_v35  ;;  %v2956_v40 = vmul.f32 0.0078125, %v2950_v0  ;;  %v6463_v35 = vld [vmem:[#allocation20 + $0x430] ss:$8 sps:$4 sm:$0xff] (!%p5517_p6)   ;;  %v6464_v0 = vld [vmem:[#allocation20 + $0x44] ss:$8 sps:$4 sm:$0xff] (!%p5517_p6)  }
0x17db   : > { %4823 = vmatprep.subr.bf16.mxu1 (!%p5517_p6), %v6464_v0 }
0x17dc   : > { %v2960_v50 = vadd.f32 1e-12, %v2956_v40 }
0x17de   : > { %6428 = vrsqrt.f32 %v2960_v50  ;;  %v6466_v50 = vld [vmem:[#allocation20 + $0x444] ss:$8 sps:$4 sm:$0xff] (!%p5517_p6)  }
0x17e4   : > { %v6427_v39 = vpop.eup %6426 }
0x17e5   : > { %v2967_v37 = vmul.f32 %v6427_v39, %v2939_v58  ;;  %v6457_v58 = vld [vmem:[#allocation20 + $0x420] ss:$8 sps:$4 sm:$0xff] (!%p5517_p6)  }
0x17e6   : > { %4984 = vmatpush1.bf16.msra.mxu0 (!%p5517_p6), %v6457_v58  ;;  %v6469_v39 = vld [vmem:[#allocation20 + $0x440] ss:$8 sps:$4 sm:$0xff] (!%p5517_p6)   ;;  %v6514_v58 = vld [vmem:[#allocation20 + $0x4c4] ss:$8 sps:$4 sm:$0xff] (!%p5517_p6)  }
0x17e7   : > { %v2975_v42 = vmul.f32 %v2974_v36, %v2967_v37  ;;  %4985 = vmatprep.subr.bf16.mxu0 (!%p5517_p6), %v6460_v57  ;;  %v6472_v37 = vld [vmem:[#allocation20 + $0x454] ss:$8 sps:$4 sm:$0xff] (!%p5517_p6)  }
0x17e8   : > { %v6429_v7 = vpop.eup %6428 }
0x17e9   : > { %v8168_v48 = vadd.f32 %v2982_v5, %v2975_v42  ;;  %v2968_v53 = vmul.f32 %v6429_v7, %v2940_v27  ;;  %v6474_v42 = vld [vmem:[#allocation20 + $0x50] ss:$8 sps:$4 sm:$0xff] (!%p5517_p6)  }
0x17ea   : > { %4986 = vmatpush1.bf16.msra.mxu0 (!%p5517_p6), %v6463_v35  ;;  %v6475_v7 = vld [vmem:[#allocation20 + $0x450] ss:$8 sps:$4 sm:$0xff] (!%p5517_p6)  }
0x17eb   : > { %2987 = vst [vmem:[#allocation2] sm:$0xff] %v8168_v48  ;;  %v2976_v8 = vmul.f32 %v2974_v36, %v2968_v53  ;;  %2995 = vst [vmem:[#allocation4] sm:$0x1] (!%p5517_p6), %v8168_v48  ;;  %v3003_v47 = vrot.slane (!%p5517_p6), %v8168_v48, %v8186_v43  ;;  %4987 = vmatprep.subr.bf16.mxu0 (!%p5517_p6), %v6466_v50  ;;  %v6476_v53 = vld [vmem:[#allocation20 + $0x64] ss:$8 sps:$4 sm:$0xff] (!%p5517_p6)  }
0x17ec   : > { %v6523_v35 = vld [vmem:[#allocation20 + $0x4d0] ss:$8 sps:$4 sm:$0xff] (!%p5517_p6)  }
0x17ed   : > { %v8171_v9 = vadd.f32 %v2982_v5, %v2976_v8  ;;  %v5518_v56 = vrot.slane (!%p5517_p6), %v3003_v47, 9  ;;  %v3008_v30 = vcombine.high (!%p5517_p6), %v3003_v47, %v3003_v47  ;;  %v6478_v8 = vld [vmem:[#allocation20 + $0x464] ss:$8 sps:$4 sm:$0xff] (!%p5517_p6)  }
0x17ee   : > { %4988 = vmatpush1.bf16.msra.mxu0 (!%p5517_p6), %v6469_v39 }
0x17ef   : > { %2988 = vst [vmem:[#allocation2 + $0x8] sm:$0xff] %v8171_v9  ;;  %3036 = vst [vmem:[#allocation4 + $0x10] sm:$0x1] (!%p5517_p6), %v8171_v9  ;;  %v3044_v52 = vrot.slane (!%p5517_p6), %v8171_v9, %v8186_v43  ;;  %v5519_v32 = vrot.slane (!%p5517_p6), %v3008_v30, 9  ;;  %4989 = vmatprep.subr.bf16.mxu0 (!%p5517_p6), %v6472_v37 }
0x17f0   : > { %3007 = vst [vmem:[#allocation4 + $0x2] sm:$0x1] (!%p5517_p6), %v5518_v56  ;;  %3010 = vst [vmem:[#allocation4 + $0x4] sm:$0x1] (!%p5517_p6), %v3008_v30  ;;  %v6516_v56 = vld [vmem:[#allocation20 + $0xc0] ss:$8 sps:$4 sm:$0xff] (!%p5517_p6)  }
0x17f1   : > { %v5523_v62 = vrot.slane (!%p5517_p6), %v3044_v52, 9  ;;  %v3049_v55 = vcombine.high (!%p5517_p6), %v3044_v52, %v3044_v52  ;;  %3014 = vst [vmem:[#allocation4 + $0x6] sm:$0x1] (!%p5517_p6), %v5519_v32  ;;  %v3015_v52 = vcombine.high (!%p5517_p6), %v8168_v48, %v8168_v48  ;;  %v6517_v30 = vld [vmem:[#allocation20 + $0x4c0] ss:$8 sps:$4 sm:$0xff] (!%p5517_p6)  }
0x17f2   : > { %4990 = vmatpush1.bf16.msra.mxu0 (!%p5517_p6), %v6475_v7 }
0x17f3   : > { %3048 = vst [vmem:[#allocation4 + $0x12] sm:$0x1] (!%p5517_p6), %v5523_v62  ;;  %3051 = vst [vmem:[#allocation4 + $0x14] sm:$0x1] (!%p5517_p6), %v3049_v55  ;;  %v5524_v40 = vrot.slane (!%p5517_p6), %v3049_v55, 9  ;;  %4991 = vmatprep.subr.bf16.mxu0 (!%p5517_p6), %v6478_v8 }
0x17f4   : > { %5520 = vst.sshfl [vmem:[#allocation4 + $0x8] sm:$0x1 pattern:$0x76325410] (!%p5517_p6), %v3015_v52  ;;  %v6520_v62 = vld [vmem:[#allocation20 + $0x4d4] ss:$8 sps:$4 sm:$0xff] (!%p5517_p6)  }
0x17f5   : > { %3055 = vst [vmem:[#allocation4 + $0x16] sm:$0x1] (!%p5517_p6), %v5524_v40  ;;  %v6528_v8 = vld [vmem:[#allocation20 + $0xe0] ss:$8 sps:$4 sm:$0xff] (!%p5517_p6)  }
0x1861   : > { %v2952_v10 = vpop.xlane.xlu0 %2951 }
0x1862   : > { %v2957_v11 = vmul.f32 0.0078125, %v2952_v10  ;;  %v6480_v10 = vld [vmem:[#allocation20 + $0x60] ss:$8 sps:$4 sm:$0xff] (!%p5517_p6)  }
0x1864   : > { %v2961_v12 = vadd.f32 1e-12, %v2957_v11  ;;  %v6481_v11 = vld [vmem:[#allocation20 + $0x460] ss:$8 sps:$4 sm:$0xff] (!%p5517_p6)  }
0x1865   : > { %v2954_v13 = vpop.xlane.xlu1 %2953  ;;  %4992 = vmatpush1.bf16.msra.mxu0 (!%p5517_p6), %v6481_v11 }
0x1866   : > { %6430 = vrsqrt.f32 %v2961_v12  ;;  %v2958_v44 = vmul.f32 0.0078125, %v2954_v13  ;;  %v6482_v12 = vld [vmem:[#allocation20 + $0x74] ss:$8 sps:$4 sm:$0xff] (!%p5517_p6)  }
0x1867   : > { %v6484_v13 = vld [vmem:[#allocation20 + $0x474] ss:$8 sps:$4 sm:$0xff] (!%p5517_p6)  }
0x1868   : > { %v2962_v29 = vadd.f32 1e-12, %v2958_v44  ;;  %v6486_v44 = vld [vmem:[#allocation20 + $0x70] ss:$8 sps:$4 sm:$0xff] (!%p5517_p6)   ;;  %4993 = vmatprep.subr.bf16.mxu0 (!%p5517_p6), %v6484_v13  ;;  %v6532_v13 = vld [vmem:[#allocation20 + $0x4f4] ss:$8 sps:$4 sm:$0xff] (!%p5517_p6)  }
0x186a   : > { %6432 = vrsqrt.f32 %v2962_v29  ;;  %v6487_v29 = vld [vmem:[#allocation20 + $0x470] ss:$8 sps:$4 sm:$0xff] (!%p5517_p6)  }
0x186b   : > { %4994 = vmatpush1.bf16.msra.mxu0 (!%p5517_p6), %v6487_v29 }
0x1870   : > { %v6431_v14 = vpop.eup %6430 }
0x1871   : > { %v2969_v1 = vmul.f32 %v6431_v14, %v2941_v26  ;;  %v6488_v14 = vld [vmem:[#allocation20 + $0x84] ss:$8 sps:$4 sm:$0xff] (!%p5517_p6)  }
0x1873   : > { %v2977_v15 = vmul.f32 %v2974_v36, %v2969_v1  ;;  %v6490_v1 = vld [vmem:[#allocation20 + $0x484] ss:$8 sps:$4 sm:$0xff] (!%p5517_p6)  }
0x1874   : > { %v6433_v16 = vpop.eup %6432  ;;  %4995 = vmatprep.subr.bf16.mxu0 (!%p5517_p6), %v6490_v1  ;;  %v6534_v1 = vld [vmem:[#allocation20 + $0xf0] ss:$8 sps:$4 sm:$0xff] (!%p5517_p6)  }
0x1875   : > { %v8174_v61 = vadd.f32 %v2982_v5, %v2977_v15  ;;  %v2970_v17 = vmul.f32 %v6433_v16, %v2942_v63  ;;  %2994 = sbr.rel (%p5517_p6) target bundleno = 6924 (0x1b0c), region = 120  ;;  %v6492_v15 = vld [vmem:[#allocation20 + $0x80] ss:$8 sps:$4 sm:$0xff] (!%p5517_p6)  }
0x1876   : > { %v6493_v16 = vld [vmem:[#allocation20 + $0x480] ss:$8 sps:$4 sm:$0xff] (!%p5517_p6)  }
0x1877   : > { %2989 = vst [vmem:[#allocation2 + $0x10] sm:$0xff] %v8174_v61  ;;  %v2978_v19 = vmul.f32 %v2974_v36, %v2970_v17  ;;  %3077 = vst [vmem:[#allocation4 + $0x1] sm:$0x1] (!%p5517_p6), %v8174_v61  ;;  %v3085_v23 = vrot.slane (!%p5517_p6), %v8174_v61, %v8186_v43  ;;  %v6468_v36 = vld [vmem:[#allocation20 + $0x40] ss:$8 sps:$4 sm:$0xff] (!%p5517_p6)   ;;  %4996 = vmatpush1.bf16.msra.mxu0 (!%p5517_p6), %v6493_v16 }
0x1878   : > { %4824 = vmatpush1.bf16.msra.mxu1 (!%p5517_p6), %v6468_v36  ;;  %v6494_v17 = vld [vmem:[#allocation20 + $0x94] ss:$8 sps:$4 sm:$0xff] (!%p5517_p6)   ;;  %v6539_v16 = vld [vmem:[#allocation20 + $0x104] ss:$8 sps:$4 sm:$0xff] (!%p5517_p6)  }
0x1879   : > { %v8177_v22 = vadd.f32 %v2982_v5, %v2978_v19  ;;  %v5528_v26 = vrot.slane (!%p5517_p6), %v3085_v23, 9  ;;  %v3090_v60 = vcombine.high (!%p5517_p6), %v3085_v23, %v3085_v23  ;;  %v6470_v5 = vld [vmem:[#allocation20 + $0x54] ss:$8 sps:$4 sm:$0xff] (!%p5517_p6)  }
0x187a   : > { %4825 = vmatprep.subr.bf16.mxu1 (!%p5517_p6), %v6470_v5  ;;  %v6496_v19 = vld [vmem:[#allocation20 + $0x494] ss:$8 sps:$4 sm:$0xff] (!%p5517_p6)  }
0x187b   : > { %2990 = vst [vmem:[#allocation2 + $0x18] sm:$0xff] %v8177_v22  ;;  %3118 = vst [vmem:[#allocation4 + $0x11] sm:$0x1] (!%p5517_p6), %v8177_v22  ;;  %v3126_v27 = vrot.slane (!%p5517_p6), %v8177_v22, %v8186_v43  ;;  %v5529_v33 = vrot.slane (!%p5517_p6), %v3090_v60, 9  ;;  %4997 = vmatprep.subr.bf16.mxu0 (!%p5517_p6), %v6496_v19  ;;  %v3138_v32 = vcombine.high (!%p5517_p6), %v8177_v22, %v8177_v22 }
0x187c   : > { %3089 = vst [vmem:[#allocation4 + $0x3] sm:$0x1] %v5528_v26  ;;  %3092 = vst [vmem:[#allocation4 + $0x5] sm:$0x1] %v3090_v60  ;;  %4826 = vmatpush1.bf16.msra.mxu1 %v6474_v42  ;;  %4998 = vmatpush1.bf16.msra.mxu0 %v6499_v24  ;;  %v3022_v26 = vrot.slane %v3015_v52, %v8186_v43  ;;  %v6518_v60 = vld [vmem:[#allocation20 + $0xd4] ss:$8 sps:$4 sm:$0xff]  }
0x187d   : > { %v3131_v63 = vcombine.high %v3126_v27, %v3126_v27  ;;  %3096 = vst [vmem:[#allocation4 + $0x7] sm:$0x1] %v5529_v33  ;;  %v5533_v2 = vrot.slane %v3126_v27, 9  ;;  %4827 = vmatprep.subr.bf16.mxu1 %v6476_v53  ;;  %4999 = vmatprep.subr.bf16.mxu0 %v6502_v25  ;;  %v3097_v27 = vcombine.high %v8174_v61, %v8174_v61  ;;  %v6522_v33 = vld [vmem:[#allocation20 + $0xd0] ss:$8 sps:$4 sm:$0xff]  }
0x187e   : > { %v3029_v55 = vcombine.high %v3022_v26, %v3022_v26  ;;  %v5521_v49 = vrot.slane %v3022_v26, 9  ;;  %v3145_v22 = vrot.slane %v3138_v32, %v8186_v43  ;;  %5535 = vst.sshfl [vmem:[#allocation4 + $0x19] sm:$0x1 pattern:$0x76325410] %v3138_v32 }
0x187f   : > { %3133 = vst [vmem:[#allocation4 + $0x15] sm:$0x1] %v3131_v63  ;;  %v5534_v51 = vrot.slane %v3131_v63, 9  ;;  %3130 = vst [vmem:[#allocation4 + $0x13] sm:$0x1] %v5533_v2  ;;  %v3104_v61 = vrot.slane %v3097_v27, %v8186_v43  ;;  %v3056_v63 = vcombine.high %v8171_v9, %v8171_v9 }
0x1880   : > { %4828 = vmatpush1.bf16.msra.mxu1 %v6480_v10  ;;  %5000 = vmatpush1.bf16.msra.mxu0 %v6505_v31  ;;  %5530 = vst.sshfl [vmem:[#allocation4 + $0x9] sm:$0x1 pattern:$0x76325410] %v3097_v27  ;;  %3031 = vst [vmem:[#allocation4 + $0xc] sm:$0x1] %v3029_v55  ;;  %v3152_v53 = vcombine.high %v3145_v22, %v3145_v22 }
0x1881   : > { %3137 = vst [vmem:[#allocation4 + $0x17] sm:$0x1] %v5534_v51  ;;  %4829 = vmatprep.subr.bf16.mxu1 %v6482_v12  ;;  %5001 = vmatprep.subr.bf16.mxu0 %v6508_v59  ;;  %v5522_v0 = vrot.slane %v3029_v55, 9  ;;  %v3111_v40 = vcombine.high %v3104_v61, %v3104_v61  ;;  %v3063_v50 = vrot.slane %v3056_v63, %v8186_v43  ;;  %v6524_v2 = vld [vmem:[#allocation20 + $0xe4] ss:$8 sps:$4 sm:$0xff]   ;;  %v5531_v36 = vrot.slane %v3104_v61, 9 }
0x1882   : > { %5525 = vst.sshfl [vmem:[#allocation4 + $0x18] sm:$0x1 pattern:$0x76325410] %v3056_v63  ;;  %v6526_v51 = vld [vmem:[#allocation20 + $0x4e4] ss:$8 sps:$4 sm:$0xff]  }
0x1883   : > { %3028 = vst [vmem:[#allocation4 + $0xa] sm:$0x1] %v5521_v49  ;;  %3035 = vst [vmem:[#allocation4 + $0xe] sm:$0x1] %v5522_v0  ;;  %v5532_v5 = vrot.slane %v3111_v40, 9  ;;  %v5526_v37 = vrot.slane %v3063_v50, 9  ;;  %v3070_v42 = vcombine.high %v3063_v50, %v3063_v50 }
0x1884   : > { %4830 = vmatpush1.bf16.msra.mxu1 %v6486_v44  ;;  %v8196_v38 = vld [vmem:[#allocation4] sm:$0xff]  ;;  %5002 = vmatpush1.bf16.msra.mxu0 %v6511_v45  ;;  %3113 = vst [vmem:[#allocation4 + $0xd] sm:$0x1] %v3111_v40  ;;  %3110 = vst [vmem:[#allocation4 + $0xb] sm:$0x1] %v5531_v36  ;;  %v5536_v7 = vrot.slane %v3145_v22, 9 }
0x1885   : > { %4831 = vmatprep.subr.bf16.mxu1 %v6488_v14  ;;  %v8200_v6 = vrot.slane %v8196_v38, %v8186_v43  ;;  %5003 = vmatprep.subr.bf16.mxu0 %v6514_v58  ;;  %v3167_v9 = vcombine.high %v8196_v38, %v8196_v38  ;;  %v6529_v10 = vld [vmem:[#allocation20 + $0x4e0] ss:$8 sps:$4 sm:$0xff]   ;;  %3117 = vst [vmem:[#allocation4 + $0xf] sm:$0x1] %v5532_v5  ;;  %3069 = vst [vmem:[#allocation4 + $0x1a] sm:$0x1] %v5526_v37 }
0x1886   : > { %3072 = vst [vmem:[#allocation4 + $0x1c] sm:$0x1] %v3070_v42  ;;  %v5527_v11 = vrot.slane %v3070_v42, 9  ;;  %v6530_v12 = vld [vmem:[#allocation20 + $0xf4] ss:$8 sps:$4 sm:$0xff]   ;;  %v5537_v44 = vrot.slane %v3152_v53, 9 }
0x1887   : > { %v3182_v47 = vcombine.high %v8200_v6, %v8200_v6  ;;  %3151 = vst [vmem:[#allocation4 + $0x1b] sm:$0x1] %v5536_v7  ;;  %3154 = vst [vmem:[#allocation4 + $0x1d] sm:$0x1] %v3152_v53  ;;  %v8229_v29 = vrot.slane %v3167_v9, %v8186_v43  ;;  %v3251_v24 = vpack.c.bf16 %v8200_v6, %v8200_v6  ;;  %v6537_v25 = vld [vmem:[#allocation20 + $0x100] ss:$8 sps:$4 sm:$0xff]  }
0x1888   : > { %4832 = vmatpush1.bf16.msra.mxu1 %v6492_v15  ;;  %v8202_v46 = vld [vmem:[#allocation4 + $0x10] sm:$0xff]  ;;  %5004 = vmatpush1.bf16.msra.mxu0 %v6517_v30  ;;  %3076 = vst [vmem:[#allocation4 + $0x1e] sm:$0x1] %v5527_v11  ;;  %3158 = vst [vmem:[#allocation4 + $0x1f] sm:$0x1] %v5537_v44 }
0x1889   : > { %4833 = vmatprep.subr.bf16.mxu1 %v6494_v17  ;;  %v8208_v23 = vrot.slane %v8202_v46, %v8186_v43  ;;  %v3252_v20 = vpack.c.bf16 %v3182_v47, %v3182_v47  ;;  %5005 = vmatprep.subr.bf16.mxu0 %v6520_v62  ;;  %v3201_v39 = vcombine.high %v8202_v46, %v8202_v46  ;;  %v6535_v15 = vld [vmem:[#allocation20 + $0x4f0] ss:$8 sps:$4 sm:$0xff]   ;;  %v6543_v17 = vld [vmem:[#allocation20 + $0x504] ss:$8 sps:$4 sm:$0xff]   ;;  %v6546_v31 = vld [vmem:[#allocation20 + $0x114] ss:$8 sps:$4 sm:$0xff]  }
0x188a   : > { %v3183_v19 = vcombine.high %v8229_v29, %v8229_v29  ;;  %v6547_v45 = vld [vmem:[#allocation20 + $0x510] ss:$8 sps:$4 sm:$0xff]   ;;  %v6552_v6 = vld [vmem:[#allocation20 + $0x124] ss:$8 sps:$4 sm:$0xff]   ;;  %v6553_v58 = vld [vmem:[#allocation20 + $0x520] ss:$8 sps:$4 sm:$0xff]  }
0x188b   : > { %v3216_v57 = vcombine.high %v8208_v23, %v8208_v23  ;;  %4847 = vmatprep.mubr.bf16.mxu1 %v3252_v20  ;;  %v8232_v14 = vrot.slane %v3201_v39, %v8186_v43  ;;  %v6555_v46 = vld [vmem:[#allocation20 + $0x524] ss:$8 sps:$4 sm:$0xff]   ;;  %v6558_v47 = vld [vmem:[#allocation20 + $0x134] ss:$8 sps:$4 sm:$0xff]   ;;  %v6556_v52 = vld [vmem:[#allocation20 + $0x130] ss:$8 sps:$4 sm:$0xff]  }
0x188c   : > { %4834 = vmatpush1.bf16.msra.mxu1 %v6498_v3  ;;  %5006 = vmatpush1.bf16.msra.mxu0 %v6523_v35  ;;  %v3254_v59 = vpack.c.bf16 %v3183_v19, %v3183_v19  ;;  %v6559_v27 = vld [vmem:[#allocation20 + $0x530] ss:$8 sps:$4 sm:$0xff]   ;;  %v6564_v20 = vld [vmem:[#allocation20 + $0x144] ss:$8 sps:$4 sm:$0xff]   ;;  %v6565_v30 = vld [vmem:[#allocation20 + $0x540] ss:$8 sps:$4 sm:$0xff]  }
0x188d   : > { %4835 = vmatprep.subr.bf16.mxu1 %v6500_v18  ;;  %v3260_v48 = vpack.c.bf16 %v3216_v57, %v3216_v57  ;;  %5007 = vmatprep.subr.bf16.mxu0 %v6526_v51  ;;  %v3217_v3 = vcombine.high %v8232_v14, %v8232_v14  ;;  %v3259_v18 = vpack.c.bf16 %v8208_v23, %v8208_v23  ;;  %v6561_v23 = vld [vmem:[#allocation20 + $0x534] ss:$8 sps:$4 sm:$0xff]   ;;  %v6567_v57 = vld [vmem:[#allocation20 + $0x544] ss:$8 sps:$4 sm:$0xff]   ;;  %v6568_v62 = vld [vmem:[#allocation20 + $0x150] ss:$8 sps:$4 sm:$0xff]  }
0x188e   : > { %v6570_v26 = vld [vmem:[#allocation20 + $0x154] ss:$8 sps:$4 sm:$0xff]   ;;  %v6576_v55 = vld [vmem:[#allocation20 + $0x164] ss:$8 sps:$4 sm:$0xff]   ;;  %v6574_v63 = vld [vmem:[#allocation20 + $0x160] ss:$8 sps:$4 sm:$0xff]  }
0x188f   : > { %5011 = vmatprep.mubr.bf16.mxu0 %v3260_v48  ;;  %v3262_v38 = vpack.c.bf16 %v3217_v3, %v3217_v3  ;;  %v6571_v48 = vld [vmem:[#allocation20 + $0x550] ss:$8 sps:$4 sm:$0xff]   ;;  %v6579_v61 = vld [vmem:[#allocation20 + $0x564] ss:$8 sps:$4 sm:$0xff]   ;;  %v6577_v49 = vld [vmem:[#allocation20 + $0x560] ss:$8 sps:$4 sm:$0xff]  }
0x1890   : > { %4836 = vmatpush1.bf16.msra.mxu1 %v6504_v4  ;;  %5008 = vmatpush1.bf16.msra.mxu0 %v6529_v10  ;;  %v6541_v4 = vld [vmem:[#allocation20 + $0x500] ss:$8 sps:$4 sm:$0xff]   ;;  %v6582_v32 = vld [vmem:[#allocation20 + $0x174] ss:$8 sps:$4 sm:$0xff]   ;;  %v6580_v35 = vld [vmem:[#allocation20 + $0x170] ss:$8 sps:$4 sm:$0xff]  }
0x1891   : > { %4837 = vmatprep.subr.bf16.mxu1 %v6506_v34  ;;  %5009 = vmatprep.subr.bf16.mxu0 %v6532_v13  ;;  %v6549_v34 = vld [vmem:[#allocation20 + $0x514] ss:$8 sps:$4 sm:$0xff]   ;;  %v6583_v0 = vld [vmem:[#allocation20 + $0x570] ss:$8 sps:$4 sm:$0xff]   ;;  %v6588_v40 = vld [vmem:[#allocation20 + $0x184] ss:$8 sps:$4 sm:$0xff]  }
0x1892   : > { %v6591_v50 = vld [vmem:[#allocation20 + $0x584] ss:$8 sps:$4 sm:$0xff]   ;;  %v6589_v51 = vld [vmem:[#allocation20 + $0x580] ss:$8 sps:$4 sm:$0xff]   ;;  %v6594_v9 = vld [vmem:[#allocation20 + $0x194] ss:$8 sps:$4 sm:$0xff]  }
0x1893   : > { %v6597_v36 = vld [vmem:[#allocation20 + $0x594] ss:$8 sps:$4 sm:$0xff]   ;;  %v6592_v22 = vld [vmem:[#allocation20 + $0x190] ss:$8 sps:$4 sm:$0xff]   ;;  %v6600_v5 = vld [vmem:[#allocation20 + $0x1a4] ss:$8 sps:$4 sm:$0xff]  }
0x1894   : > { %4838 = vmatpush1.bf16.msra.mxu1 %v6510_v41  ;;  %5010 = vmatpush1.bf16.msra.mxu0 %v6535_v15  ;;  %v6544_v41 = vld [vmem:[#allocation20 + $0x110] ss:$8 sps:$4 sm:$0xff]   ;;  %v6603_v37 = vld [vmem:[#allocation20 + $0x5a4] ss:$8 sps:$4 sm:$0xff]   ;;  %v6598_v42 = vld [vmem:[#allocation20 + $0x1a0] ss:$8 sps:$4 sm:$0xff]  }
0x1895   : > { %4839 = vmatprep.subr.bf16.mxu1 %v6512_v54  ;;  %5020 = vmatprep.subr.bf16.mxu0 %v6543_v17  ;;  %v6550_v54 = vld [vmem:[#allocation20 + $0x120] ss:$8 sps:$4 sm:$0xff]   ;;  %v6595_v39 = vld [vmem:[#allocation20 + $0x590] ss:$8 sps:$4 sm:$0xff]   ;;  %v6606_v53 = vld [vmem:[#allocation20 + $0x1b4] ss:$8 sps:$4 sm:$0xff]  }
0x1896   : > { %v6601_v7 = vld [vmem:[#allocation20 + $0x5a0] ss:$8 sps:$4 sm:$0xff]   ;;  %v6604_v10 = vld [vmem:[#allocation20 + $0x1b0] ss:$8 sps:$4 sm:$0xff]   ;;  %v6615_v13 = vld [vmem:[#allocation20 + $0x5c4] ss:$8 sps:$4 sm:$0xff]  }
0x1897   : > { %5012 = vmatmul.mubr.bf16.vlgmr.msra.gmra.mrb[0].mxu0 %v3259_v18  ;;  %v6607_v11 = vld [vmem:[#allocation20 + $0x5b0] ss:$8 sps:$4 sm:$0xff]   ;;  %v6610_v44 = vld [vmem:[#allocation20 + $0x1c0] ss:$8 sps:$4 sm:$0xff]   ;;  %v6618_v15 = vld [vmem:[#allocation20 + $0x1d4] ss:$8 sps:$4 sm:$0xff]  }
0x1898   : > { %4840 = vmatpush1.bf16.msra.mxu1 %v6516_v56  ;;  %5021 = vmatpush1.bf16.msra.mxu0 %v6541_v4  ;;  %v6562_v56 = vld [vmem:[#allocation20 + $0x140] ss:$8 sps:$4 sm:$0xff]   ;;  %v6616_v17 = vld [vmem:[#allocation20 + $0x1d0] ss:$8 sps:$4 sm:$0xff]   ;;  %v6624_v3 = vld [vmem:[#allocation20 + $0x1e4] ss:$8 sps:$4 sm:$0xff]  }
0x1899   : > { %4841 = vmatprep.subr.bf16.mxu1 %v6518_v60  ;;  %5022 = vmatprep.subr.bf16.mxu0 %v6549_v34  ;;  %v6573_v60 = vld [vmem:[#allocation20 + $0x554] ss:$8 sps:$4 sm:$0xff]   ;;  %v6619_v19 = vld [vmem:[#allocation20 + $0x5d0] ss:$8 sps:$4 sm:$0xff]   ;;  %v6622_v18 = vld [vmem:[#allocation20 + $0x1e0] ss:$8 sps:$4 sm:$0xff]  }
0x189a   : > { %5052 = vmatprep.mubr.bf16.mxu0 %v3262_v38  ;;  %v6630_v4 = vld [vmem:[#allocation20 + $0x1f4] ss:$8 sps:$4 sm:$0xff]   ;;  %v6628_v34 = vld [vmem:[#allocation20 + $0x1f0] ss:$8 sps:$4 sm:$0xff]   ;;  %v6636_v38 = vld [vmem:[#allocation20 + $0x204] ss:$8 sps:$4 sm:$0xff]  }
0x189c   : > { %4842 = vmatpush1.bf16.msra.mxu1 %v6522_v33  ;;  %5023 = vmatpush1.bf16.msra.mxu0 %v6547_v45  ;;  %v6585_v33 = vld [vmem:[#allocation20 + $0x574] ss:$8 sps:$4 sm:$0xff]   ;;  %v6634_v45 = vld [vmem:[#allocation20 + $0x200] ss:$8 sps:$4 sm:$0xff]  }
0x189d   : > { %4843 = vmatprep.subr.bf16.mxu1 %v6524_v2  ;;  %5024 = vmatprep.subr.bf16.mxu0 %v6555_v46  ;;  %v6586_v2 = vld [vmem:[#allocation20 + $0x180] ss:$8 sps:$4 sm:$0xff]   ;;  %v3261_v46 = vpack.c.bf16 %v8232_v14, %v8232_v14 }
0x18a0   : > { %4844 = vmatpush1.bf16.msra.mxu1 %v6528_v8  ;;  %5025 = vmatpush1.bf16.msra.mxu0 %v6553_v58  ;;  %v6609_v8 = vld [vmem:[#allocation20 + $0x5b4] ss:$8 sps:$4 sm:$0xff]  }
0x18a1   : > { %4845 = vmatprep.subr.bf16.mxu1 %v6530_v12  ;;  %5026 = vmatprep.subr.bf16.mxu0 %v6561_v23  ;;  %v6612_v12 = vld [vmem:[#allocation20 + $0x1c4] ss:$8 sps:$4 sm:$0xff]   ;;  %v6642_v58 = vld [vmem:[#allocation20 + $0x214] ss:$8 sps:$4 sm:$0xff]  }
0x18a2   : > { %v6645_v23 = vld [vmem:[#allocation20 + $0x614] ss:$8 sps:$4 sm:$0xff]  }
0x18a4   : > { %4846 = vmatpush1.bf16.msra.mxu1 %v6534_v1  ;;  %5027 = vmatpush1.bf16.msra.mxu0 %v6559_v27  ;;  %v6613_v1 = vld [vmem:[#allocation20 + $0x5c0] ss:$8 sps:$4 sm:$0xff]  }
0x18a5   : > { %4856 = vmatprep.subr.bf16.mxu1 %v6539_v16  ;;  %5028 = vmatprep.subr.bf16.mxu0 %v6567_v57  ;;  %v6621_v16 = vld [vmem:[#allocation20 + $0x5d4] ss:$8 sps:$4 sm:$0xff]   ;;  %v8252_v27 = vld [vmem:[#allocation4 + $0x18] sm:$0xff] }
0x18a6   : > { %v8258_v57 = vrot.slane %v8252_v27, %v8186_v43 }
0x18a7   : > { %4848 = vmatmul.mubr.bf16.vlgmr.msra.gmra.mrb[0].mxu1 %v3251_v24  ;;  %v6627_v24 = vld [vmem:[#allocation20 + $0x5e4] ss:$8 sps:$4 sm:$0xff]  }
0x18a8   : > { %4857 = vmatpush1.bf16.msra.mxu1 %v6537_v25  ;;  %4888 = vmatprep.mubr.bf16.mxu1 %v3254_v59  ;;  %v6625_v25 = vld [vmem:[#allocation20 + $0x5e0] ss:$8 sps:$4 sm:$0xff]   ;;  %v6631_v59 = vld [vmem:[#allocation20 + $0x5f0] ss:$8 sps:$4 sm:$0xff]  }
0x18a9   : > { %4858 = vmatprep.subr.bf16.mxu1 %v6546_v31  ;;  %5029 = vmatpush1.bf16.msra.mxu0 %v6565_v30  ;;  %v6633_v31 = vld [vmem:[#allocation20 + $0x5f4] ss:$8 sps:$4 sm:$0xff]   ;;  %v6651_v30 = vld [vmem:[#allocation20 + $0x624] ss:$8 sps:$4 sm:$0xff]  }
0x18aa   : > { %5030 = vmatprep.subr.bf16.mxu0 %v6573_v60  ;;  %v3233_v60 = vcombine.high %v8258_v57, %v8258_v57 }
0x18ac   : > { %4859 = vmatpush1.bf16.msra.mxu1 %v6544_v41  ;;  %v6639_v41 = vld [vmem:[#allocation20 + $0x604] ss:$8 sps:$4 sm:$0xff]  }
0x18ad   : > { %4860 = vmatprep.subr.bf16.mxu1 %v6552_v6  ;;  %5031 = vmatpush1.bf16.msra.mxu0 %v6571_v48  ;;  %v3253_v6 = vpack.c.bf16 %v8229_v29, %v8229_v29  ;;  %v6640_v29 = vld [vmem:[#allocation20 + $0x210] ss:$8 sps:$4 sm:$0xff]   ;;  %v6649_v48 = vld [vmem:[#allocation20 + $0x620] ss:$8 sps:$4 sm:$0xff]  }
0x18ae   : > { %5032 = vmatprep.subr.bf16.mxu0 %v6579_v61  ;;  %v6654_v61 = vld [vmem:[#allocation20 + $0x234] ss:$8 sps:$4 sm:$0xff]  }
0x18b0   : > { %4861 = vmatpush1.bf16.msra.mxu1 %v6550_v54  ;;  %v6637_v54 = vld [vmem:[#allocation20 + $0x600] ss:$8 sps:$4 sm:$0xff]  }
0x18b1   : > { %4862 = vmatprep.subr.bf16.mxu1 %v6558_v47  ;;  %5033 = vmatpush1.bf16.msra.mxu0 %v6577_v49  ;;  %v8246_v47 = vld [vmem:[#allocation4 + $0x8] sm:$0xff] }
0x18b2   : > { %5034 = vmatprep.subr.bf16.mxu0 %v6585_v33  ;;  %v6652_v49 = vld [vmem:[#allocation20 + $0x230] ss:$8 sps:$4 sm:$0xff]   ;;  %v6660_v33 = vld [vmem:[#allocation20 + $0x244] ss:$8 sps:$4 sm:$0xff]  }
0x18b4   : > { %4863 = vmatpush1.bf16.msra.mxu1 %v6556_v52  ;;  %v8250_v52 = vrot.slane %v8246_v47, %v8186_v43 }
0x18b5   : > { %4864 = vmatprep.subr.bf16.mxu1 %v6564_v20  ;;  %5035 = vmatpush1.bf16.msra.mxu0 %v6583_v0  ;;  %v6643_v20 = vld [vmem:[#allocation20 + $0x610] ss:$8 sps:$4 sm:$0xff]   ;;  %v6658_v0 = vld [vmem:[#allocation20 + $0x240] ss:$8 sps:$4 sm:$0xff]  }
0x18b6   : > { %5036 = vmatprep.subr.bf16.mxu0 %v6591_v50  ;;  %v3199_v14 = vcombine.high %v8250_v52, %v8250_v52  ;;  %v6666_v50 = vld [vmem:[#allocation20 + $0x254] ss:$8 sps:$4 sm:$0xff]  }
0x18b8   : > { %4865 = vmatpush1.bf16.msra.mxu1 %v6562_v56  ;;  %v6648_v56 = vld [vmem:[#allocation20 + $0x224] ss:$8 sps:$4 sm:$0xff]  }
0x18b9   : > { %4866 = vmatprep.subr.bf16.mxu1 %v6570_v26  ;;  %5037 = vmatpush1.bf16.msra.mxu0 %v6589_v51  ;;  %v3256_v26 = vpack.c.bf16 %v3199_v14, %v3199_v14  ;;  %v6664_v51 = vld [vmem:[#allocation20 + $0x250] ss:$8 sps:$4 sm:$0xff]   ;;  %v6721_v14 = vld [vmem:[#allocation20 + $0x6e0] ss:$8 sps:$4 sm:$0xff]  }
0x18ba   : > { %5038 = vmatprep.subr.bf16.mxu0 %v6597_v36  ;;  %v6672_v36 = vld [vmem:[#allocation20 + $0x264] ss:$8 sps:$4 sm:$0xff]  }
0x18bc   : > { %4867 = vmatpush1.bf16.msra.mxu1 %v6568_v62  ;;  %v6646_v62 = vld [vmem:[#allocation20 + $0x220] ss:$8 sps:$4 sm:$0xff]  }
0x18bd   : > { %4868 = vmatprep.subr.bf16.mxu1 %v6576_v55  ;;  %5039 = vmatpush1.bf16.msra.mxu0 %v6595_v39  ;;  %v3264_v55 = vpack.c.bf16 %v3233_v60, %v3233_v60  ;;  %v6670_v39 = vld [vmem:[#allocation20 + $0x260] ss:$8 sps:$4 sm:$0xff]  }
0x18be   : > { %5040 = vmatprep.subr.bf16.mxu0 %v6603_v37  ;;  %v6678_v37 = vld [vmem:[#allocation20 + $0x274] ss:$8 sps:$4 sm:$0xff]  }
0x18c0   : > { %4869 = vmatpush1.bf16.msra.mxu1 %v6574_v63  ;;  %v6657_v63 = vld [vmem:[#allocation20 + $0x634] ss:$8 sps:$4 sm:$0xff]  }
0x18c1   : > { %4870 = vmatprep.subr.bf16.mxu1 %v6582_v32  ;;  %5041 = vmatpush1.bf16.msra.mxu0 %v6601_v7  ;;  %v6655_v32 = vld [vmem:[#allocation20 + $0x630] ss:$8 sps:$4 sm:$0xff]  }
0x18c2   : > { %5042 = vmatprep.subr.bf16.mxu0 %v6609_v8  ;;  %v6676_v7 = vld [vmem:[#allocation20 + $0x270] ss:$8 sps:$4 sm:$0xff]   ;;  %v6684_v8 = vld [vmem:[#allocation20 + $0x284] ss:$8 sps:$4 sm:$0xff]  }
0x18c4   : > { %4871 = vmatpush1.bf16.msra.mxu1 %v6580_v35  ;;  %v6663_v35 = vld [vmem:[#allocation20 + $0x644] ss:$8 sps:$4 sm:$0xff]  }
0x18c5   : > { %4872 = vmatprep.subr.bf16.mxu1 %v6588_v40  ;;  %5043 = vmatpush1.bf16.msra.mxu0 %v6607_v11  ;;  %v6661_v40 = vld [vmem:[#allocation20 + $0x640] ss:$8 sps:$4 sm:$0xff]  }
0x18c6   : > { %5044 = vmatprep.subr.bf16.mxu0 %v6615_v13  ;;  %v6682_v11 = vld [vmem:[#allocation20 + $0x280] ss:$8 sps:$4 sm:$0xff]   ;;  %v6690_v13 = vld [vmem:[#allocation20 + $0x294] ss:$8 sps:$4 sm:$0xff]  }
0x18c8   : > { %4873 = vmatpush1.bf16.msra.mxu1 %v6586_v2  ;;  %v6669_v2 = vld [vmem:[#allocation20 + $0x654] ss:$8 sps:$4 sm:$0xff]  }
0x18c9   : > { %4874 = vmatprep.subr.bf16.mxu1 %v6594_v9  ;;  %5045 = vmatpush1.bf16.msra.mxu0 %v6613_v1  ;;  %v6667_v9 = vld [vmem:[#allocation20 + $0x650] ss:$8 sps:$4 sm:$0xff]  }
0x18ca   : > { %5046 = vmatprep.subr.bf16.mxu0 %v6621_v16  ;;  %v6688_v1 = vld [vmem:[#allocation20 + $0x290] ss:$8 sps:$4 sm:$0xff]   ;;  %v6696_v16 = vld [vmem:[#allocation20 + $0x2a4] ss:$8 sps:$4 sm:$0xff]  }
0x18cc   : > { %4875 = vmatpush1.bf16.msra.mxu1 %v6592_v22  ;;  %v6675_v22 = vld [vmem:[#allocation20 + $0x664] ss:$8 sps:$4 sm:$0xff]  }
0x18cd   : > { %4876 = vmatprep.subr.bf16.mxu1 %v6600_v5  ;;  %5047 = vmatpush1.bf16.msra.mxu0 %v6619_v19  ;;  %v6673_v5 = vld [vmem:[#allocation20 + $0x660] ss:$8 sps:$4 sm:$0xff]  }
0x18ce   : > { %5048 = vmatprep.subr.bf16.mxu0 %v6627_v24  ;;  %v6694_v19 = vld [vmem:[#allocation20 + $0x2a0] ss:$8 sps:$4 sm:$0xff]   ;;  %v6702_v24 = vld [vmem:[#allocation20 + $0x2b4] ss:$8 sps:$4 sm:$0xff]  }
0x18d0   : > { %4877 = vmatpush1.bf16.msra.mxu1 %v6598_v42  ;;  %v6681_v42 = vld [vmem:[#allocation20 + $0x674] ss:$8 sps:$4 sm:$0xff]  }
0x18d1   : > { %4878 = vmatprep.subr.bf16.mxu1 %v6606_v53  ;;  %5049 = vmatpush1.bf16.msra.mxu0 %v6625_v25  ;;  %v6679_v53 = vld [vmem:[#allocation20 + $0x670] ss:$8 sps:$4 sm:$0xff]  }
0x18d2   : > { %5050 = vmatprep.subr.bf16.mxu0 %v6633_v31  ;;  %v6700_v25 = vld [vmem:[#allocation20 + $0x2b0] ss:$8 sps:$4 sm:$0xff]   ;;  %v6708_v31 = vld [vmem:[#allocation20 + $0x2c4] ss:$8 sps:$4 sm:$0xff]  }
0x18d4   : > { %4879 = vmatpush1.bf16.msra.mxu1 %v6604_v10  ;;  %v6687_v10 = vld [vmem:[#allocation20 + $0x684] ss:$8 sps:$4 sm:$0xff]  }
0x18d5   : > { %4880 = vmatprep.subr.bf16.mxu1 %v6612_v12  ;;  %5051 = vmatpush1.bf16.msra.mxu0 %v6631_v59  ;;  %v6685_v12 = vld [vmem:[#allocation20 + $0x680] ss:$8 sps:$4 sm:$0xff]  }
0x18d6   : > { %5061 = vmatprep.subr.bf16.mxu0 %v6639_v41  ;;  %v6706_v59 = vld [vmem:[#allocation20 + $0x2c0] ss:$8 sps:$4 sm:$0xff]   ;;  %v6714_v41 = vld [vmem:[#allocation20 + $0x2d4] ss:$8 sps:$4 sm:$0xff]  }
0x18d8   : > { %4881 = vmatpush1.bf16.msra.mxu1 %v6610_v44  ;;  %5053 = vmatmul.mubr.bf16.vlgmr.msra.gmra.mrb[0].mxu0 %v3261_v46  ;;  %v6693_v44 = vld [vmem:[#allocation20 + $0x694] ss:$8 sps:$4 sm:$0xff]   ;;  %v6715_v46 = vld [vmem:[#allocation20 + $0x6d0] ss:$8 sps:$4 sm:$0xff]  }
0x18d9   : > { %4882 = vmatprep.subr.bf16.mxu1 %v6618_v15  ;;  %5062 = vmatpush1.bf16.msra.mxu0 %v6637_v54  ;;  %v6691_v15 = vld [vmem:[#allocation20 + $0x690] ss:$8 sps:$4 sm:$0xff]   ;;  %v6720_v54 = vld [vmem:[#allocation20 + $0x2e4] ss:$8 sps:$4 sm:$0xff]  }
0x18da   : > { %5063 = vmatprep.subr.bf16.mxu0 %v6645_v23  ;;  %5093 = vmatprep.mubr.bf16.mxu0 %v3264_v55  ;;  %v3184_v23 = vcombine.high %v8246_v47, %v8246_v47  ;;  %v6724_v47 = vld [vmem:[#allocation20 + $0x2f0] ss:$8 sps:$4 sm:$0xff]  }
0x18dc   : > { %4883 = vmatpush1.bf16.msra.mxu1 %v6616_v17  ;;  %v6699_v17 = vld [vmem:[#allocation20 + $0x6a4] ss:$8 sps:$4 sm:$0xff]  }
0x18dd   : > { %4884 = vmatprep.subr.bf16.mxu1 %v6624_v3  ;;  %5064 = vmatpush1.bf16.msra.mxu0 %v6643_v20  ;;  %v6697_v3 = vld [vmem:[#allocation20 + $0x6a0] ss:$8 sps:$4 sm:$0xff]  }
0x18de   : > { %5065 = vmatprep.subr.bf16.mxu0 %v6651_v30  ;;  %v6718_v20 = vld [vmem:[#allocation20 + $0x2e0] ss:$8 sps:$4 sm:$0xff]   ;;  %v6729_v30 = vld [vmem:[#allocation20 + $0x6f4] ss:$8 sps:$4 sm:$0xff]  }
0x18e0   : > { %4885 = vmatpush1.bf16.msra.mxu1 %v6622_v18  ;;  %v6705_v18 = vld [vmem:[#allocation20 + $0x6b4] ss:$8 sps:$4 sm:$0xff]  }
0x18e1   : > { %4886 = vmatprep.subr.bf16.mxu1 %v6630_v4  ;;  %5066 = vmatpush1.bf16.msra.mxu0 %v6649_v48  ;;  %v6703_v4 = vld [vmem:[#allocation20 + $0x6b0] ss:$8 sps:$4 sm:$0xff]   ;;  %v6735_v48 = vld [vmem:[#allocation20 + $0x704] ss:$8 sps:$4 sm:$0xff]  }
0x18e2   : > { %5067 = vmatprep.subr.bf16.mxu0 %v6657_v63  ;;  %v3255_v63 = vpack.c.bf16 %v8250_v52, %v8250_v52  ;;  %v6744_v52 = vld [vmem:[#allocation20 + $0x324] ss:$8 sps:$4 sm:$0xff]  }
0x18e4   : > { %4887 = vmatpush1.bf16.msra.mxu1 %v6628_v34  ;;  %v6711_v34 = vld [vmem:[#allocation20 + $0x6c4] ss:$8 sps:$4 sm:$0xff]  }
0x18e5   : > { %4897 = vmatprep.subr.bf16.mxu1 %v6636_v38  ;;  %5068 = vmatpush1.bf16.msra.mxu0 %v6655_v32  ;;  %v6709_v38 = vld [vmem:[#allocation20 + $0x6c0] ss:$8 sps:$4 sm:$0xff]  }
0x18e6   : > { %5069 = vmatprep.subr.bf16.mxu0 %v6663_v35  ;;  %v6733_v32 = vld [vmem:[#allocation20 + $0x700] ss:$8 sps:$4 sm:$0xff]   ;;  %v6741_v35 = vld [vmem:[#allocation20 + $0x714] ss:$8 sps:$4 sm:$0xff]  }
0x18e7   : > { %4889 = vmatmul.mubr.bf16.vlgmr.msra.gmra.mrb[0].mxu1 %v3253_v6  ;;  %v6712_v6 = vld [vmem:[#allocation20 + $0x2d0] ss:$8 sps:$4 sm:$0xff]  }
0x18e8   : > { %4898 = vmatpush1.bf16.msra.mxu1 %v6634_v45  ;;  %4929 = vmatprep.mubr.bf16.mxu1 %v3256_v26  ;;  %v6717_v45 = vld [vmem:[#allocation20 + $0x6d4] ss:$8 sps:$4 sm:$0xff]   ;;  %v8267_v26 = vrot.slane %v3184_v23, %v8186_v43  ;;  %v6796_v23 = vld [vmem:[#allocation20 + $0x3b0] ss:$8 sps:$4 sm:$0xff]  }
0x18e9   : > { %4899 = vmatprep.subr.bf16.mxu1 %v6642_v58  ;;  %5070 = vmatpush1.bf16.msra.mxu0 %v6661_v40  ;;  %v6723_v58 = vld [vmem:[#allocation20 + $0x6e4] ss:$8 sps:$4 sm:$0xff]  }
0x18ea   : > { %5071 = vmatprep.subr.bf16.mxu0 %v6669_v2  ;;  %v3200_v55 = vcombine.high %v8267_v26, %v8267_v26  ;;  %v6739_v2 = vld [vmem:[#allocation20 + $0x710] ss:$8 sps:$4 sm:$0xff]  }
0x18ec   : > { %4900 = vmatpush1.bf16.msra.mxu1 %v6640_v29  ;;  %v3218_v29 = vcombine.high %v8252_v27, %v8252_v27  ;;  %v6732_v27 = vld [vmem:[#allocation20 + $0x304] ss:$8 sps:$4 sm:$0xff]  }
0x18ed   : > { %4901 = vmatprep.subr.bf16.mxu1 %v6648_v56  ;;  %5072 = vmatpush1.bf16.msra.mxu0 %v6667_v9  ;;  %v6726_v56 = vld [vmem:[#allocation20 + $0x2f4] ss:$8 sps:$4 sm:$0xff]   ;;  %v6745_v9 = vld [vmem:[#allocation20 + $0x720] ss:$8 sps:$4 sm:$0xff]  }
0x18ee   : > { %5073 = vmatprep.subr.bf16.mxu0 %v6675_v22  ;;  %v8270_v60 = vrot.slane %v3218_v29, %v8186_v43  ;;  %v3263_v43 = vpack.c.bf16 %v8258_v57, %v8258_v57  ;;  %v6747_v57 = vld [vmem:[#allocation20 + $0x724] ss:$8 sps:$4 sm:$0xff]   ;;  %v6753_v22 = vld [vmem:[#allocation20 + $0x734] ss:$8 sps:$4 sm:$0xff]   ;;  %v6799_v29 = vld [vmem:[#allocation20 + $0x7b0] ss:$8 sps:$4 sm:$0xff]  }
0x18f0   : > { %4902 = vmatpush1.bf16.msra.mxu1 %v6646_v62  ;;  %v6727_v62 = vld [vmem:[#allocation20 + $0x6f0] ss:$8 sps:$4 sm:$0xff]  }
0x18f1   : > { %4903 = vmatprep.subr.bf16.mxu1 %v6654_v61  ;;  %5074 = vmatpush1.bf16.msra.mxu0 %v6673_v5  ;;  %v3234_v61 = vcombine.high %v8270_v60, %v8270_v60  ;;  %v6751_v5 = vld [vmem:[#allocation20 + $0x730] ss:$8 sps:$4 sm:$0xff]  }
0x18f2   : > { %5075 = vmatprep.subr.bf16.mxu0 %v6681_v42  ;;  %v6759_v42 = vld [vmem:[#allocation20 + $0x744] ss:$8 sps:$4 sm:$0xff]  }
0x18f3   : > { %v3266_v40 = vpack.c.bf16 %v3234_v61, %v3234_v61  ;;  %v6819_v61 = vld [vmem:[#allocation20 + $0x7e4] ss:$8 sps:$4 sm:$0xff]  }
0x18f4   : > { %4904 = vmatpush1.bf16.msra.mxu1 %v6652_v49  ;;  %v6730_v49 = vld [vmem:[#allocation20 + $0x300] ss:$8 sps:$4 sm:$0xff]  }
0x18f5   : > { %4905 = vmatprep.subr.bf16.mxu1 %v6660_v33  ;;  %5076 = vmatpush1.bf16.msra.mxu0 %v6679_v53  ;;  %v6738_v33 = vld [vmem:[#allocation20 + $0x314] ss:$8 sps:$4 sm:$0xff]   ;;  %v6757_v53 = vld [vmem:[#allocation20 + $0x740] ss:$8 sps:$4 sm:$0xff]  }
0x18f6   : > { %5077 = vmatprep.subr.bf16.mxu0 %v6687_v10  ;;  %v6765_v10 = vld [vmem:[#allocation20 + $0x754] ss:$8 sps:$4 sm:$0xff]  }
0x18f8   : > { %4906 = vmatpush1.bf16.msra.mxu1 %v6658_v0  ;;  %v3258_v0 = vpack.c.bf16 %v3200_v55, %v3200_v55  ;;  %v6816_v55 = vld [vmem:[#allocation20 + $0x3e4] ss:$8 sps:$4 sm:$0xff]  }
0x18f9   : > { %4907 = vmatprep.subr.bf16.mxu1 %v6666_v50  ;;  %5078 = vmatpush1.bf16.msra.mxu0 %v6685_v12  ;;  %v6736_v50 = vld [vmem:[#allocation20 + $0x310] ss:$8 sps:$4 sm:$0xff]  }
0x18fa   : > { %5079 = vmatprep.subr.bf16.mxu0 %v6693_v44  ;;  %v6763_v12 = vld [vmem:[#allocation20 + $0x750] ss:$8 sps:$4 sm:$0xff]   ;;  %v6771_v44 = vld [vmem:[#allocation20 + $0x764] ss:$8 sps:$4 sm:$0xff]  }
0x18fc   : > { %4908 = vmatpush1.bf16.msra.mxu1 %v6664_v51  ;;  %v6742_v51 = vld [vmem:[#allocation20 + $0x320] ss:$8 sps:$4 sm:$0xff]  }
0x18fd   : > { %4909 = vmatprep.subr.bf16.mxu1 %v6672_v36  ;;  %5080 = vmatpush1.bf16.msra.mxu0 %v6691_v15  ;;  %v6750_v36 = vld [vmem:[#allocation20 + $0x334] ss:$8 sps:$4 sm:$0xff]   ;;  %v6769_v15 = vld [vmem:[#allocation20 + $0x760] ss:$8 sps:$4 sm:$0xff]  }
0x18fe   : > { %5081 = vmatprep.subr.bf16.mxu0 %v6699_v17  ;;  %v6777_v17 = vld [vmem:[#allocation20 + $0x774] ss:$8 sps:$4 sm:$0xff]  }
0x1900   : > { %4910 = vmatpush1.bf16.msra.mxu1 %v6670_v39  ;;  %v6748_v39 = vld [vmem:[#allocation20 + $0x330] ss:$8 sps:$4 sm:$0xff]  }
0x1901   : > { %4911 = vmatprep.subr.bf16.mxu1 %v6678_v37  ;;  %5082 = vmatpush1.bf16.msra.mxu0 %v6697_v3  ;;  %v6756_v37 = vld [vmem:[#allocation20 + $0x344] ss:$8 sps:$4 sm:$0xff]   ;;  %v6775_v3 = vld [vmem:[#allocation20 + $0x770] ss:$8 sps:$4 sm:$0xff]  }
0x1902   : > { %5083 = vmatprep.subr.bf16.mxu0 %v6705_v18  ;;  %v6783_v18 = vld [vmem:[#allocation20 + $0x784] ss:$8 sps:$4 sm:$0xff]  }
0x1904   : > { %4912 = vmatpush1.bf16.msra.mxu1 %v6676_v7  ;;  %v6754_v7 = vld [vmem:[#allocation20 + $0x340] ss:$8 sps:$4 sm:$0xff]  }
0x1905   : > { %4913 = vmatprep.subr.bf16.mxu1 %v6684_v8  ;;  %5084 = vmatpush1.bf16.msra.mxu0 %v6703_v4  ;;  %v6762_v8 = vld [vmem:[#allocation20 + $0x354] ss:$8 sps:$4 sm:$0xff]   ;;  %v6781_v4 = vld [vmem:[#allocation20 + $0x780] ss:$8 sps:$4 sm:$0xff]  }
0x1906   : > { %5085 = vmatprep.subr.bf16.mxu0 %v6711_v34  ;;  %v6789_v34 = vld [vmem:[#allocation20 + $0x794] ss:$8 sps:$4 sm:$0xff]  }
0x1908   : > { %4914 = vmatpush1.bf16.msra.mxu1 %v6682_v11  ;;  %v6760_v11 = vld [vmem:[#allocation20 + $0x350] ss:$8 sps:$4 sm:$0xff]  }
0x1909   : > { %4915 = vmatprep.subr.bf16.mxu1 %v6690_v13  ;;  %5086 = vmatpush1.bf16.msra.mxu0 %v6709_v38  ;;  %v6768_v13 = vld [vmem:[#allocation20 + $0x364] ss:$8 sps:$4 sm:$0xff]   ;;  %v6787_v38 = vld [vmem:[#allocation20 + $0x790] ss:$8 sps:$4 sm:$0xff]  }
0x190a   : > { %5087 = vmatprep.subr.bf16.mxu0 %v6717_v45  ;;  %v6795_v45 = vld [vmem:[#allocation20 + $0x7a4] ss:$8 sps:$4 sm:$0xff]  }
0x190c   : > { %4916 = vmatpush1.bf16.msra.mxu1 %v6688_v1  ;;  %v6766_v1 = vld [vmem:[#allocation20 + $0x360] ss:$8 sps:$4 sm:$0xff]  }
0x190d   : > { %4917 = vmatprep.subr.bf16.mxu1 %v6696_v16  ;;  %5088 = vmatpush1.bf16.msra.mxu0 %v6715_v46  ;;  %v6774_v16 = vld [vmem:[#allocation20 + $0x374] ss:$8 sps:$4 sm:$0xff]   ;;  %v6793_v46 = vld [vmem:[#allocation20 + $0x7a0] ss:$8 sps:$4 sm:$0xff]  }
0x190e   : > { %5089 = vmatprep.subr.bf16.mxu0 %v6723_v58  ;;  %v6801_v58 = vld [vmem:[#allocation20 + $0x7b4] ss:$8 sps:$4 sm:$0xff]  }
0x1910   : > { %4918 = vmatpush1.bf16.msra.mxu1 %v6694_v19  ;;  %v6772_v19 = vld [vmem:[#allocation20 + $0x370] ss:$8 sps:$4 sm:$0xff]  }
0x1911   : > { %4919 = vmatprep.subr.bf16.mxu1 %v6702_v24  ;;  %5090 = vmatpush1.bf16.msra.mxu0 %v6721_v14  ;;  %v6780_v24 = vld [vmem:[#allocation20 + $0x384] ss:$8 sps:$4 sm:$0xff]  }
0x1912   : > { %5091 = vmatprep.subr.bf16.mxu0 %v6729_v30  ;;  %v6807_v14 = vld [vmem:[#allocation20 + $0x7c4] ss:$8 sps:$4 sm:$0xff]   ;;  %v6805_v30 = vld [vmem:[#allocation20 + $0x7c0] ss:$8 sps:$4 sm:$0xff]  }
0x1914   : > { %4920 = vmatpush1.bf16.msra.mxu1 %v6700_v25  ;;  %v6778_v25 = vld [vmem:[#allocation20 + $0x380] ss:$8 sps:$4 sm:$0xff]  }
0x1915   : > { %4921 = vmatprep.subr.bf16.mxu1 %v6708_v31  ;;  %5092 = vmatpush1.bf16.msra.mxu0 %v6727_v62  ;;  %v6786_v31 = vld [vmem:[#allocation20 + $0x394] ss:$8 sps:$4 sm:$0xff]  }
0x1916   : > { %5102 = vmatprep.subr.bf16.mxu0 %v6735_v48  ;;  %v6813_v62 = vld [vmem:[#allocation20 + $0x7d4] ss:$8 sps:$4 sm:$0xff]   ;;  %v6811_v48 = vld [vmem:[#allocation20 + $0x7d0] ss:$8 sps:$4 sm:$0xff]  }
0x1918   : > { %4922 = vmatpush1.bf16.msra.mxu1 %v6706_v59  ;;  %5094 = vmatmul.mubr.bf16.vlgmr.msra.gmra.mrb[0].mxu0 %v3263_v43  ;;  %v6784_v59 = vld [vmem:[#allocation20 + $0x390] ss:$8 sps:$4 sm:$0xff]   ;;  %v6817_v43 = vld [vmem:[#allocation20 + $0x7e0] ss:$8 sps:$4 sm:$0xff]  }
0x1919   : > { %4923 = vmatprep.subr.bf16.mxu1 %v6714_v41  ;;  %5103 = vmatpush1.bf16.msra.mxu0 %v6733_v32  ;;  %v6792_v41 = vld [vmem:[#allocation20 + $0x3a4] ss:$8 sps:$4 sm:$0xff]   ;;  %v6825_v32 = vld [vmem:[#allocation20 + $0x7f4] ss:$8 sps:$4 sm:$0xff]  }
0x191a   : > { %5104 = vmatprep.subr.bf16.mxu0 %v6741_v35  ;;  %5134 = vmatprep.mubr.bf16.mxu0 %v3266_v40  ;;  %v6823_v35 = vld [vmem:[#allocation20 + $0x7f0] ss:$8 sps:$4 sm:$0xff]   ;;  %v3265_v40 = vpack.c.bf16 %v8270_v60, %v8270_v60 }
0x191c   : > { %4924 = vmatpush1.bf16.msra.mxu1 %v6712_v6  ;;  %v6790_v6 = vld [vmem:[#allocation20 + $0x3a0] ss:$8 sps:$4 sm:$0xff]  }
0x191d   : > { %4925 = vmatprep.subr.bf16.mxu1 %v6720_v54  ;;  %5105 = vmatpush1.bf16.msra.mxu0 %v6739_v2  ;;  %v6798_v54 = vld [vmem:[#allocation20 + $0x3b4] ss:$8 sps:$4 sm:$0xff]  }
0x191e   : > { %5106 = vmatprep.subr.bf16.mxu0 %v6747_v57 }
0x1920   : > { %4926 = vmatpush1.bf16.msra.mxu1 %v6718_v20  ;;  %v6804_v20 = vld [vmem:[#allocation20 + $0x3c4] ss:$8 sps:$4 sm:$0xff]  }
0x1921   : > { %4927 = vmatprep.subr.bf16.mxu1 %v6726_v56  ;;  %5107 = vmatpush1.bf16.msra.mxu0 %v6745_v9  ;;  %v6802_v56 = vld [vmem:[#allocation20 + $0x3c0] ss:$8 sps:$4 sm:$0xff]  }
0x1922   : > { %5108 = vmatprep.subr.bf16.mxu0 %v6753_v22 }
0x1924   : > { %4928 = vmatpush1.bf16.msra.mxu1 %v6724_v47  ;;  %v6810_v47 = vld [vmem:[#allocation20 + $0x3d4] ss:$8 sps:$4 sm:$0xff]  }
0x1925   : > { %4938 = vmatprep.subr.bf16.mxu1 %v6732_v27  ;;  %5109 = vmatpush1.bf16.msra.mxu0 %v6751_v5  ;;  %v6808_v27 = vld [vmem:[#allocation20 + $0x3d0] ss:$8 sps:$4 sm:$0xff]  }
0x1926   : > { %5110 = vmatprep.subr.bf16.mxu0 %v6759_v42 }
0x1927   : > { %4930 = vmatmul.mubr.bf16.vlgmr.msra.gmra.mrb[0].mxu1 %v3255_v63  ;;  %v6814_v63 = vld [vmem:[#allocation20 + $0x3e0] ss:$8 sps:$4 sm:$0xff]  }
0x1928   : > { %4939 = vmatpush1.bf16.msra.mxu1 %v6730_v49  ;;  %4970 = vmatprep.mubr.bf16.mxu1 %v3258_v0  ;;  %v6822_v49 = vld [vmem:[#allocation20 + $0x3f4] ss:$8 sps:$4 sm:$0xff]   ;;  %v3257_v0 = vpack.c.bf16 %v8267_v26, %v8267_v26 }
0x1929   : > { %4940 = vmatprep.subr.bf16.mxu1 %v6738_v33  ;;  %5111 = vmatpush1.bf16.msra.mxu0 %v6757_v53  ;;  %v6820_v33 = vld [vmem:[#allocation20 + $0x3f0] ss:$8 sps:$4 sm:$0xff]  }
0x192a   : > { %5112 = vmatprep.subr.bf16.mxu0 %v6765_v10 }
0x192c   : > { %4941 = vmatpush1.bf16.msra.mxu1 %v6736_v50  ;;  %v3523_v50 = vld [vmem:[#allocation21] sm:$0x3] }
0x192d   : > { %4942 = vmatprep.subr.bf16.mxu1 %v6744_v52  ;;  %5113 = vmatpush1.bf16.msra.mxu0 %v6763_v12  ;;  %v3528_v2 = vrot.slane %v3523_v50, %v7791_v21  ;;  %v5143_v52 = vld [vmem:[#allocation23] sm:$0x3]  ;;  %v3532_v57 = vrot.slane %v3523_v50, %v8078_v28 }
0x192e   : > { %5114 = vmatprep.subr.bf16.mxu0 %v6771_v44  ;;  %v5148_v22 = vrot.slane %v5143_v52, %v7791_v21  ;;  %v5152_v60 = vrot.slane %v5143_v52, %v8078_v28 }
0x1930   : > { %4943 = vmatpush1.bf16.msra.mxu1 %v6742_v51 }
0x1931   : > { %4944 = vmatprep.subr.bf16.mxu1 %v6750_v36  ;;  %5115 = vmatpush1.bf16.msra.mxu0 %v6769_v15  ;;  %v5794_v15 = vld [vmem:[#allocation5] ss:$0 sm:$0xff] }
0x1932   : > { %5116 = vmatprep.subr.bf16.mxu0 %v6777_v17 }
0x1934   : > { %4945 = vmatpush1.bf16.msra.mxu1 %v6748_v39 }
0x1935   : > { %4946 = vmatprep.subr.bf16.mxu1 %v6756_v37  ;;  %5117 = vmatpush1.bf16.msra.mxu0 %v6775_v3 }
0x1936   : > { %5118 = vmatprep.subr.bf16.mxu0 %v6783_v18 }
0x1938   : > { %4947 = vmatpush1.bf16.msra.mxu1 %v6754_v7 }
0x1939   : > { %4948 = vmatprep.subr.bf16.mxu1 %v6762_v8  ;;  %5119 = vmatpush1.bf16.msra.mxu0 %v6781_v4 }
0x193a   : > { %5120 = vmatprep.subr.bf16.mxu0 %v6789_v34 }
0x193c   : > { %4949 = vmatpush1.bf16.msra.mxu1 %v6760_v11 }
0x193d   : > { %4950 = vmatprep.subr.bf16.mxu1 %v6768_v13  ;;  %5121 = vmatpush1.bf16.msra.mxu0 %v6787_v38 }
0x193e   : > { %5122 = vmatprep.subr.bf16.mxu0 %v6795_v45 }
0x1940   : > { %4951 = vmatpush1.bf16.msra.mxu1 %v6766_v1 }
0x1941   : > { %4952 = vmatprep.subr.bf16.mxu1 %v6774_v16  ;;  %5123 = vmatpush1.bf16.msra.mxu0 %v6793_v46 }
0x1942   : > { %5124 = vmatprep.subr.bf16.mxu0 %v6801_v58 }
0x1944   : > { %4953 = vmatpush1.bf16.msra.mxu1 %v6772_v19 }
0x1945   : > { %4954 = vmatprep.subr.bf16.mxu1 %v6780_v24  ;;  %5125 = vmatpush1.bf16.msra.mxu0 %v6799_v29 }
0x1946   : > { %5126 = vmatprep.subr.bf16.mxu0 %v6807_v14 }
0x1948   : > { %4955 = vmatpush1.bf16.msra.mxu1 %v6778_v25 }
0x1949   : > { %4956 = vmatprep.subr.bf16.mxu1 %v6786_v31  ;;  %5127 = vmatpush1.bf16.msra.mxu0 %v6805_v30 }
0x194a   : > { %5128 = vmatprep.subr.bf16.mxu0 %v6813_v62 }
0x194c   : > { %4957 = vmatpush1.bf16.msra.mxu1 %v6784_v59 }
0x194d   : > { %4958 = vmatprep.subr.bf16.mxu1 %v6792_v41  ;;  %5129 = vmatpush1.bf16.msra.mxu0 %v6811_v48 }
0x194e   : > { %5130 = vmatprep.subr.bf16.mxu0 %v6819_v61 }
0x1950   : > { %4959 = vmatpush1.bf16.msra.mxu1 %v6790_v6 }
0x1951   : > { %4960 = vmatprep.subr.bf16.mxu1 %v6798_v54  ;;  %5131 = vmatpush1.bf16.msra.mxu0 %v6817_v43 }
0x1952   : > { %5132 = vmatprep.subr.bf16.mxu0 %v6825_v32 }
0x1954   : > { %4961 = vmatpush1.bf16.msra.mxu1 %v6796_v23 }
0x1955   : > { %4962 = vmatprep.subr.bf16.mxu1 %v6804_v20  ;;  %5133 = vmatpush1.bf16.msra.mxu0 %v6823_v35 }
0x1958   : > { %4963 = vmatpush1.bf16.msra.mxu1 %v6802_v56  ;;  %5135 = vmatmul.mubr.bf16.vlgmr.msra.gmra.mrb[0].mxu0 %v3265_v40 }
0x1959   : > { %4964 = vmatprep.subr.bf16.mxu1 %v6810_v47 }
0x195c   : > { %4965 = vmatpush1.bf16.msra.mxu1 %v6808_v27 }
0x195d   : > { %4966 = vmatprep.subr.bf16.mxu1 %v6816_v55 }
0x1960   : > { %4967 = vmatpush1.bf16.msra.mxu1 %v6814_v63 }
0x1961   : > { %4968 = vmatprep.subr.bf16.mxu1 %v6822_v49 }
0x1964   : > { %4969 = vmatpush1.bf16.msra.mxu1 %v6820_v33 }
0x1967   : > { %4971 = vmatmul.mubr.bf16.vlgmr.msra.gmra.mrb[0].mxu1 %v3257_v0 }
0x1a2b   : > { %v5136_v9 = vpop.f32.mrb[0].mxu0 }
0x1a2c   : > { %v5138_v26 = vpop.f32.mrb[1].mxu0 }
0x1a2d   : > { %v5140_v42 = vpop.f32.mrb[2].mxu0 }
0x1a2e   : > { %v5141_v8 = vpop.f32.mrb[3].mxu0 }
0x1a3a   : > { %v4972_v51 = vpop.f32.mrb[0].mxu1 }
0x1a3b   : > { %v6076_v36 = vadd.f32 %v4972_v51, %v3528_v2  ;;  %v4974_v39 = vpop.f32.mrb[1].mxu1 }
0x1a3c   : > { %v6078_v5 = vadd.f32 %v4974_v39, %v3532_v57  ;;  %v4976_v37 = vpop.f32.mrb[2].mxu1 }
0x1a3d   : > { %v6077_v7 = vadd.f32 %v6076_v36, %v5136_v9  ;;  %v4977_v53 = vpop.f32.mrb[3].mxu1 }
0x1a3e   : > { %v6079_v10 = vadd.f32 %v6078_v5, %v5138_v26 }
0x1a3f   : > { %v5155_v11 = vmul.f32 %v6077_v7, %v5148_v22 }
0x1a40   : > { %v5156_v12 = vmul.f32 %v6079_v10, %v5152_v60 }
0x1a41   : > { %v5158_v13 = vsel %vm5157_vm3, %v5155_v11, 0.0 }
0x1a42   : > { %v5159_v44 = vsel %vm5157_vm3, %v5156_v12, 0.0 }
0x1a43   : > { %v5160_v1 = vadd.f32 %v5159_v44, %v5158_v13 }
0x1a45   : > { %5161 = vadd.xlane.f32.xlu0 %v5160_v1 }
0x1ad2   : > { %v5162_v21 = vpop.xlane.xlu0 %5161 }
0x1ad3   : > { %v5170_v16 = vadd.f32 %v5794_v15, %v5162_v21 }
0x1ad5   : > { %v5172_v17 = vsel %vm5171_vm4, %v5170_v16, -inf }
0x1ad6   : > { %v5173_v28 = vrot.slane %v5172_v17, 4 }
0x1ad8   : > { %v5174_v19 = vmax.f32 %v5172_v17, %v5173_v28 }
0x1ada   : > { %v5175_v3 = vrot.slane %v5174_v19, 2 }
0x1adc   : > { %v5176_v24 = vmax.f32 %v5174_v19, %v5175_v3 }
0x1ade   : > { %v5177_v18 = vrot.slane %v5176_v24, 1 }
0x1ae0   : > { %v5178_v25 = vmax.f32 %v5176_v24, %v5177_v18 }
0x1ae2   : > { %v5179_v4 = vsub.f32 %v5170_v16, %v5178_v25 }
0x1ae4   : > { %v5180_v31 = vmul.f32 1.442695, %v5179_v4 }
0x1ae6   : > { %6827 = vpow2.f32 %v5180_v31 }
0x1af0   : > { %v6828_v34 = vpop.eup %6827 }
0x1af1   : > { %v5182_v59 = vsel %vm5171_vm4, %v6828_v34, 0.0 }
0x1af2   : > { %v5183_v38 = vrot.slane %v5182_v59, 4 }
0x1af4   : > { %v5184_v41 = vadd.f32 %v5183_v38, %v5182_v59 }
0x1af6   : > { %v5185_v45 = vrot.slane %v5184_v41, 2 }
0x1af8   : > { %v5186_v6 = vadd.f32 %v5185_v45, %v5184_v41 }
0x1afa   : > { %v5187_v46 = vrot.slane %v5186_v6, 1 }
0x1afc   : > { %v5188_v54 = vadd.f32 %v5187_v46, %v5186_v6 }
0x1afe   : > { %6829 = vrcp.f32 %v5188_v54 }
0x1b08   : > { %v6830_v58 = vpop.eup %6829 }
0x1b09   : > { %v5190_v23 = vmul.f32 %v6830_v58, %v6828_v34 }
0x1b0b   : > { %5191 = vst.msk [vmem:[#allocation24] sm:$0x3] %vm5171_vm4, %v5190_v23 }
0x1b0c PF: > { %s8419_s25 = sld [smem:[#allocation35_spill]]  ;;  %s7263_s12 = smov [#allocation24]  }
0x1b0d   : > { %s5199_s28 = sshll.u32 %s7263_s12, 4  ;;  %s5200_s28 = int_to_ptr.vmem [resolvable:$true] %s5199_s28 }
0x1b0e   : > { %s7149_s20 = scalar_lea.vmem %s5200_s28, 32  ;;  %p7156_p2 = scmp.lt.s32.totalorder %s5200_s28, %s5200_s28 }
0x1b0f   : > { %p7150_p7 = scmp.ne.s32.totalorder %s5200_s28, %s7149_s20  ;;  %p7157_p10 = scmp.lt.s32.totalorder %s7149_s20, %s7149_s20 }
0x1b11   : > { %p7158_p11 = por %p7157_p10, %p7156_p2 }
0x1b12   : > { %p6196_p1 = scmp.eq.s32.totalorder %s8419_s25, 1 }
0x1b14   : > { %p7151_p8 = pnand %p7150_p7, %p6196_p1 }
0x1b16   : > { %p7152_p4 = pneg %p7151_p8 }
0x1b18   : > { %p7159_p13 = pnand %p7158_p11, %p7152_p4 }
0x1b1a   : > { %7162 = shalt.err (!%p7159_p13)
}
0x1b1b   : > { %s8420_s13 = sld [smem:[#allocation45_spill]] }
0x1b21   : > { %s7163_s8 = scalar_lea.hbm %s8420_s13, 32 }
0x1b22   : > { %p7164_p12 = scmp.ne.s32.totalorder %s8420_s13, %s7163_s8  ;;  %p7169_p3 = scmp.lt.u32.totalorder %s7163_s8, %s8420_s13 }
0x1b24   : > { %p7165_p0 = pnand %p7164_p12, %p6196_p1 }
0x1b26   : > { %p7166_p9 = pneg %p7165_p0 }
0x1b28   : > { %p7171_p5 = pnand %p7169_p3, %p7166_p9 }
0x1b2a   : > { %7174 = shalt.err (!%p7171_p5)
}
0x1b2b   : > { %6145 = dma.vmem_to_hbm [thread:$0]  (%p6196_p1), %s5200_s28, 32, %s8420_s13, [#allocation8]  }
0x1b2c   : > { %7220 = dma.done.wait (%p6196_p1), [#allocation8], 32  }
0x1b2d   : > { %7222 = vsyncadd (%p6196_p1), [#allocation8], 4294967264 }
0x1b2e PF: > { %s8421_s26 = sld [smem:[#allocation37_spill]]  ;;  %s8422_s23 = sld [smem:[#allocation33_spill]] }
0x1b2f   : > { %s8423_s24 = sld [smem:[#allocation34_spill]]  ;;  %s8424_s25 = sld [smem:[#allocation38_spill]] }
0x1b34   : > { %p34_p6 = scmp.ge.s32.totalorder %s8421_s26, 4  }
0x1b36   :  { %36 = sbr.rel (!%p34_p6) target bundleno = 18 (0x12), region = 186 }
0x1b3d   :  { %5212 = vsyncpa [#allocation7], 1 }
0x1b3e   :  { %5214 = vsyncpa [#allocation7 + $0x1], 1 }
0x1b3f   :  { %5215 = vsyncpa [#allocation10], 1 }
0x1b40   :  { %5216 = vsyncpa [#allocation13], 1 }
0x1b41   :  { %5218 = vsyncpa [#allocation13 + $0x1], 1 }
0x1b42   :  { %5219 = vsyncpa [#allocation16], 1 }
0x1b43   :  { %5221 = vsyncpa [#allocation16 + $0x1], 1 }
0x1b44   :  { %5222 = vsyncpa [#allocation19], 1 }
0x1b45   :  { %5224 = vsyncpa [#allocation19 + $0x1], 1 }
0x1b46   :  { %5225 = vsyncpa [#allocation22], 1 }
0x1b47   :  { %5226 = vsyncpa [#allocation8], 1 }
0x1b48   :  { %5228 = vsyncpa [#allocation8 + $0x1], 1 }

</bundles_post_ra>
